<compile_context>
chip_gen: v6e
topology: v6e:2x2x1
jax: 0.10.0
libtpu: 0.0.40
codegen_flags: <defaults>
</compile_context>

<pallas_src>
import functools

import jax
import jax.numpy as jnp
from jax.experimental import pallas as pl
from jax.experimental.pallas import tpu as pltpu

# ----------------------------- small config -------------------------------
BATCH        = 2
IMG_CHANNELS = 4
IMG_SIZE     = 16
PATCH_SIZE   = 4
EMBED_DIM    = 32
NUM_HEADS    = 4
FF_DIM       = 64
NUM_BLOCKS   = 2
CLF_HIDDEN   = 32
NUM_CLASSES  = 8
LN_EPS       = 1e-5

NUM_PATCHES = (IMG_SIZE // PATCH_SIZE) ** 2          # 16
SEQ         = NUM_PATCHES + 1                        # +1 cls token -> 17
HEAD_DIM    = EMBED_DIM // NUM_HEADS                 # 8
PATCH_DIM   = IMG_CHANNELS * PATCH_SIZE * PATCH_SIZE # 64
LANE        = 128


# ------------------------------ helpers ------------------------------------
def _layernorm(h, g, b):
    mu = jnp.mean(h, axis=-1, keepdims=True)
    var = jnp.mean((h - mu) ** 2, axis=-1, keepdims=True)
    return (h - mu) * jax.lax.rsqrt(var + LN_EPS) * g + b


def _vec_layout(batch):
    """Row offsets inside the packed (R, 128) vector slab."""
    bs = batch * SEQ
    off = {
        "pos": 0,                    # bs rows: positional embedding tiled over batch
        "patch_b": bs,
        "cls": bs + 1,
        "emb_g": bs + 2,
        "emb_b": bs + 3,
        "clf_b1": bs + 4,
        "clf_b2": bs + 5,
        "blk": bs + 6,               # 7 rows per block: bo, ln1g, ln1b, b1, b2, ln2g, ln2b
    }
    off["clf_w2"] = off["blk"] + 7 * NUM_BLOCKS   # CLF_HIDDEN rows, 128-lane padded
    off["total"] = off["clf_w2"] + CLF_HIDDEN
    return off


# ------------------------------ fused kernel --------------------------------
def _vit_kernel(patches_ref, attn_w_ref, ffn_w_ref, misc_w_ref, vec_ref,
                logits_ref, attn_ref, qkv_scr, *, batch, apply_tanh):
    f32 = jnp.float32
    B, S, E, H, Dh, F, L = batch, SEQ, EMBED_DIM, NUM_HEADS, HEAD_DIM, FF_DIM, NUM_BLOCKS
    BS = B * S
    off = _vec_layout(B)

    def vrow(r, width=E):
        return vec_ref[r:r + 1, 0:width]                     # (1, width)

    # ---- patch embedding + cls token + positional embedding + LayerNorm ----
    patch_w = misc_w_ref[0:PATCH_DIM, :]                     # (PD, E)
    pe = jnp.dot(patches_ref[...], patch_w,
                 preferred_element_type=f32) + vrow(off["patch_b"])        # (BS, E)
    row = jax.lax.broadcasted_iota(jnp.int32, (BS, E), 0)
    is_cls = (row == 0)
    for b in range(1, B):
        is_cls = is_cls | (row == b * S)
    cls_tok = jnp.broadcast_to(vrow(off["cls"]), (BS, E))
    x = jnp.where(is_cls, cls_tok, pe)                       # cls token at row b*S
    x = x + vec_ref[0:BS, 0:E]                               # pos, pre-tiled over batch
    x = _layernorm(x, vrow(off["emb_g"]), vrow(off["emb_b"]))
    # TODO(synk): dropout / attention-dropout are identity (deterministic inference).

    dn_qk = (((2,), (2,)), ((0,), (0,)))                     # q . k^T, batched over B*H
    dn_av = (((2,), (1,)), ((0,), (0,)))                     # a . v,   batched over B*H

    # ---- encoder blocks (post-norm), statically unrolled ----
    for l in range(L):
        base = off["blk"] + 7 * l
        last = (l == L - 1)

        w_all = attn_w_ref[l]                                # (E, 4E) = [wq*s | wk | wv | wo]
        wqkv = w_all[:, 0:3 * E]                             # (E, 3E)
        wo = w_all[:, 3 * E:4 * E]                           # (E, E)
        fw = ffn_w_ref[l]                                    # (E+F, F)
        w1 = fw[0:E, :]                                      # (E, F)
        w2 = fw[E:E + F, 0:E]                                # (F, E)

        # One wide fused QKV matmul over the batch-folded activations, staged in
        # VMEM scratch so the head split is plain strided loads.
        qkv_scr[...] = jnp.dot(x, wqkv, preferred_element_type=f32)        # (BS, 3E)

        def heads(col):
            return jnp.stack(
                [qkv_scr[b * S:(b + 1) * S, col + h * Dh:col + (h + 1) * Dh]
                 for b in range(B) for h in range(H)], axis=0)             # (B*H, S, Dh)

        qh, kh, vh = heads(0), heads(E), heads(2 * E)

        s = jax.lax.dot_general(qh, kh, dn_qk, preferred_element_type=f32)  # (BH,S,S)
        s = s - jnp.max(s, axis=-1, keepdims=True)
        p = jnp.exp(s)
        a = p * pl.reciprocal(jnp.sum(p, axis=-1, keepdims=True))           # softmax

        if last:
            attn_ref[...] = a                                # (B*H, S, S); reshaped outside
            # Only the cls rows feed the classifier -> shrink the tail to 1 row / batch.
            a = a[:, 0:1, :]                                 # (BH, 1, S)
            x = jnp.concatenate([x[b * S:b * S + 1, :] for b in range(B)], axis=0)

        ctx = jax.lax.dot_general(a, vh, dn_av, preferred_element_type=f32)  # (BH,r,Dh)

        # Merge heads -> (B*r, E), then one (., E) @ (E, E) output projection.
        ctx_m = jnp.concatenate(
            [jnp.concatenate([ctx[b * H + h] for h in range(H)], axis=1)
             for b in range(B)], axis=0)

        attn_out = jnp.dot(ctx_m, wo, preferred_element_type=f32) + vrow(base + 0)
        h1 = _layernorm(x + attn_out, vrow(base + 1), vrow(base + 2))
        f = jnp.dot(h1, w1, preferred_element_type=f32) + vrow(base + 3, F)
        f = jnp.maximum(f, 0.0)                              # relu
        f = jnp.dot(f, w2, preferred_element_type=f32) + vrow(base + 4)
        x = _layernorm(h1 + f, vrow(base + 5), vrow(base + 6))

    if apply_tanh:
        x = jnp.tanh(x)

    # ---- classifier head on the cls tokens (x is (B, E) here) ----
    clf_w1 = misc_w_ref[PATCH_DIM:PATCH_DIM + E, :]                          # (E, CH)
    clf_w2 = vec_ref[off["clf_w2"]:off["clf_w2"] + CLF_HIDDEN, :]            # (CH, 128)
    hid = jnp.dot(x, clf_w1, preferred_element_type=f32) + vrow(off["clf_b1"], CLF_HIDDEN)
    logits = jnp.dot(hid, clf_w2, preferred_element_type=f32) \
        + vec_ref[off["clf_b2"]:off["clf_b2"] + 1, :]
    logits_ref[...] = logits                                 # (B, 128) lane-dense store


def _vit_pallas(patches, attn_w, ffn_w, misc_w, vecs, *, batch, apply_tanh):
    out_shape = (jax.ShapeDtypeStruct((batch, LANE), jnp.float32),
                 jax.ShapeDtypeStruct((batch * NUM_HEADS, SEQ, SEQ), jnp.float32))
    logits_pad, attn = pl.pallas_call(
        functools.partial(_vit_kernel, batch=batch, apply_tanh=apply_tanh),
        out_shape=out_shape,
        scratch_shapes=[pltpu.VMEM((batch * SEQ, 3 * EMBED_DIM), jnp.float32)],
    )(patches, attn_w, ffn_w, misc_w, vecs)
    logits = logits_pad[:, :NUM_CLASSES]
    return logits, attn.reshape(batch, NUM_HEADS, SEQ, SEQ)


# -------------------- parameter prep (packed, lane-dense slabs) -------------
def _prepare_kernel_params(params, batch):
    E, Dh, F, NC = EMBED_DIM, HEAD_DIM, FF_DIM, NUM_CLASSES
    scale = 1.0 / float(Dh) ** 0.5
    blocks = params["blocks"]

    # Attention slab: (L, E, 4E) = [wq*scale | wk | wv | wo] -> 128-lane dense.
    attn_w = jnp.stack([
        jnp.concatenate([b["wq"] * scale, b["wk"], b["wv"], b["wo"]], axis=1)
        for b in blocks])

    # FFN slab: rows 0:E = w1 (E,F); rows E:E+F = w2 (F,E) zero-padded to F cols.
    ffn_w = jnp.stack([
        jnp.concatenate([b["w1"], jnp.pad(b["w2"], ((0, 0), (0, F - E)))], axis=0)
        for b in blocks])

    # Matrix slab: patch projection + classifier hidden weight.
    misc_w = jnp.concatenate([params["patch_w"], params["clf_w1"]], axis=0)   # (PD+E, E)

    # Vector slab: pos (tiled over batch), all biases / LN params, padded clf_w2.
    def vrow(v):
        v = v.reshape(1, -1)
        return jnp.pad(v, ((0, 0), (0, LANE - v.shape[1])))

    pos_pad = jnp.pad(params["pos"].reshape(SEQ, E), ((0, 0), (0, LANE - E)))
    rows = [jnp.concatenate([pos_pad] * batch, axis=0),
            vrow(params["patch_b"]), vrow(params["cls"].reshape(-1)),
            vrow(params["emb_g"]), vrow(params["emb_b"]),
            vrow(params["clf_b1"]), vrow(params["clf_b2"])]
    for b in blocks:
        rows += [vrow(b["bo"]), vrow(b["ln1_g"]), vrow(b["ln1_b"]),
                 vrow(b["b1"]), vrow(b["b2"]), vrow(b["ln2_g"]), vrow(b["ln2_b"])]
    rows.append(jnp.pad(params["clf_w2"], ((0, 0), (0, LANE - NC))))
    vecs = jnp.concatenate(rows, axis=0)
    assert vecs.shape[0] == _vec_layout(batch)["total"]
    return attn_w, ffn_w, misc_w, vecs


def init_params(key):
    def nrm(k, shape, scale=0.02):
        return (scale * jax.random.normal(k, shape)).astype(jnp.float32)

    keys = iter(jax.random.split(key, 64))
    params = {
        "patch_w": nrm(next(keys), (PATCH_DIM, EMBED_DIM)),   # conv folded to matmul
        "patch_b": jnp.zeros((EMBED_DIM,), jnp.float32),
        "cls":     nrm(next(keys), (1, 1, EMBED_DIM)),
        "pos":     nrm(next(keys), (1, SEQ, EMBED_DIM)),
        "emb_g":   jnp.ones((EMBED_DIM,), jnp.float32),
        "emb_b":   jnp.zeros((EMBED_DIM,), jnp.float32),
        "clf_w1":  nrm(next(keys), (EMBED_DIM, CLF_HIDDEN)),
        "clf_b1":  jnp.zeros((CLF_HIDDEN,), jnp.float32),
        "clf_w2":  nrm(next(keys), (CLF_HIDDEN, NUM_CLASSES)),
        "clf_b2":  jnp.zeros((NUM_CLASSES,), jnp.float32),
        "blocks":  [],
    }
    for _ in range(NUM_BLOCKS):
        params["blocks"].append({
            "wq": nrm(next(keys), (EMBED_DIM, EMBED_DIM)),    # qkv_bias=False
            "wk": nrm(next(keys), (EMBED_DIM, EMBED_DIM)),
            "wv": nrm(next(keys), (EMBED_DIM, EMBED_DIM)),
            "wo": nrm(next(keys), (EMBED_DIM, EMBED_DIM)),
            "bo": jnp.zeros((EMBED_DIM,), jnp.float32),
            "ln1_g": jnp.ones((EMBED_DIM,), jnp.float32),
            "ln1_b": jnp.zeros((EMBED_DIM,), jnp.float32),
            "w1": nrm(next(keys), (EMBED_DIM, FF_DIM)),
            "b1": jnp.zeros((FF_DIM,), jnp.float32),
            "w2": nrm(next(keys), (FF_DIM, EMBED_DIM)),
            "b2": jnp.zeros((EMBED_DIM,), jnp.float32),
            "ln2_g": jnp.ones((EMBED_DIM,), jnp.float32),
            "ln2_b": jnp.zeros((EMBED_DIM,), jnp.float32),
        })
    return params


# ------------------------------ forward pass --------------------------------
@functools.partial(jax.jit, static_argnames=("apply_tanh",))
def vision_transformer_forward(x, params, apply_tanh=False):
    """x: (B, C, H, W) NCHW float32.  Returns (logits, last-block attention)."""
    B, C, Himg, Wimg = x.shape
    p = PATCH_SIZE
    nh, nw = Himg // p, Wimg // p

    # Conv2d(k=p, stride=p) == non-overlapping patch extraction (layout glue only).
    patches = x.reshape(B, C, nh, p, nw, p)
    patches = jnp.transpose(patches, (0, 2, 4, 1, 3, 5)).reshape(B, nh * nw, C * p * p)
    # Zero row at each cls position; the kernel overwrites it with the cls token.
    patches = jnp.pad(patches, ((0, 0), (1, 0), (0, 0))).reshape(B * SEQ, PATCH_DIM)

    attn_w, ffn_w, misc_w, vecs = _prepare_kernel_params(params, B)
    return _vit_pallas(patches, attn_w, ffn_w, misc_w, vecs,
                       batch=B, apply_tanh=apply_tanh)


# ------------------------ pure-JAX reference (for checking) -----------------
def _reference_forward(x, params, apply_tanh=False):
    with jax.default_matmul_precision("highest"):
        B, C, Hh, Ww = x.shape
        p = PATCH_SIZE
        nh, nw = Hh // p, Ww // p
        patches = x.reshape(B, C, nh, p, nw, p)
        patches = jnp.transpose(patches, (0, 2, 4, 1, 3, 5)).reshape(B, nh * nw, -1)
        pe = patches @ params["patch_w"] + params["patch_b"]
        cls = jnp.broadcast_to(params["cls"], (B, 1, EMBED_DIM))
        h = jnp.concatenate([cls, pe], axis=1) + params["pos"]
        h = _layernorm(h, params["emb_g"], params["emb_b"])
        final_attn = None
        for blk in params["blocks"]:
            q, k, v = h @ blk["wq"], h @ blk["wk"], h @ blk["wv"]
            split = lambda t: t.reshape(B, SEQ, NUM_HEADS, HEAD_DIM).transpose(0, 2, 1, 3)
            qh, kh, vh = split(q), split(k), split(v)
            s = jnp.einsum("bhqd,bhkd->bhqk", qh, kh) / (HEAD_DIM ** 0.5)
            a = jax.nn.softmax(s, axis=-1)
            final_attn = a
            ctx = jnp.einsum("bhqk,bhkd->bhqd", a, vh)
            ctx = ctx.transpose(0, 2, 1, 3).reshape(B, SEQ, EMBED_DIM)
            h1 = _layernorm(h + ctx @ blk["wo"] + blk["bo"], blk["ln1_g"], blk["ln1_b"])
            f = jnp.maximum(h1 @ blk["w1"] + blk["b1"], 0.0)
            f = f @ blk["w2"] + blk["b2"]
            h = _layernorm(h1 + f, blk["ln2_g"], blk["ln2_b"])
        if apply_tanh:
            h = jnp.tanh(h)
        cls_tok = h[:, 0]
        logits = (cls_tok @ params["clf_w1"] + params["clf_b1"]) @ params["clf_w2"] + params["clf_b2"]
        return logits, final_attn


# ------------------------------------ main ----------------------------------
if __name__ == "__main__":
    key = jax.random.PRNGKey(0)
    k_x, k_p = jax.random.split(key)
    x = jax.random.normal(k_x, (BATCH, IMG_CHANNELS, IMG_SIZE, IMG_SIZE),
                          dtype=jnp.float32)
    params = init_params(k_p)

    logits, attn = vision_transformer_forward(x, params, apply_tanh=False)
    jax.block_until_ready(logits)
    jax.block_until_ready(attn)

    assert logits.shape == (BATCH, NUM_CLASSES)
    assert attn.shape == (BATCH, NUM_HEADS, SEQ, SEQ)
    assert bool(jnp.all(jnp.isfinite(logits)))
    assert bool(jnp.all(jnp.isfinite(attn)))

    ref_logits, ref_attn = _reference_forward(x, params, apply_tanh=False)
    assert bool(jnp.allclose(logits, ref_logits, atol=1e-4, rtol=1e-2)), "logits mismatch"
    assert bool(jnp.allclose(attn, ref_attn, atol=1e-4, rtol=1e-2)), "attention mismatch"

    print("KERNEL_OK")
</pallas_src>

<mosaic_0001>
module attributes {stable_mosaic.version = 11 : i64} {
  func.func @_vit_kernel(%arg0: memref<34x64xf32, #tpu.memory_space<vmem>>, %arg1: memref<2x32x128xf32, #tpu.memory_space<vmem>>, %arg2: memref<2x96x64xf32, #tpu.memory_space<vmem>>, %arg3: memref<96x32xf32, #tpu.memory_space<vmem>>, %arg4: memref<86x128xf32, #tpu.memory_space<vmem>>, %arg5: memref<2x128xf32, #tpu.memory_space<vmem>>, %arg6: memref<8x17x17xf32, #tpu.memory_space<vmem>>, %arg7: memref<34x96xf32, #tpu.memory_space<vmem>>) attributes {dimension_semantics = [], scalar_prefetch = 0 : i64, scratch_operands = 1 : i64, tpu.core_type = #tpu.core_type<tc>} {
    %c0 = arith.constant 0 : index
    %c0_0 = arith.constant 0 : index
    %0 = vector.load %arg3[%c0, %c0_0] : memref<96x32xf32, #tpu.memory_space<vmem>>, vector<64x32xf32>
    %c0_1 = arith.constant 0 : index
    %c0_2 = arith.constant 0 : index
    %1 = vector.load %arg0[%c0_1, %c0_2] : memref<34x64xf32, #tpu.memory_space<vmem>>, vector<34x64xf32>
    %cst = arith.constant dense<0.000000e+00> : vector<34x32xf32>
    %2 = tpu.matmul %1, %0, %cst {dimension_numbers = #tpu.dot_dimension_numbers<[1], [0], [0], [1], [0, 0, 1, 1], [], []>} : vector<34x64xf32>, vector<64x32xf32>, vector<34x32xf32> -> vector<34x32xf32>
    %c34 = arith.constant 34 : index
    %c0_3 = arith.constant 0 : index
    %3 = vector.load %arg4[%c34, %c0_3] : memref<86x128xf32, #tpu.memory_space<vmem>>, vector<1x32xf32>
    %4 = vector.broadcast %3 : vector<1x32xf32> to vector<34x32xf32>
    %5 = arith.addf %2, %4 : vector<34x32xf32>
    %6 = tpu.iota {dimensions = array<i32: 0>} : vector<34x32xi32>
    %c0_i32 = arith.constant 0 : i32
    %7 = vector.broadcast %c0_i32 : i32 to vector<34x32xi32>
    %8 = arith.cmpi eq, %6, %7 : vector<34x32xi32>
    %c17_i32 = arith.constant 17 : i32
    %9 = vector.broadcast %c17_i32 : i32 to vector<34x32xi32>
    %10 = arith.cmpi eq, %6, %9 : vector<34x32xi32>
    %11 = arith.ori %8, %10 : vector<34x32xi1>
    %c35 = arith.constant 35 : index
    %c0_4 = arith.constant 0 : index
    %12 = vector.load %arg4[%c35, %c0_4] : memref<86x128xf32, #tpu.memory_space<vmem>>, vector<1x32xf32>
    %13 = vector.shape_cast %12 : vector<1x32xf32> to vector<1x32xf32>
    %14 = vector.broadcast %13 : vector<1x32xf32> to vector<34x32xf32>
    %15 = arith.select %11, %14, %5 : vector<34x32xi1>, vector<34x32xf32>
    %c0_5 = arith.constant 0 : index
    %c0_6 = arith.constant 0 : index
    %16 = vector.load %arg4[%c0_5, %c0_6] : memref<86x128xf32, #tpu.memory_space<vmem>>, vector<34x32xf32>
    %17 = arith.addf %15, %16 : vector<34x32xf32>
    %c36 = arith.constant 36 : index
    %c0_7 = arith.constant 0 : index
    %18 = vector.load %arg4[%c36, %c0_7] : memref<86x128xf32, #tpu.memory_space<vmem>>, vector<1x32xf32>
    %c37 = arith.constant 37 : index
    %c0_8 = arith.constant 0 : index
    %19 = vector.load %arg4[%c37, %c0_8] : memref<86x128xf32, #tpu.memory_space<vmem>>, vector<1x32xf32>
    %cst_9 = arith.constant dense<0.000000e+00> : vector<34xf32>
    %20 = vector.multi_reduction <add>, %17, %cst_9 [1] : vector<34x32xf32> to vector<34xf32>
    %21 = vector.shape_cast %20 : vector<34xf32> to vector<34x1xf32>
    %cst_10 = arith.constant 3.200000e+01 : f32
    %22 = vector.broadcast %cst_10 : f32 to vector<34x1xf32>
    %23 = arith.divf %21, %22 : vector<34x1xf32>
    %24 = vector.broadcast %23 : vector<34x1xf32> to vector<34x32xf32>
    %25 = arith.subf %17, %24 : vector<34x32xf32>
    %26 = arith.mulf %25, %25 : vector<34x32xf32>
    %cst_11 = arith.constant dense<0.000000e+00> : vector<34xf32>
    %27 = vector.multi_reduction <add>, %26, %cst_11 [1] : vector<34x32xf32> to vector<34xf32>
    %28 = vector.shape_cast %27 : vector<34xf32> to vector<34x1xf32>
    %cst_12 = arith.constant 3.200000e+01 : f32
    %29 = vector.broadcast %cst_12 : f32 to vector<34x1xf32>
    %30 = arith.divf %28, %29 : vector<34x1xf32>
    %31 = vector.broadcast %23 : vector<34x1xf32> to vector<34x32xf32>
    %32 = arith.subf %17, %31 : vector<34x32xf32>
    %cst_13 = arith.constant 9.99999974E-6 : f32
    %33 = vector.broadcast %cst_13 : f32 to vector<34x1xf32>
    %34 = arith.addf %30, %33 : vector<34x1xf32>
    %35 = math.rsqrt %34 : vector<34x1xf32>
    %36 = vector.broadcast %35 : vector<34x1xf32> to vector<34x32xf32>
    %37 = arith.mulf %32, %36 : vector<34x32xf32>
    %38 = vector.broadcast %18 : vector<1x32xf32> to vector<34x32xf32>
    %39 = arith.mulf %37, %38 : vector<34x32xf32>
    %40 = vector.broadcast %19 : vector<1x32xf32> to vector<34x32xf32>
    %41 = arith.addf %39, %40 : vector<34x32xf32>
    %c0_14 = arith.constant 0 : index
    %c0_15 = arith.constant 0 : index
    %c0_16 = arith.constant 0 : index
    %42 = vector.load %arg1[%c0_14, %c0_15, %c0_16] : memref<2x32x128xf32, #tpu.memory_space<vmem>>, vector<1x32x128xf32>
    %43 = vector.shape_cast %42 : vector<1x32x128xf32> to vector<32x128xf32>
    %44 = vector.extract_strided_slice %43 {offsets = [0, 0], sizes = [32, 96], strides = [1, 1]} : vector<32x128xf32> to vector<32x96xf32>
    %45 = vector.extract_strided_slice %43 {offsets = [0, 96], sizes = [32, 32], strides = [1, 1]} : vector<32x128xf32> to vector<32x32xf32>
    %c0_17 = arith.constant 0 : index
    %c0_18 = arith.constant 0 : index
    %c0_19 = arith.constant 0 : index
    %46 = vector.load %arg2[%c0_17, %c0_18, %c0_19] : memref<2x96x64xf32, #tpu.memory_space<vmem>>, vector<1x96x64xf32>
    %47 = vector.shape_cast %46 : vector<1x96x64xf32> to vector<96x64xf32>
    %48 = vector.extract_strided_slice %47 {offsets = [0, 0], sizes = [32, 64], strides = [1, 1]} : vector<96x64xf32> to vector<32x64xf32>
    %49 = vector.extract_strided_slice %47 {offsets = [32, 0], sizes = [64, 32], strides = [1, 1]} : vector<96x64xf32> to vector<64x32xf32>
    %cst_20 = arith.constant dense<0.000000e+00> : vector<34x96xf32>
    %50 = tpu.matmul %41, %44, %cst_20 {dimension_numbers = #tpu.dot_dimension_numbers<[1], [0], [0], [1], [0, 0, 1, 1], [], []>} : vector<34x32xf32>, vector<32x96xf32>, vector<34x96xf32> -> vector<34x96xf32>
    %c0_21 = arith.constant 0 : index
    %c0_22 = arith.constant 0 : index
    %51 = vector.load %arg7[%c0_21, %c0_22] : memref<34x96xf32, #tpu.memory_space<vmem>>, vector<34x96xf32>
    tpu.vector_store %arg7[%c0_21, %c0_22], %50 {strides = array<i32>} : memref<34x96xf32, #tpu.memory_space<vmem>>, vector<34x96xf32>,
    %c0_23 = arith.constant 0 : index
    %c0_24 = arith.constant 0 : index
    %52 = vector.load %arg7[%c0_23, %c0_24] : memref<34x96xf32, #tpu.memory_space<vmem>>, vector<17x8xf32>
    %c0_25 = arith.constant 0 : index
    %c8 = arith.constant 8 : index
    %53 = vector.load %arg7[%c0_25, %c8] : memref<34x96xf32, #tpu.memory_space<vmem>>, vector<17x8xf32>
    %c0_26 = arith.constant 0 : index
    %c16 = arith.constant 16 : index
    %54 = vector.load %arg7[%c0_26, %c16] : memref<34x96xf32, #tpu.memory_space<vmem>>, vector<17x8xf32>
    %c0_27 = arith.constant 0 : index
    %c24 = arith.constant 24 : index
    %55 = vector.load %arg7[%c0_27, %c24] : memref<34x96xf32, #tpu.memory_space<vmem>>, vector<17x8xf32>
    %c17 = arith.constant 17 : index
    %c0_28 = arith.constant 0 : index
    %56 = vector.load %arg7[%c17, %c0_28] : memref<34x96xf32, #tpu.memory_space<vmem>>, vector<17x8xf32>
    %c17_29 = arith.constant 17 : index
    %c8_30 = arith.constant 8 : index
    %57 = vector.load %arg7[%c17_29, %c8_30] : memref<34x96xf32, #tpu.memory_space<vmem>>, vector<17x8xf32>
    %c17_31 = arith.constant 17 : index
    %c16_32 = arith.constant 16 : index
    %58 = vector.load %arg7[%c17_31, %c16_32] : memref<34x96xf32, #tpu.memory_space<vmem>>, vector<17x8xf32>
    %c17_33 = arith.constant 17 : index
    %c24_34 = arith.constant 24 : index
    %59 = vector.load %arg7[%c17_33, %c24_34] : memref<34x96xf32, #tpu.memory_space<vmem>>, vector<17x8xf32>
    %60 = vector.shape_cast %52 : vector<17x8xf32> to vector<1x17x8xf32>
    %61 = vector.shape_cast %53 : vector<17x8xf32> to vector<1x17x8xf32>
    %62 = vector.shape_cast %54 : vector<17x8xf32> to vector<1x17x8xf32>
    %63 = vector.shape_cast %55 : vector<17x8xf32> to vector<1x17x8xf32>
    %64 = vector.shape_cast %56 : vector<17x8xf32> to vector<1x17x8xf32>
    %65 = vector.shape_cast %57 : vector<17x8xf32> to vector<1x17x8xf32>
    %66 = vector.shape_cast %58 : vector<17x8xf32> to vector<1x17x8xf32>
    %67 = vector.shape_cast %59 : vector<17x8xf32> to vector<1x17x8xf32>
    %68 = tpu.concatenate %60, %61, %62, %63, %64, %65, %66, %67 in 0 : vector<1x17x8xf32>, vector<1x17x8xf32>, vector<1x17x8xf32>, vector<1x17x8xf32>, vector<1x17x8xf32>, vector<1x17x8xf32>, vector<1x17x8xf32>, vector<1x17x8xf32> -> vector<8x17x8xf32>
    %c0_35 = arith.constant 0 : index
    %c32 = arith.constant 32 : index
    %69 = vector.load %arg7[%c0_35, %c32] : memref<34x96xf32, #tpu.memory_space<vmem>>, vector<17x8xf32>
    %c0_36 = arith.constant 0 : index
    %c40 = arith.constant 40 : index
    %70 = vector.load %arg7[%c0_36, %c40] : memref<34x96xf32, #tpu.memory_space<vmem>>, vector<17x8xf32>
    %c0_37 = arith.constant 0 : index
    %c48 = arith.constant 48 : index
    %71 = vector.load %arg7[%c0_37, %c48] : memref<34x96xf32, #tpu.memory_space<vmem>>, vector<17x8xf32>
    %c0_38 = arith.constant 0 : index
    %c56 = arith.constant 56 : index
    %72 = vector.load %arg7[%c0_38, %c56] : memref<34x96xf32, #tpu.memory_space<vmem>>, vector<17x8xf32>
    %c17_39 = arith.constant 17 : index
    %c32_40 = arith.constant 32 : index
    %73 = vector.load %arg7[%c17_39, %c32_40] : memref<34x96xf32, #tpu.memory_space<vmem>>, vector<17x8xf32>
    %c17_41 = arith.constant 17 : index
    %c40_42 = arith.constant 40 : index
    %74 = vector.load %arg7[%c17_41, %c40_42] : memref<34x96xf32, #tpu.memory_space<vmem>>, vector<17x8xf32>
    %c17_43 = arith.constant 17 : index
    %c48_44 = arith.constant 48 : index
    %75 = vector.load %arg7[%c17_43, %c48_44] : memref<34x96xf32, #tpu.memory_space<vmem>>, vector<17x8xf32>
    %c17_45 = arith.constant 17 : index
    %c56_46 = arith.constant 56 : index
    %76 = vector.load %arg7[%c17_45, %c56_46] : memref<34x96xf32, #tpu.memory_space<vmem>>, vector<17x8xf32>
    %77 = vector.shape_cast %69 : vector<17x8xf32> to vector<1x17x8xf32>
    %78 = vector.shape_cast %70 : vector<17x8xf32> to vector<1x17x8xf32>
    %79 = vector.shape_cast %71 : vector<17x8xf32> to vector<1x17x8xf32>
    %80 = vector.shape_cast %72 : vector<17x8xf32> to vector<1x17x8xf32>
    %81 = vector.shape_cast %73 : vector<17x8xf32> to vector<1x17x8xf32>
    %82 = vector.shape_cast %74 : vector<17x8xf32> to vector<1x17x8xf32>
    %83 = vector.shape_cast %75 : vector<17x8xf32> to vector<1x17x8xf32>
    %84 = vector.shape_cast %76 : vector<17x8xf32> to vector<1x17x8xf32>
    %85 = tpu.concatenate %77, %78, %79, %80, %81, %82, %83, %84 in 0 : vector<1x17x8xf32>, vector<1x17x8xf32>, vector<1x17x8xf32>, vector<1x17x8xf32>, vector<1x17x8xf32>, vector<1x17x8xf32>, vector<1x17x8xf32>, vector<1x17x8xf32> -> vector<8x17x8xf32>
    %c0_47 = arith.constant 0 : index
    %c64 = arith.constant 64 : index
    %86 = vector.load %arg7[%c0_47, %c64] : memref<34x96xf32, #tpu.memory_space<vmem>>, vector<17x8xf32>
    %c0_48 = arith.constant 0 : index
    %c72 = arith.constant 72 : index
    %87 = vector.load %arg7[%c0_48, %c72] : memref<34x96xf32, #tpu.memory_space<vmem>>, vector<17x8xf32>
    %c0_49 = arith.constant 0 : index
    %c80 = arith.constant 80 : index
    %88 = vector.load %arg7[%c0_49, %c80] : memref<34x96xf32, #tpu.memory_space<vmem>>, vector<17x8xf32>
    %c0_50 = arith.constant 0 : index
    %c88 = arith.constant 88 : index
    %89 = vector.load %arg7[%c0_50, %c88] : memref<34x96xf32, #tpu.memory_space<vmem>>, vector<17x8xf32>
    %c17_51 = arith.constant 17 : index
    %c64_52 = arith.constant 64 : index
    %90 = vector.load %arg7[%c17_51, %c64_52] : memref<34x96xf32, #tpu.memory_space<vmem>>, vector<17x8xf32>
    %c17_53 = arith.constant 17 : index
    %c72_54 = arith.constant 72 : index
    %91 = vector.load %arg7[%c17_53, %c72_54] : memref<34x96xf32, #tpu.memory_space<vmem>>, vector<17x8xf32>
    %c17_55 = arith.constant 17 : index
    %c80_56 = arith.constant 80 : index
    %92 = vector.load %arg7[%c17_55, %c80_56] : memref<34x96xf32, #tpu.memory_space<vmem>>, vector<17x8xf32>
    %c17_57 = arith.constant 17 : index
    %c88_58 = arith.constant 88 : index
    %93 = vector.load %arg7[%c17_57, %c88_58] : memref<34x96xf32, #tpu.memory_space<vmem>>, vector<17x8xf32>
    %94 = vector.shape_cast %86 : vector<17x8xf32> to vector<1x17x8xf32>
    %95 = vector.shape_cast %87 : vector<17x8xf32> to vector<1x17x8xf32>
    %96 = vector.shape_cast %88 : vector<17x8xf32> to vector<1x17x8xf32>
    %97 = vector.shape_cast %89 : vector<17x8xf32> to vector<1x17x8xf32>
    %98 = vector.shape_cast %90 : vector<17x8xf32> to vector<1x17x8xf32>
    %99 = vector.shape_cast %91 : vector<17x8xf32> to vector<1x17x8xf32>
    %100 = vector.shape_cast %92 : vector<17x8xf32> to vector<1x17x8xf32>
    %101 = vector.shape_cast %93 : vector<17x8xf32> to vector<1x17x8xf32>
    %102 = tpu.concatenate %94, %95, %96, %97, %98, %99, %100, %101 in 0 : vector<1x17x8xf32>, vector<1x17x8xf32>, vector<1x17x8xf32>, vector<1x17x8xf32>, vector<1x17x8xf32>, vector<1x17x8xf32>, vector<1x17x8xf32>, vector<1x17x8xf32> -> vector<8x17x8xf32>
    %cst_59 = arith.constant dense<0.000000e+00> : vector<8x17x17xf32>
    %103 = tpu.matmul %68, %85, %cst_59 {dimension_numbers = #tpu.dot_dimension_numbers<[2], [2], [1], [1], [0, 0, 0, 1, 1, 1], [0], [0]>} : vector<8x17x8xf32>, vector<8x17x8xf32>, vector<8x17x17xf32> -> vector<8x17x17xf32>
    %cst_60 = arith.constant dense<0xFF800000> : vector<8x17xf32>
    %104 = vector.multi_reduction <maximumf>, %103, %cst_60 [2] : vector<8x17x17xf32> to vector<8x17xf32>
    %105 = vector.shape_cast %104 : vector<8x17xf32> to vector<8x17x1xf32>
    %106 = vector.broadcast %105 : vector<8x17x1xf32> to vector<8x17x17xf32>
    %107 = arith.subf %103, %106 : vector<8x17x17xf32>
    %108 = math.exp %107 : vector<8x17x17xf32>
    %cst_61 = arith.constant dense<0.000000e+00> : vector<8x17xf32>
    %109 = vector.multi_reduction <add>, %108, %cst_61 [2] : vector<8x17x17xf32> to vector<8x17xf32>
    %110 = vector.shape_cast %109 : vector<8x17xf32> to vector<8x17x1xf32>
    %111 = tpu.reciprocal %110 : vector<8x17x1xf32> -> vector<8x17x1xf32>
    %112 = vector.broadcast %111 : vector<8x17x1xf32> to vector<8x17x17xf32>
    %113 = arith.mulf %108, %112 : vector<8x17x17xf32>
    %cst_62 = arith.constant dense<0.000000e+00> : vector<8x17x8xf32>
    %114 = tpu.matmul %113, %102, %cst_62 {dimension_numbers = #tpu.dot_dimension_numbers<[2], [1], [1], [2], [0, 0, 0, 1, 1, 2], [0], [0]>} : vector<8x17x17xf32>, vector<8x17x8xf32>, vector<8x17x8xf32> -> vector<8x17x8xf32>
    %115 = vector.extract_strided_slice %114 {offsets = [0, 0, 0], sizes = [1, 17, 8], strides = [1, 1, 1]} : vector<8x17x8xf32> to vector<1x17x8xf32>
    %116 = vector.shape_cast %115 : vector<1x17x8xf32> to vector<17x8xf32>
    %117 = vector.extract_strided_slice %114 {offsets = [1, 0, 0], sizes = [1, 17, 8], strides = [1, 1, 1]} : vector<8x17x8xf32> to vector<1x17x8xf32>
    %118 = vector.shape_cast %117 : vector<1x17x8xf32> to vector<17x8xf32>
    %119 = vector.extract_strided_slice %114 {offsets = [2, 0, 0], sizes = [1, 17, 8], strides = [1, 1, 1]} : vector<8x17x8xf32> to vector<1x17x8xf32>
    %120 = vector.shape_cast %119 : vector<1x17x8xf32> to vector<17x8xf32>
    %121 = vector.extract_strided_slice %114 {offsets = [3, 0, 0], sizes = [1, 17, 8], strides = [1, 1, 1]} : vector<8x17x8xf32> to vector<1x17x8xf32>
    %122 = vector.shape_cast %121 : vector<1x17x8xf32> to vector<17x8xf32>
    %123 = tpu.concatenate %116, %118, %120, %122 in 1 : vector<17x8xf32>, vector<17x8xf32>, vector<17x8xf32>, vector<17x8xf32> -> vector<17x32xf32>
    %124 = vector.extract_strided_slice %114 {offsets = [4, 0, 0], sizes = [1, 17, 8], strides = [1, 1, 1]} : vector<8x17x8xf32> to vector<1x17x8xf32>
    %125 = vector.shape_cast %124 : vector<1x17x8xf32> to vector<17x8xf32>
    %126 = vector.extract_strided_slice %114 {offsets = [5, 0, 0], sizes = [1, 17, 8], strides = [1, 1, 1]} : vector<8x17x8xf32> to vector<1x17x8xf32>
    %127 = vector.shape_cast %126 : vector<1x17x8xf32> to vector<17x8xf32>
    %128 = vector.extract_strided_slice %114 {offsets = [6, 0, 0], sizes = [1, 17, 8], strides = [1, 1, 1]} : vector<8x17x8xf32> to vector<1x17x8xf32>
    %129 = vector.shape_cast %128 : vector<1x17x8xf32> to vector<17x8xf32>
    %130 = vector.extract_strided_slice %114 {offsets = [7, 0, 0], sizes = [1, 17, 8], strides = [1, 1, 1]} : vector<8x17x8xf32> to vector<1x17x8xf32>
    %131 = vector.shape_cast %130 : vector<1x17x8xf32> to vector<17x8xf32>
    %132 = tpu.concatenate %125, %127, %129, %131 in 1 : vector<17x8xf32>, vector<17x8xf32>, vector<17x8xf32>, vector<17x8xf32> -> vector<17x32xf32>
    %133 = tpu.concatenate %123, %132 in 0 : vector<17x32xf32>, vector<17x32xf32> -> vector<34x32xf32>
    %cst_63 = arith.constant dense<0.000000e+00> : vector<34x32xf32>
    %134 = tpu.matmul %133, %45, %cst_63 {dimension_numbers = #tpu.dot_dimension_numbers<[1], [0], [0], [1], [0, 0, 1, 1], [], []>} : vector<34x32xf32>, vector<32x32xf32>, vector<34x32xf32> -> vector<34x32xf32>
    %c40_64 = arith.constant 40 : index
    %c0_65 = arith.constant 0 : index
    %135 = vector.load %arg4[%c40_64, %c0_65] : memref<86x128xf32, #tpu.memory_space<vmem>>, vector<1x32xf32>
    %136 = vector.broadcast %135 : vector<1x32xf32> to vector<34x32xf32>
    %137 = arith.addf %134, %136 : vector<34x32xf32>
    %138 = arith.addf %41, %137 : vector<34x32xf32>
    %c41 = arith.constant 41 : index
    %c0_66 = arith.constant 0 : index
    %139 = vector.load %arg4[%c41, %c0_66] : memref<86x128xf32, #tpu.memory_space<vmem>>, vector<1x32xf32>
    %c42 = arith.constant 42 : index
    %c0_67 = arith.constant 0 : index
    %140 = vector.load %arg4[%c42, %c0_67] : memref<86x128xf32, #tpu.memory_space<vmem>>, vector<1x32xf32>
    %cst_68 = arith.constant dense<0.000000e+00> : vector<34xf32>
    %141 = vector.multi_reduction <add>, %138, %cst_68 [1] : vector<34x32xf32> to vector<34xf32>
    %142 = vector.shape_cast %141 : vector<34xf32> to vector<34x1xf32>
    %cst_69 = arith.constant 3.200000e+01 : f32
    %143 = vector.broadcast %cst_69 : f32 to vector<34x1xf32>
    %144 = arith.divf %142, %143 : vector<34x1xf32>
    %145 = vector.broadcast %144 : vector<34x1xf32> to vector<34x32xf32>
    %146 = arith.subf %138, %145 : vector<34x32xf32>
    %147 = arith.mulf %146, %146 : vector<34x32xf32>
    %cst_70 = arith.constant dense<0.000000e+00> : vector<34xf32>
    %148 = vector.multi_reduction <add>, %147, %cst_70 [1] : vector<34x32xf32> to vector<34xf32>
    %149 = vector.shape_cast %148 : vector<34xf32> to vector<34x1xf32>
    %cst_71 = arith.constant 3.200000e+01 : f32
    %150 = vector.broadcast %cst_71 : f32 to vector<34x1xf32>
    %151 = arith.divf %149, %150 : vector<34x1xf32>
    %152 = vector.broadcast %144 : vector<34x1xf32> to vector<34x32xf32>
    %153 = arith.subf %138, %152 : vector<34x32xf32>
    %cst_72 = arith.constant 9.99999974E-6 : f32
    %154 = vector.broadcast %cst_72 : f32 to vector<34x1xf32>
    %155 = arith.addf %151, %154 : vector<34x1xf32>
    %156 = math.rsqrt %155 : vector<34x1xf32>
    %157 = vector.broadcast %156 : vector<34x1xf32> to vector<34x32xf32>
    %158 = arith.mulf %153, %157 : vector<34x32xf32>
    %159 = vector.broadcast %139 : vector<1x32xf32> to vector<34x32xf32>
    %160 = arith.mulf %158, %159 : vector<34x32xf32>
    %161 = vector.broadcast %140 : vector<1x32xf32> to vector<34x32xf32>
    %162 = arith.addf %160, %161 : vector<34x32xf32>
    %cst_73 = arith.constant dense<0.000000e+00> : vector<34x64xf32>
    %163 = tpu.matmul %162, %48, %cst_73 {dimension_numbers = #tpu.dot_dimension_numbers<[1], [0], [0], [1], [0, 0, 1, 1], [], []>} : vector<34x32xf32>, vector<32x64xf32>, vector<34x64xf32> -> vector<34x64xf32>
    %c43 = arith.constant 43 : index
    %c0_74 = arith.constant 0 : index
    %164 = vector.load %arg4[%c43, %c0_74] : memref<86x128xf32, #tpu.memory_space<vmem>>, vector<1x64xf32>
    %165 = vector.broadcast %164 : vector<1x64xf32> to vector<34x64xf32>
    %166 = arith.addf %163, %165 : vector<34x64xf32>
    %cst_75 = arith.constant 0.000000e+00 : f32
    %167 = vector.broadcast %cst_75 : f32 to vector<34x64xf32>
    %168 = arith.maximumf %166, %167 : vector<34x64xf32>
    %cst_76 = arith.constant dense<0.000000e+00> : vector<34x32xf32>
    %169 = tpu.matmul %168, %49, %cst_76 {dimension_numbers = #tpu.dot_dimension_numbers<[1], [0], [0], [1], [0, 0, 1, 1], [], []>} : vector<34x64xf32>, vector<64x32xf32>, vector<34x32xf32> -> vector<34x32xf32>
    %c44 = arith.constant 44 : index
    %c0_77 = arith.constant 0 : index
    %170 = vector.load %arg4[%c44, %c0_77] : memref<86x128xf32, #tpu.memory_space<vmem>>, vector<1x32xf32>
    %171 = vector.broadcast %170 : vector<1x32xf32> to vector<34x32xf32>
    %172 = arith.addf %169, %171 : vector<34x32xf32>
    %173 = arith.addf %162, %172 : vector<34x32xf32>
    %c45 = arith.constant 45 : index
    %c0_78 = arith.constant 0 : index
    %174 = vector.load %arg4[%c45, %c0_78] : memref<86x128xf32, #tpu.memory_space<vmem>>, vector<1x32xf32>
    %c46 = arith.constant 46 : index
    %c0_79 = arith.constant 0 : index
    %175 = vector.load %arg4[%c46, %c0_79] : memref<86x128xf32, #tpu.memory_space<vmem>>, vector<1x32xf32>
    %cst_80 = arith.constant dense<0.000000e+00> : vector<34xf32>
    %176 = vector.multi_reduction <add>, %173, %cst_80 [1] : vector<34x32xf32> to vector<34xf32>
    %177 = vector.shape_cast %176 : vector<34xf32> to vector<34x1xf32>
    %cst_81 = arith.constant 3.200000e+01 : f32
    %178 = vector.broadcast %cst_81 : f32 to vector<34x1xf32>
    %179 = arith.divf %177, %178 : vector<34x1xf32>
    %180 = vector.broadcast %179 : vector<34x1xf32> to vector<34x32xf32>
    %181 = arith.subf %173, %180 : vector<34x32xf32>
    %182 = arith.mulf %181, %181 : vector<34x32xf32>
    %cst_82 = arith.constant dense<0.000000e+00> : vector<34xf32>
    %183 = vector.multi_reduction <add>, %182, %cst_82 [1] : vector<34x32xf32> to vector<34xf32>
    %184 = vector.shape_cast %183 : vector<34xf32> to vector<34x1xf32>
    %cst_83 = arith.constant 3.200000e+01 : f32
    %185 = vector.broadcast %cst_83 : f32 to vector<34x1xf32>
    %186 = arith.divf %184, %185 : vector<34x1xf32>
    %187 = vector.broadcast %179 : vector<34x1xf32> to vector<34x32xf32>
    %188 = arith.subf %173, %187 : vector<34x32xf32>
    %cst_84 = arith.constant 9.99999974E-6 : f32
    %189 = vector.broadcast %cst_84 : f32 to vector<34x1xf32>
    %190 = arith.addf %186, %189 : vector<34x1xf32>
    %191 = math.rsqrt %190 : vector<34x1xf32>
    %192 = vector.broadcast %191 : vector<34x1xf32> to vector<34x32xf32>
    %193 = arith.mulf %188, %192 : vector<34x32xf32>
    %194 = vector.broadcast %174 : vector<1x32xf32> to vector<34x32xf32>
    %195 = arith.mulf %193, %194 : vector<34x32xf32>
    %196 = vector.broadcast %175 : vector<1x32xf32> to vector<34x32xf32>
    %197 = arith.addf %195, %196 : vector<34x32xf32>
    %c1 = arith.constant 1 : index
    %c0_85 = arith.constant 0 : index
    %c0_86 = arith.constant 0 : index
    %198 = vector.load %arg1[%c1, %c0_85, %c0_86] : memref<2x32x128xf32, #tpu.memory_space<vmem>>, vector<1x32x128xf32>
    %199 = vector.shape_cast %198 : vector<1x32x128xf32> to vector<32x128xf32>
    %200 = vector.extract_strided_slice %199 {offsets = [0, 0], sizes = [32, 96], strides = [1, 1]} : vector<32x128xf32> to vector<32x96xf32>
    %201 = vector.extract_strided_slice %199 {offsets = [0, 96], sizes = [32, 32], strides = [1, 1]} : vector<32x128xf32> to vector<32x32xf32>
    %c1_87 = arith.constant 1 : index
    %c0_88 = arith.constant 0 : index
    %c0_89 = arith.constant 0 : index
    %202 = vector.load %arg2[%c1_87, %c0_88, %c0_89] : memref<2x96x64xf32, #tpu.memory_space<vmem>>, vector<1x96x64xf32>
    %203 = vector.shape_cast %202 : vector<1x96x64xf32> to vector<96x64xf32>
    %204 = vector.extract_strided_slice %203 {offsets = [0, 0], sizes = [32, 64], strides = [1, 1]} : vector<96x64xf32> to vector<32x64xf32>
    %205 = vector.extract_strided_slice %203 {offsets = [32, 0], sizes = [64, 32], strides = [1, 1]} : vector<96x64xf32> to vector<64x32xf32>
    %cst_90 = arith.constant dense<0.000000e+00> : vector<34x96xf32>
    %206 = tpu.matmul %197, %200, %cst_90 {dimension_numbers = #tpu.dot_dimension_numbers<[1], [0], [0], [1], [0, 0, 1, 1], [], []>} : vector<34x32xf32>, vector<32x96xf32>, vector<34x96xf32> -> vector<34x96xf32>
    %c0_91 = arith.constant 0 : index
    %c0_92 = arith.constant 0 : index
    %207 = vector.load %arg7[%c0_91, %c0_92] : memref<34x96xf32, #tpu.memory_space<vmem>>, vector<34x96xf32>
    tpu.vector_store %arg7[%c0_91, %c0_92], %206 {strides = array<i32>} : memref<34x96xf32, #tpu.memory_space<vmem>>, vector<34x96xf32>,
    %c0_93 = arith.constant 0 : index
    %c0_94 = arith.constant 0 : index
    %208 = vector.load %arg7[%c0_93, %c0_94] : memref<34x96xf32, #tpu.memory_space<vmem>>, vector<17x8xf32>
    %c0_95 = arith.constant 0 : index
    %c8_96 = arith.constant 8 : index
    %209 = vector.load %arg7[%c0_95, %c8_96] : memref<34x96xf32, #tpu.memory_space<vmem>>, vector<17x8xf32>
    %c0_97 = arith.constant 0 : index
    %c16_98 = arith.constant 16 : index
    %210 = vector.load %arg7[%c0_97, %c16_98] : memref<34x96xf32, #tpu.memory_space<vmem>>, vector<17x8xf32>
    %c0_99 = arith.constant 0 : index
    %c24_100 = arith.constant 24 : index
    %211 = vector.load %arg7[%c0_99, %c24_100] : memref<34x96xf32, #tpu.memory_space<vmem>>, vector<17x8xf32>
    %c17_101 = arith.constant 17 : index
    %c0_102 = arith.constant 0 : index
    %212 = vector.load %arg7[%c17_101, %c0_102] : memref<34x96xf32, #tpu.memory_space<vmem>>, vector<17x8xf32>
    %c17_103 = arith.constant 17 : index
    %c8_104 = arith.constant 8 : index
    %213 = vector.load %arg7[%c17_103, %c8_104] : memref<34x96xf32, #tpu.memory_space<vmem>>, vector<17x8xf32>
    %c17_105 = arith.constant 17 : index
    %c16_106 = arith.constant 16 : index
    %214 = vector.load %arg7[%c17_105, %c16_106] : memref<34x96xf32, #tpu.memory_space<vmem>>, vector<17x8xf32>
    %c17_107 = arith.constant 17 : index
    %c24_108 = arith.constant 24 : index
    %215 = vector.load %arg7[%c17_107, %c24_108] : memref<34x96xf32, #tpu.memory_space<vmem>>, vector<17x8xf32>
    %216 = vector.shape_cast %208 : vector<17x8xf32> to vector<1x17x8xf32>
    %217 = vector.shape_cast %209 : vector<17x8xf32> to vector<1x17x8xf32>
    %218 = vector.shape_cast %210 : vector<17x8xf32> to vector<1x17x8xf32>
    %219 = vector.shape_cast %211 : vector<17x8xf32> to vector<1x17x8xf32>
    %220 = vector.shape_cast %212 : vector<17x8xf32> to vector<1x17x8xf32>
    %221 = vector.shape_cast %213 : vector<17x8xf32> to vector<1x17x8xf32>
    %222 = vector.shape_cast %214 : vector<17x8xf32> to vector<1x17x8xf32>
    %223 = vector.shape_cast %215 : vector<17x8xf32> to vector<1x17x8xf32>
    %224 = tpu.concatenate %216, %217, %218, %219, %220, %221, %222, %223 in 0 : vector<1x17x8xf32>, vector<1x17x8xf32>, vector<1x17x8xf32>, vector<1x17x8xf32>, vector<1x17x8xf32>, vector<1x17x8xf32>, vector<1x17x8xf32>, vector<1x17x8xf32> -> vector<8x17x8xf32>
    %c0_109 = arith.constant 0 : index
    %c32_110 = arith.constant 32 : index
    %225 = vector.load %arg7[%c0_109, %c32_110] : memref<34x96xf32, #tpu.memory_space<vmem>>, vector<17x8xf32>
    %c0_111 = arith.constant 0 : index
    %c40_112 = arith.constant 40 : index
    %226 = vector.load %arg7[%c0_111, %c40_112] : memref<34x96xf32, #tpu.memory_space<vmem>>, vector<17x8xf32>
    %c0_113 = arith.constant 0 : index
    %c48_114 = arith.constant 48 : index
    %227 = vector.load %arg7[%c0_113, %c48_114] : memref<34x96xf32, #tpu.memory_space<vmem>>, vector<17x8xf32>
    %c0_115 = arith.constant 0 : index
    %c56_116 = arith.constant 56 : index
    %228 = vector.load %arg7[%c0_115, %c56_116] : memref<34x96xf32, #tpu.memory_space<vmem>>, vector<17x8xf32>
    %c17_117 = arith.constant 17 : index
    %c32_118 = arith.constant 32 : index
    %229 = vector.load %arg7[%c17_117, %c32_118] : memref<34x96xf32, #tpu.memory_space<vmem>>, vector<17x8xf32>
    %c17_119 = arith.constant 17 : index
    %c40_120 = arith.constant 40 : index
    %230 = vector.load %arg7[%c17_119, %c40_120] : memref<34x96xf32, #tpu.memory_space<vmem>>, vector<17x8xf32>
    %c17_121 = arith.constant 17 : index
    %c48_122 = arith.constant 48 : index
    %231 = vector.load %arg7[%c17_121, %c48_122] : memref<34x96xf32, #tpu.memory_space<vmem>>, vector<17x8xf32>
    %c17_123 = arith.constant 17 : index
    %c56_124 = arith.constant 56 : index
    %232 = vector.load %arg7[%c17_123, %c56_124] : memref<34x96xf32, #tpu.memory_space<vmem>>, vector<17x8xf32>
    %233 = vector.shape_cast %225 : vector<17x8xf32> to vector<1x17x8xf32>
    %234 = vector.shape_cast %226 : vector<17x8xf32> to vector<1x17x8xf32>
    %235 = vector.shape_cast %227 : vector<17x8xf32> to vector<1x17x8xf32>
    %236 = vector.shape_cast %228 : vector<17x8xf32> to vector<1x17x8xf32>
    %237 = vector.shape_cast %229 : vector<17x8xf32> to vector<1x17x8xf32>
    %238 = vector.shape_cast %230 : vector<17x8xf32> to vector<1x17x8xf32>
    %239 = vector.shape_cast %231 : vector<17x8xf32> to vector<1x17x8xf32>
    %240 = vector.shape_cast %232 : vector<17x8xf32> to vector<1x17x8xf32>
    %241 = tpu.concatenate %233, %234, %235, %236, %237, %238, %239, %240 in 0 : vector<1x17x8xf32>, vector<1x17x8xf32>, vector<1x17x8xf32>, vector<1x17x8xf32>, vector<1x17x8xf32>, vector<1x17x8xf32>, vector<1x17x8xf32>, vector<1x17x8xf32> -> vector<8x17x8xf32>
    %c0_125 = arith.constant 0 : index
    %c64_126 = arith.constant 64 : index
    %242 = vector.load %arg7[%c0_125, %c64_126] : memref<34x96xf32, #tpu.memory_space<vmem>>, vector<17x8xf32>
    %c0_127 = arith.constant 0 : index
    %c72_128 = arith.constant 72 : index
    %243 = vector.load %arg7[%c0_127, %c72_128] : memref<34x96xf32, #tpu.memory_space<vmem>>, vector<17x8xf32>
    %c0_129 = arith.constant 0 : index
    %c80_130 = arith.constant 80 : index
    %244 = vector.load %arg7[%c0_129, %c80_130] : memref<34x96xf32, #tpu.memory_space<vmem>>, vector<17x8xf32>
    %c0_131 = arith.constant 0 : index
    %c88_132 = arith.constant 88 : index
    %245 = vector.load %arg7[%c0_131, %c88_132] : memref<34x96xf32, #tpu.memory_space<vmem>>, vector<17x8xf32>
    %c17_133 = arith.constant 17 : index
    %c64_134 = arith.constant 64 : index
    %246 = vector.load %arg7[%c17_133, %c64_134] : memref<34x96xf32, #tpu.memory_space<vmem>>, vector<17x8xf32>
    %c17_135 = arith.constant 17 : index
    %c72_136 = arith.constant 72 : index
    %247 = vector.load %arg7[%c17_135, %c72_136] : memref<34x96xf32, #tpu.memory_space<vmem>>, vector<17x8xf32>
    %c17_137 = arith.constant 17 : index
    %c80_138 = arith.constant 80 : index
    %248 = vector.load %arg7[%c17_137, %c80_138] : memref<34x96xf32, #tpu.memory_space<vmem>>, vector<17x8xf32>
    %c17_139 = arith.constant 17 : index
    %c88_140 = arith.constant 88 : index
    %249 = vector.load %arg7[%c17_139, %c88_140] : memref<34x96xf32, #tpu.memory_space<vmem>>, vector<17x8xf32>
    %250 = vector.shape_cast %242 : vector<17x8xf32> to vector<1x17x8xf32>
    %251 = vector.shape_cast %243 : vector<17x8xf32> to vector<1x17x8xf32>
    %252 = vector.shape_cast %244 : vector<17x8xf32> to vector<1x17x8xf32>
    %253 = vector.shape_cast %245 : vector<17x8xf32> to vector<1x17x8xf32>
    %254 = vector.shape_cast %246 : vector<17x8xf32> to vector<1x17x8xf32>
    %255 = vector.shape_cast %247 : vector<17x8xf32> to vector<1x17x8xf32>
    %256 = vector.shape_cast %248 : vector<17x8xf32> to vector<1x17x8xf32>
    %257 = vector.shape_cast %249 : vector<17x8xf32> to vector<1x17x8xf32>
    %258 = tpu.concatenate %250, %251, %252, %253, %254, %255, %256, %257 in 0 : vector<1x17x8xf32>, vector<1x17x8xf32>, vector<1x17x8xf32>, vector<1x17x8xf32>, vector<1x17x8xf32>, vector<1x17x8xf32>, vector<1x17x8xf32>, vector<1x17x8xf32> -> vector<8x17x8xf32>
    %cst_141 = arith.constant dense<0.000000e+00> : vector<8x17x17xf32>
    %259 = tpu.matmul %224, %241, %cst_141 {dimension_numbers = #tpu.dot_dimension_numbers<[2], [2], [1], [1], [0, 0, 0, 1, 1, 1], [0], [0]>} : vector<8x17x8xf32>, vector<8x17x8xf32>, vector<8x17x17xf32> -> vector<8x17x17xf32>
    %cst_142 = arith.constant dense<0xFF800000> : vector<8x17xf32>
    %260 = vector.multi_reduction <maximumf>, %259, %cst_142 [2] : vector<8x17x17xf32> to vector<8x17xf32>
    %261 = vector.shape_cast %260 : vector<8x17xf32> to vector<8x17x1xf32>
    %262 = vector.broadcast %261 : vector<8x17x1xf32> to vector<8x17x17xf32>
    %263 = arith.subf %259, %262 : vector<8x17x17xf32>
    %264 = math.exp %263 : vector<8x17x17xf32>
    %cst_143 = arith.constant dense<0.000000e+00> : vector<8x17xf32>
    %265 = vector.multi_reduction <add>, %264, %cst_143 [2] : vector<8x17x17xf32> to vector<8x17xf32>
    %266 = vector.shape_cast %265 : vector<8x17xf32> to vector<8x17x1xf32>
    %267 = tpu.reciprocal %266 : vector<8x17x1xf32> -> vector<8x17x1xf32>
    %268 = vector.broadcast %267 : vector<8x17x1xf32> to vector<8x17x17xf32>
    %269 = arith.mulf %264, %268 : vector<8x17x17xf32>
    %c0_144 = arith.constant 0 : index
    %c0_145 = arith.constant 0 : index
    %c0_146 = arith.constant 0 : index
    %270 = vector.load %arg6[%c0_144, %c0_145, %c0_146] : memref<8x17x17xf32, #tpu.memory_space<vmem>>, vector<8x17x17xf32>
    tpu.vector_store %arg6[%c0_144, %c0_145, %c0_146], %269 {strides = array<i32>} : memref<8x17x17xf32, #tpu.memory_space<vmem>>, vector<8x17x17xf32>,
    %271 = vector.extract_strided_slice %269 {offsets = [0, 0, 0], sizes = [8, 1, 17], strides = [1, 1, 1]} : vector<8x17x17xf32> to vector<8x1x17xf32>
    %272 = vector.extract_strided_slice %197 {offsets = [0, 0], sizes = [1, 32], strides = [1, 1]} : vector<34x32xf32> to vector<1x32xf32>
    %273 = vector.extract_strided_slice %197 {offsets = [17, 0], sizes = [1, 32], strides = [1, 1]} : vector<34x32xf32> to vector<1x32xf32>
    %274 = tpu.concatenate %272, %273 in 0 : vector<1x32xf32>, vector<1x32xf32> -> vector<2x32xf32>
    %cst_147 = arith.constant dense<0.000000e+00> : vector<8x1x8xf32>
    %275 = tpu.matmul %271, %258, %cst_147 {dimension_numbers = #tpu.dot_dimension_numbers<[2], [1], [1], [2], [0, 0, 0, 1, 1, 2], [0], [0]>} : vector<8x1x17xf32>, vector<8x17x8xf32>, vector<8x1x8xf32> -> vector<8x1x8xf32>
    %276 = vector.extract_strided_slice %275 {offsets = [0, 0, 0], sizes = [1, 1, 8], strides = [1, 1, 1]} : vector<8x1x8xf32> to vector<1x1x8xf32>
    %277 = vector.shape_cast %276 : vector<1x1x8xf32> to vector<1x8xf32>
    %278 = vector.extract_strided_slice %275 {offsets = [1, 0, 0], sizes = [1, 1, 8], strides = [1, 1, 1]} : vector<8x1x8xf32> to vector<1x1x8xf32>
    %279 = vector.shape_cast %278 : vector<1x1x8xf32> to vector<1x8xf32>
    %280 = vector.extract_strided_slice %275 {offsets = [2, 0, 0], sizes = [1, 1, 8], strides = [1, 1, 1]} : vector<8x1x8xf32> to vector<1x1x8xf32>
    %281 = vector.shape_cast %280 : vector<1x1x8xf32> to vector<1x8xf32>
    %282 = vector.extract_strided_slice %275 {offsets = [3, 0, 0], sizes = [1, 1, 8], strides = [1, 1, 1]} : vector<8x1x8xf32> to vector<1x1x8xf32>
    %283 = vector.shape_cast %282 : vector<1x1x8xf32> to vector<1x8xf32>
    %284 = tpu.concatenate %277, %279, %281, %283 in 1 : vector<1x8xf32>, vector<1x8xf32>, vector<1x8xf32>, vector<1x8xf32> -> vector<1x32xf32>
    %285 = vector.extract_strided_slice %275 {offsets = [4, 0, 0], sizes = [1, 1, 8], strides = [1, 1, 1]} : vector<8x1x8xf32> to vector<1x1x8xf32>
    %286 = vector.shape_cast %285 : vector<1x1x8xf32> to vector<1x8xf32>
    %287 = vector.extract_strided_slice %275 {offsets = [5, 0, 0], sizes = [1, 1, 8], strides = [1, 1, 1]} : vector<8x1x8xf32> to vector<1x1x8xf32>
    %288 = vector.shape_cast %287 : vector<1x1x8xf32> to vector<1x8xf32>
    %289 = vector.extract_strided_slice %275 {offsets = [6, 0, 0], sizes = [1, 1, 8], strides = [1, 1, 1]} : vector<8x1x8xf32> to vector<1x1x8xf32>
    %290 = vector.shape_cast %289 : vector<1x1x8xf32> to vector<1x8xf32>
    %291 = vector.extract_strided_slice %275 {offsets = [7, 0, 0], sizes = [1, 1, 8], strides = [1, 1, 1]} : vector<8x1x8xf32> to vector<1x1x8xf32>
    %292 = vector.shape_cast %291 : vector<1x1x8xf32> to vector<1x8xf32>
    %293 = tpu.concatenate %286, %288, %290, %292 in 1 : vector<1x8xf32>, vector<1x8xf32>, vector<1x8xf32>, vector<1x8xf32> -> vector<1x32xf32>
    %294 = tpu.concatenate %284, %293 in 0 : vector<1x32xf32>, vector<1x32xf32> -> vector<2x32xf32>
    %cst_148 = arith.constant dense<0.000000e+00> : vector<2x32xf32>
    %295 = tpu.matmul %294, %201, %cst_148 {dimension_numbers = #tpu.dot_dimension_numbers<[1], [0], [0], [1], [0, 0, 1, 1], [], []>} : vector<2x32xf32>, vector<32x32xf32>, vector<2x32xf32> -> vector<2x32xf32>
    %c47 = arith.constant 47 : index
    %c0_149 = arith.constant 0 : index
    %296 = vector.load %arg4[%c47, %c0_149] : memref<86x128xf32, #tpu.memory_space<vmem>>, vector<1x32xf32>
    %297 = vector.broadcast %296 : vector<1x32xf32> to vector<2x32xf32>
    %298 = arith.addf %295, %297 : vector<2x32xf32>
    %299 = arith.addf %274, %298 : vector<2x32xf32>
    %c48_150 = arith.constant 48 : index
    %c0_151 = arith.constant 0 : index
    %300 = vector.load %arg4[%c48_150, %c0_151] : memref<86x128xf32, #tpu.memory_space<vmem>>, vector<1x32xf32>
    %c49 = arith.constant 49 : index
    %c0_152 = arith.constant 0 : index
    %301 = vector.load %arg4[%c49, %c0_152] : memref<86x128xf32, #tpu.memory_space<vmem>>, vector<1x32xf32>
    %cst_153 = arith.constant dense<0.000000e+00> : vector<2xf32>
    %302 = vector.multi_reduction <add>, %299, %cst_153 [1] : vector<2x32xf32> to vector<2xf32>
    %303 = vector.shape_cast %302 : vector<2xf32> to vector<2x1xf32>
    %cst_154 = arith.constant 3.200000e+01 : f32
    %304 = vector.broadcast %cst_154 : f32 to vector<2x1xf32>
    %305 = arith.divf %303, %304 : vector<2x1xf32>
    %306 = vector.broadcast %305 : vector<2x1xf32> to vector<2x32xf32>
    %307 = arith.subf %299, %306 : vector<2x32xf32>
    %308 = arith.mulf %307, %307 : vector<2x32xf32>
    %cst_155 = arith.constant dense<0.000000e+00> : vector<2xf32>
    %309 = vector.multi_reduction <add>, %308, %cst_155 [1] : vector<2x32xf32> to vector<2xf32>
    %310 = vector.shape_cast %309 : vector<2xf32> to vector<2x1xf32>
    %cst_156 = arith.constant 3.200000e+01 : f32
    %311 = vector.broadcast %cst_156 : f32 to vector<2x1xf32>
    %312 = arith.divf %310, %311 : vector<2x1xf32>
    %313 = vector.broadcast %305 : vector<2x1xf32> to vector<2x32xf32>
    %314 = arith.subf %299, %313 : vector<2x32xf32>
    %cst_157 = arith.constant 9.99999974E-6 : f32
    %315 = vector.broadcast %cst_157 : f32 to vector<2x1xf32>
    %316 = arith.addf %312, %315 : vector<2x1xf32>
    %317 = math.rsqrt %316 : vector<2x1xf32>
    %318 = vector.broadcast %317 : vector<2x1xf32> to vector<2x32xf32>
    %319 = arith.mulf %314, %318 : vector<2x32xf32>
    %320 = vector.broadcast %300 : vector<1x32xf32> to vector<2x32xf32>
    %321 = arith.mulf %319, %320 : vector<2x32xf32>
    %322 = vector.broadcast %301 : vector<1x32xf32> to vector<2x32xf32>
    %323 = arith.addf %321, %322 : vector<2x32xf32>
    %cst_158 = arith.constant dense<0.000000e+00> : vector<2x64xf32>
    %324 = tpu.matmul %323, %204, %cst_158 {dimension_numbers = #tpu.dot_dimension_numbers<[1], [0], [0], [1], [0, 0, 1, 1], [], []>} : vector<2x32xf32>, vector<32x64xf32>, vector<2x64xf32> -> vector<2x64xf32>
    %c50 = arith.constant 50 : index
    %c0_159 = arith.constant 0 : index
    %325 = vector.load %arg4[%c50, %c0_159] : memref<86x128xf32, #tpu.memory_space<vmem>>, vector<1x64xf32>
    %326 = vector.broadcast %325 : vector<1x64xf32> to vector<2x64xf32>
    %327 = arith.addf %324, %326 : vector<2x64xf32>
    %cst_160 = arith.constant 0.000000e+00 : f32
    %328 = vector.broadcast %cst_160 : f32 to vector<2x64xf32>
    %329 = arith.maximumf %327, %328 : vector<2x64xf32>
    %cst_161 = arith.constant dense<0.000000e+00> : vector<2x32xf32>
    %330 = tpu.matmul %329, %205, %cst_161 {dimension_numbers = #tpu.dot_dimension_numbers<[1], [0], [0], [1], [0, 0, 1, 1], [], []>} : vector<2x64xf32>, vector<64x32xf32>, vector<2x32xf32> -> vector<2x32xf32>
    %c51 = arith.constant 51 : index
    %c0_162 = arith.constant 0 : index
    %331 = vector.load %arg4[%c51, %c0_162] : memref<86x128xf32, #tpu.memory_space<vmem>>, vector<1x32xf32>
    %332 = vector.broadcast %331 : vector<1x32xf32> to vector<2x32xf32>
    %333 = arith.addf %330, %332 : vector<2x32xf32>
    %334 = arith.addf %323, %333 : vector<2x32xf32>
    %c52 = arith.constant 52 : index
    %c0_163 = arith.constant 0 : index
    %335 = vector.load %arg4[%c52, %c0_163] : memref<86x128xf32, #tpu.memory_space<vmem>>, vector<1x32xf32>
    %c53 = arith.constant 53 : index
    %c0_164 = arith.constant 0 : index
    %336 = vector.load %arg4[%c53, %c0_164] : memref<86x128xf32, #tpu.memory_space<vmem>>, vector<1x32xf32>
    %cst_165 = arith.constant dense<0.000000e+00> : vector<2xf32>
    %337 = vector.multi_reduction <add>, %334, %cst_165 [1] : vector<2x32xf32> to vector<2xf32>
    %338 = vector.shape_cast %337 : vector<2xf32> to vector<2x1xf32>
    %cst_166 = arith.constant 3.200000e+01 : f32
    %339 = vector.broadcast %cst_166 : f32 to vector<2x1xf32>
    %340 = arith.divf %338, %339 : vector<2x1xf32>
    %341 = vector.broadcast %340 : vector<2x1xf32> to vector<2x32xf32>
    %342 = arith.subf %334, %341 : vector<2x32xf32>
    %343 = arith.mulf %342, %342 : vector<2x32xf32>
    %cst_167 = arith.constant dense<0.000000e+00> : vector<2xf32>
    %344 = vector.multi_reduction <add>, %343, %cst_167 [1] : vector<2x32xf32> to vector<2xf32>
    %345 = vector.shape_cast %344 : vector<2xf32> to vector<2x1xf32>
    %cst_168 = arith.constant 3.200000e+01 : f32
    %346 = vector.broadcast %cst_168 : f32 to vector<2x1xf32>
    %347 = arith.divf %345, %346 : vector<2x1xf32>
    %348 = vector.broadcast %340 : vector<2x1xf32> to vector<2x32xf32>
    %349 = arith.subf %334, %348 : vector<2x32xf32>
    %cst_169 = arith.constant 9.99999974E-6 : f32
    %350 = vector.broadcast %cst_169 : f32 to vector<2x1xf32>
    %351 = arith.addf %347, %350 : vector<2x1xf32>
    %352 = math.rsqrt %351 : vector<2x1xf32>
    %353 = vector.broadcast %352 : vector<2x1xf32> to vector<2x32xf32>
    %354 = arith.mulf %349, %353 : vector<2x32xf32>
    %355 = vector.broadcast %335 : vector<1x32xf32> to vector<2x32xf32>
    %356 = arith.mulf %354, %355 : vector<2x32xf32>
    %357 = vector.broadcast %336 : vector<1x32xf32> to vector<2x32xf32>
    %358 = arith.addf %356, %357 : vector<2x32xf32>
    %c64_170 = arith.constant 64 : index
    %c0_171 = arith.constant 0 : index
    %359 = vector.load %arg3[%c64_170, %c0_171] : memref<96x32xf32, #tpu.memory_space<vmem>>, vector<32x32xf32>
    %c54 = arith.constant 54 : index
    %c0_172 = arith.constant 0 : index
    %360 = vector.load %arg4[%c54, %c0_172] : memref<86x128xf32, #tpu.memory_space<vmem>>, vector<32x128xf32>
    %cst_173 = arith.constant dense<0.000000e+00> : vector<2x32xf32>
    %361 = tpu.matmul %358, %359, %cst_173 {dimension_numbers = #tpu.dot_dimension_numbers<[1], [0], [0], [1], [0, 0, 1, 1], [], []>} : vector<2x32xf32>, vector<32x32xf32>, vector<2x32xf32> -> vector<2x32xf32>
    %c38 = arith.constant 38 : index
    %c0_174 = arith.constant 0 : index
    %362 = vector.load %arg4[%c38, %c0_174] : memref<86x128xf32, #tpu.memory_space<vmem>>, vector<1x32xf32>
    %363 = vector.broadcast %362 : vector<1x32xf32> to vector<2x32xf32>
    %364 = arith.addf %361, %363 : vector<2x32xf32>
    %cst_175 = arith.constant dense<0.000000e+00> : vector<2x128xf32>
    %365 = tpu.matmul %364, %360, %cst_175 {dimension_numbers = #tpu.dot_dimension_numbers<[1], [0], [0], [1], [0, 0, 1, 1], [], []>} : vector<2x32xf32>, vector<32x128xf32>, vector<2x128xf32> -> vector<2x128xf32>
    %c39 = arith.constant 39 : index
    %c0_176 = arith.constant 0 : index
    %366 = vector.load %arg4[%c39, %c0_176] : memref<86x128xf32, #tpu.memory_space<vmem>>, vector<1x128xf32>
    %367 = vector.broadcast %366 : vector<1x128xf32> to vector<2x128xf32>
    %368 = arith.addf %365, %367 : vector<2x128xf32>
    %c0_177 = arith.constant 0 : index
    %c0_178 = arith.constant 0 : index
    %369 = vector.load %arg5[%c0_177, %c0_178] : memref<2x128xf32, #tpu.memory_space<vmem>>, vector<2x128xf32>
    tpu.vector_store %arg5[%c0_177, %c0_178], %368 {strides = array<i32>} : memref<2x128xf32, #tpu.memory_space<vmem>>, vector<2x128xf32>,
    return
  }
}

</mosaic_0001>

<bundles_post_ra>
// kernel: vision_transformer_forward.1
= control target key start
LH: loop header
LB: loop body
LE: loop exit
PB: predicated region body
PF: predicated region fallthrough
CT: control target
= control target key end

     0   :  { %v6756_v1 = vmov 0.0   ;;  %vm6757_vm0 = vmmov 0   ;;  %s8870_s0 = inlined_call_operand.vmem [shape: f32[34,64], index: 0, kind: input, shape index: {}]   ;;  %s8871_s1 = inlined_call_operand.vmem [shape: f32[2,32,128], index: 1, kind: input, shape index: {}]   ;;  %s8872_s2 = inlined_call_operand.vmem [shape: f32[2,96,64], index: 2, kind: input, shape index: {}]   ;;  %s8873_s3 = inlined_call_operand.vmem [shape: f32[96,32], index: 3, kind: input, shape index: {}]   ;;  %s8874_s4 = inlined_call_operand.vmem [shape: f32[86,128], index: 4, kind: input, shape index: {}]   ;;  %s8875_s5 = inlined_call_operand.hbm [shape: f32[2,128], index: 5, kind: output, shape index: {0}]   ;;  %s8876_s6 = inlined_call_operand.vmem [shape: f32[8,17,17], index: 6, kind: output, shape index: {1}]  }
   0x1   :  { %v30_v0 = vld [vmem:[%s8873_s3 + $0x38] sm:$0xff]  ;;  %5842 = vmatprep.subr.mxu0 %v6756_v1  ;;  %v29_v2 = vld [vmem:[%s8873_s3 + $0x30] sm:$0xff]  ;;  %5858 = vmatprep.mubr.msk.f32.mxu0 %vm6757_vm0, %v6756_v1  ;;  %v28_v3 = vld [vmem:[%s8873_s3 + $0x28] sm:$0xff] }
   0x2   :  { %5843 = vmatpush3.msra.mxu0 %v30_v0  ;;  %5873 = vmatprep.subr.mxu1 %v6756_v1 }
   0x3   :  { %5844 = vmatprep.subr.mxu0 %v6756_v1  ;;  %5881 = vmatprep.mubr.msk.f32.mxu1 %vm6757_vm0, %v6756_v1 }
   0x4   :  { %5845 = vmatpush3.msra.mxu0 %v29_v2 }
   0x5   :  { %12 = vsyncpa [#allocation4], 0  ;;  %5846 = vmatprep.subr.mxu0 %v6756_v1  ;;  %v27_v4 = vld [vmem:[%s8873_s3 + $0x20] sm:$0xff]  ;;  %v26_v5 = vld [vmem:[%s8873_s3 + $0x18] sm:$0xff]  ;;  %vm41_vm1 = vcmask 523264   ;;  %v147_v14 = vlaneseq  ;;  %vm190_vm3 = vcmask 261120  }
   0x6   :  { %5847 = vmatpush3.msra.mxu0 %v28_v3  ;;  %v25_v6 = vld [vmem:[%s8873_s3 + $0x10] sm:$0xff]  ;;  %v24_v7 = vld [vmem:[%s8873_s3 + $0x8] sm:$0xff]  ;;  %v23_v8 = vld [vmem:[%s8873_s3] sm:$0xff]  ;;  %vm203_vm5 = vcmask 254976   ;;  %vm397_vm6 = vcmask 785408   ;;  %s6758_s24 = smov 120  }
   0x7   :  { %5848 = vmatprep.subr.mxu0 %v6756_v1  ;;  %v31_v9 = vld [vmem:[%s8870_s0] sm:$0xff]  ;;  %v32_v10 = vld [vmem:[%s8870_s0 + $0x8] sm:$0xff]  ;;  %v33_v11 = vld [vmem:[%s8870_s0 + $0x10] sm:$0xff]  ;;  %v148_v15 = vshrl.u32 %v147_v14, 7  ;;  %vm402_vm7 = vcmask 779264   ;;  %s6759_s25 = smov 112  }
   0x8   :  { %5849 = vmatpush3.msra.mxu0 %v27_v4  ;;  %v34_v12 = vld [vmem:[%s8870_s0 + $0x18] sm:$0xff]  ;;  %v35_v13 = vld [vmem:[%s8870_s0 + $0x20] sm:$0x3]  ;;  %v5360_v16 = vld [vmem:[%s8874_s4 + $0x22] ss:$0 sm:$0xff]  ;;  %s6760_s26 = smov 104  }
   0x9   :  { %5850 = vmatprep.subr.mxu0 %v6756_v1  ;;  %vm153_vm2 = vcmp.eq.s32.totalorder %v148_v15, 0  ;;  %v5366_v18 = vld [vmem:[%s8874_s4 + $0x23] ss:$0 sm:$0xff]  ;;  %v179_v25 = vld [vmem:[%s8874_s4 + $0x8] sm:$0xff]  ;;  %v150_v26 = vadd.s32 16, %v148_v15  ;;  %v180_v34 = vld [vmem:[%s8874_s4 + $0x10] sm:$0xff] }
   0xa   :  { %5851 = vmatpush3.msra.mxu0 %v26_v5  ;;  %v178_v20 = vld [vmem:[%s8874_s4] sm:$0xff]  ;;  %v181_v39 = vld [vmem:[%s8874_s4 + $0x18] sm:$0xff]  ;;  %v278_v14 = vld [vmem:[%s8871_s1 + $0x10] sm:$0xff]  ;;  %s6761_s27 = smov 96   ;;  %vm458_vm8 = vcmask 64512   ;;  %s6762_s0 = smov 64  }
   0xb   :  { %5852 = vmatprep.subr.mxu0 %v6756_v1  ;;  %vm160_vm4 = vcmp.eq.s32.totalorder %v150_v26, 17  ;;  %v182_v45 = vld [vmem:[%s8874_s4 + $0x20] sm:$0x3]  ;;  %v277_v15 = vld [vmem:[%s8871_s1 + $0x8] sm:$0xff]  ;;  %vm1520_vm9 = vcmask 1040384   ;;  %vm1237_vm10 = vcmask 138240  }
   0xc   :  { %5853 = vmatpush3.msra.mxu0 %v25_v6  ;;  %vm1244_vm11 = vcmask 131072   ;;  %s6763_s30 = smov 32   ;;  %s6764_s13 = smov 8   ;;  %vm2335_vm12 = vcmask 130048   ;;  %vm2339_vm13 = vcmask 195584  }
   0xd   :  { %5854 = vmatprep.subr.mxu0 %v6756_v1  ;;  %s6765_s14 = smov 16   ;;  %s6766_s15 = smov 24  }
   0xe   :  { %5855 = vmatpush3.msra.mxu0 %v24_v7 }
   0xf   :  { %5856 = vmatprep.subr.mxu0 %v6756_v1 }
  0x10   :  { %5857 = vmatpush3.msra.mxu0 %v23_v8 }
  0x11   :  { %5859 = vmatmul.mubr.msk.f32.vlgmr.msra.gmra.mxu0 %vm41_vm1, %v31_v9  ;;  %5911 = vmatprep.subr.mxu0 %v6756_v1 }
  0x12   :  { %5861 = vmatprep.mubr.msk.f32.mxu0 %vm6757_vm0, %v6756_v1 }
  0x15   :  { %5862 = vmatmul.mubr.msk.f32.gmra.mxu0 %vm41_vm1, %v32_v10 }
  0x16   :  { %5864 = vmatprep.mubr.msk.f32.mxu0 %vm6757_vm0, %v6756_v1 }
  0x19   :  { %5865 = vmatmul.mubr.msk.f32.gmra.mxu0 %vm41_vm1, %v33_v11 }
  0x1a   :  { %5867 = vmatprep.mubr.msk.f32.mxu0 %vm6757_vm0, %v6756_v1 }
  0x1d   :  { %5868 = vmatmul.mubr.msk.f32.gmra.mxu0 %vm41_vm1, %v34_v12 }
  0x1e   :  { %5870 = vmatprep.mubr.msk.f32.mxu0 %vm6757_vm0, %v6756_v1 }
  0x21   :  { %5871 = vmatmul.mubr.msk.f32.gmra.mxu0 %vm41_vm1, %v35_v13  ;;  %v279_v13 = vld [vmem:[%s8871_s1 + $0x18] sm:$0xff] }
  0x22   :  { %5917 = vmatprep.mubr.msk.f32.mxu0 %vm6757_vm0, %v6756_v1  ;;  %5874 = vmatpush3.msra.mxu1 %v279_v13 }
  0x23   :  { %5875 = vmatprep.subr.mxu1 %v6756_v1 }
  0x24   :  { %5876 = vmatpush3.msra.mxu1 %v278_v14 }
  0x25   :  { %5877 = vmatprep.subr.mxu1 %v6756_v1 }
  0x26   :  { %5878 = vmatpush3.msra.mxu1 %v277_v15 }
  0x27   :  { %5879 = vmatprep.subr.mxu1 %v6756_v1 }
  0xd1   :  { %v123_v17 = vpop.f32.mrf.mxu0 }
  0xd2   :  { %v124_v19 = vadd.f32 %v5360_v16, %v123_v17 }
  0xd3   :  { %v5860_v21 = vpop.f32.mrf.mxu0 }
  0xd4   :  { %v173_v22 = vsel %vm153_vm2, %v5366_v18, %v124_v19 }
  0xd5   :  { %v128_v23 = vpop.f32.mrf.mxu0  ;;  %v183_v24 = vadd.f32 %v178_v20, %v173_v22 }
  0xd6   :  { %v129_v27 = vadd.f32 %v5360_v16, %v128_v23 }
  0xd7   :  { %v5863_v28 = vpop.f32.mrf.mxu0  ;;  %v191_v29 = vsel %vm190_vm3, %v183_v24, 0.0 }
  0xd8   :  { %192 = vadd.xlane.f32.xlu0 %v191_v29  ;;  %v184_v30 = vadd.f32 %v179_v25, %v129_v27 }
  0xd9   :  { %v133_v31 = vpop.f32.mrf.mxu0 }
  0xda   :  { %v134_v32 = vadd.f32 %v5360_v16, %v133_v31  ;;  %v194_v33 = vsel %vm190_vm3, %v184_v30, 0.0 }
  0xdb   :  { %v5866_v35 = vpop.f32.mrf.mxu0 }
  0xdc   :  { %195 = vadd.xlane.f32.xlu0 %v194_v33  ;;  %v175_v36 = vsel %vm160_vm4, %v5366_v18, %v134_v32  ;;  %v5367_v33 = vld [vmem:[%s8874_s4 + $0x24] ss:$0 sm:$0xff]  ;;  %v5368_v35 = vld [vmem:[%s8874_s4 + $0x25] ss:$0 sm:$0xff] }
  0xdd   :  { %v138_v37 = vpop.f32.mrf.mxu0  ;;  %v185_v38 = vadd.f32 %v180_v34, %v175_v36 }
  0xde   :  { %v139_v40 = vadd.f32 %v5360_v16, %v138_v37 }
  0xdf   :  { %v5869_v41 = vpop.f32.mrf.mxu0  ;;  %v197_v42 = vsel %vm190_vm3, %v185_v38, 0.0 }
  0xe0   :  { %198 = vadd.xlane.f32.xlu1 %v197_v42  ;;  %v186_v43 = vadd.f32 %v181_v39, %v139_v40 }
  0xe1   :  { %v143_v44 = vpop.f32.mrf.mxu0 }
  0xe2   :  { %v144_v46 = vadd.f32 %v5360_v16, %v143_v44  ;;  %v200_v47 = vsel %vm190_vm3, %v186_v43, 0.0  ;;  %v276_v16 = vld [vmem:[%s8871_s1] sm:$0xff] }
  0xe3   :  { %v5872_v48 = vpop.f32.mrf.mxu0  ;;  %5880 = vmatpush3.msra.mxu1 %v276_v16 }
  0xe4   :  { %201 = vadd.xlane.f32.xlu1 %v200_v47  ;;  %v187_v49 = vadd.f32 %v182_v45, %v144_v46  ;;  %5896 = vmatprep.subr.mxu1 %v6756_v1 }
  0xe6   :  { %v204_v50 = vsel %vm203_vm5, %v187_v49, 0.0 }
  0xe7   :  { %205 = vadd.xlane.f32.xlu0 %v204_v50 }
 0x161   :  { %v193_v51 = vpop.xlane.xlu0 %192 }
 0x162   :  { %v208_v52 = vmul.f32 0.03125, %v193_v51 }
 0x164   :  { %v213_v53 = vsub.f32 %v183_v24, %v208_v52 }
 0x165   :  { %v196_v54 = vpop.xlane.xlu0 %195 }
 0x166   :  { %v209_v55 = vmul.f32 0.03125, %v196_v54  ;;  %v218_v56 = vmul.f32 %v213_v53, %v213_v53 }
 0x168   :  { %v6897_v57 = vsub.f32 %v184_v30, %v209_v55  ;;  %v223_v58 = vsel %vm190_vm3, %v218_v56, 0.0 }
 0x169   :  { %v199_v59 = vpop.xlane.xlu1 %198  ;;  %224 = vadd.xlane.f32.xlu1 %v223_v58 }
 0x16a   :  { %v210_v60 = vmul.f32 0.03125, %v199_v59  ;;  %v219_v61 = vmul.f32 %v6897_v57, %v6897_v57 }
 0x16c   :  { %v6902_v62 = vsub.f32 %v185_v38, %v210_v60  ;;  %v226_v63 = vsel %vm190_vm3, %v219_v61, 0.0 }
 0x16d   :  { %v202_v0 = vpop.xlane.xlu1 %201  ;;  %227 = vadd.xlane.f32.xlu0 %v226_v63 }
 0x16e   :  { %v211_v2 = vmul.f32 0.03125, %v202_v0  ;;  %v220_v3 = vmul.f32 %v6902_v62, %v6902_v62 }
 0x170   :  { %v6907_v4 = vsub.f32 %v186_v43, %v211_v2  ;;  %v206_v5 = vpop.xlane.xlu0 %205  ;;  %v229_v6 = vsel %vm190_vm3, %v220_v3, 0.0 }
 0x171   :  { %v212_v7 = vmul.f32 0.03125, %v206_v5  ;;  %230 = vadd.xlane.f32.xlu1 %v229_v6 }
 0x172   :  { %v221_v8 = vmul.f32 %v6907_v4, %v6907_v4 }
 0x173   :  { %v217_v9 = vsub.f32 %v187_v49, %v212_v7 }
 0x174   :  { %v232_v10 = vsel %vm190_vm3, %v221_v8, 0.0 }
 0x175   :  { %233 = vadd.xlane.f32.xlu0 %v232_v10  ;;  %v222_v11 = vmul.f32 %v217_v9, %v217_v9 }
 0x177   :  { %v235_v12 = vsel %vm203_vm5, %v222_v11, 0.0 }
 0x178   :  { %236 = vadd.xlane.f32.xlu1 %v235_v12 }
 0x1f2   :  { %v225_v17 = vpop.xlane.xlu1 %224 }
 0x1f3   :  { %v238_v18 = vmul.f32 0.03125, %v225_v17 }
 0x1f5   :  { %v243_v19 = vadd.f32 1e-05, %v238_v18 }
 0x1f6   :  { %v228_v20 = vpop.xlane.xlu0 %227 }
 0x1f7   :  { %6503 = vrsqrt.f32 %v243_v19  ;;  %v239_v21 = vmul.f32 0.03125, %v228_v20 }
 0x1f9   :  { %v244_v22 = vadd.f32 1e-05, %v239_v21 }
 0x1fa   :  { %v231_v23 = vpop.xlane.xlu1 %230 }
 0x1fb   :  { %6505 = vrsqrt.f32 %v244_v22  ;;  %v240_v24 = vmul.f32 0.03125, %v231_v23 }
 0x1fd   :  { %v245_v25 = vadd.f32 1e-05, %v240_v24 }
 0x1fe   :  { %v234_v26 = vpop.xlane.xlu0 %233 }
 0x1ff   :  { %6507 = vrsqrt.f32 %v245_v25  ;;  %v241_v27 = vmul.f32 0.03125, %v234_v26 }
 0x201   :  { %v246_v28 = vadd.f32 1e-05, %v241_v27  ;;  %v237_v29 = vpop.xlane.xlu1 %236 }
 0x202   :  { %v242_v30 = vmul.f32 0.03125, %v237_v29 }
 0x203   :  { %6509 = vrsqrt.f32 %v246_v28 }
 0x204   :  { %v6504_v31 = vpop.eup %6503  ;;  %v247_v32 = vadd.f32 1e-05, %v242_v30 }
 0x205   :  { %v253_v34 = vmul.f32 %v6504_v31, %v213_v53 }
 0x206   :  { %6511 = vrsqrt.f32 %v247_v32 }
 0x207   :  { %v262_v36 = vmul.f32 %v5367_v33, %v253_v34 }
 0x208   :  { %v6506_v37 = vpop.eup %6505 }
 0x209   :  { %v6936_v38 = vadd.f32 %v5368_v35, %v262_v36  ;;  %v254_v39 = vmul.f32 %v6506_v37, %v6897_v57 }
 0x20b   :  { %5882 = vmatmul.mubr.msk.f32.vlgmr.msra.gmra.mxu1 %vm190_vm3, %v6936_v38  ;;  %v263_v40 = vmul.f32 %v5367_v33, %v254_v39 }
 0x20c   :  { %v6508_v41 = vpop.eup %6507  ;;  %5884 = vmatprep.mubr.msk.f32.mxu1 %vm6757_vm0, %v6756_v1 }
 0x20d   :  { %v6943_v42 = vadd.f32 %v5368_v35, %v263_v40  ;;  %v255_v43 = vmul.f32 %v6508_v41, %v6902_v62 }
 0x20f   :  { %5885 = vmatmul.mubr.msk.f32.gmra.mxu1 %vm190_vm3, %v6943_v42  ;;  %v264_v44 = vmul.f32 %v5367_v33, %v255_v43 }
 0x210   :  { %v6510_v45 = vpop.eup %6509  ;;  %5887 = vmatprep.mubr.msk.f32.mxu1 %vm6757_vm0, %v6756_v1 }
 0x211   :  { %v6950_v46 = vadd.f32 %v5368_v35, %v264_v44  ;;  %v256_v47 = vmul.f32 %v6510_v45, %v6907_v4 }
 0x213   :  { %v6512_v48 = vpop.eup %6511  ;;  %5888 = vmatmul.mubr.msk.f32.gmra.mxu1 %vm190_vm3, %v6950_v46  ;;  %v265_v49 = vmul.f32 %v5367_v33, %v256_v47 }
 0x214   :  { %5890 = vmatprep.mubr.msk.f32.mxu1 %vm6757_vm0, %v6756_v1  ;;  %v257_v50 = vmul.f32 %v6512_v48, %v217_v9 }
 0x215   :  { %v6957_v51 = vadd.f32 %v5368_v35, %v265_v49 }
 0x216   :  { %v266_v52 = vmul.f32 %v5367_v33, %v257_v50 }
 0x217   :  { %5891 = vmatmul.mubr.msk.f32.gmra.mxu1 %vm190_vm3, %v6957_v51 }
 0x218   :  { %5893 = vmatprep.mubr.msk.f32.mxu1 %vm6757_vm0, %v6756_v1  ;;  %v6963_v53 = vadd.f32 %v5368_v35, %v266_v52 }
 0x21b   :  { %5894 = vmatmul.mubr.msk.f32.gmra.mxu1 %vm190_vm3, %v6963_v53 }
 0x21c   :  { %5902 = vmatprep.mubr.msk.f32.mxu1 %vm6757_vm0, %v6756_v1 }
 0x2cb   :  { %v373_v54 = vpop.f32.mrf.mxu1 }
 0x2cc   :  { %398 = vst.msk [vmem:[#allocation2] sm:$0xff] %vm397_vm6, %v373_v54 }
 0x2cd   :  { %v5883_v55 = vpop.f32.mrf.mxu1 }
 0x2cf   :  { %v378_v56 = vpop.f32.mrf.mxu1 }
 0x2d0   :  { %399 = vst.msk [vmem:[#allocation2 + $0x8] sm:$0xff] %vm397_vm6, %v378_v56 }
 0x2d1   :  { %v5886_v57 = vpop.f32.mrf.mxu1 }
 0x2d3   :  { %v383_v58 = vpop.f32.mrf.mxu1  ;;  %v6977_v0 = vld [vmem:[#allocation2] sm:$0xff] }
 0x2d4   :  { %400 = vst.msk [vmem:[#allocation2 + $0x10] sm:$0xff] %vm397_vm6, %v383_v58 }
 0x2d5   :  { %v5889_v59 = vpop.f32.mrf.mxu1 }
 0x2d7   :  { %v388_v60 = vpop.f32.mrf.mxu1  ;;  %v6972_v61 = vld [vmem:[#allocation2 + $0x8] sm:$0xff] }
 0x2d8   :  { %401 = vst.msk [vmem:[#allocation2 + $0x18] sm:$0xff] %vm397_vm6, %v388_v60  ;;  %415 = vrot.lane.b32.xlu1 %v6972_v61, %s6758_s24 }
 0x2d9   :  { %v5892_v62 = vpop.f32.mrf.mxu1 }
 0x2db   :  { %v393_v63 = vpop.f32.mrf.mxu1  ;;  %v6979_v2 = vld [vmem:[#allocation2 + $0x10] sm:$0x1] }
 0x2dc   :  { %403 = vst.msk [vmem:[#allocation2 + $0x20] sm:$0x3] %vm402_vm7, %v393_v63  ;;  %413 = vrot.lane.b32.xlu1 %v6977_v0, %s6758_s24  ;;  %417 = vrot.lane.b32.xlu0 %v6979_v2, %s6758_s24 }
 0x2dd   :  { %v5895_v3 = vpop.f32.mrf.mxu1 }
 0x2df   :  { %v7006_v6 = vld [vmem:[#allocation2 + $0x11] sm:$0xff] }
 0x2e0   :  { %423 = vrot.lane.b32.xlu1 %v6979_v2, %s6759_s25  ;;  %429 = vrot.lane.b32.xlu0 %v6979_v2, %s6760_s26 }
 0x2e3   :  { %v6998_v4 = vld [vmem:[#allocation2 + $0x21] sm:$0x1]  ;;  %v7000_v5 = vld [vmem:[#allocation2 + $0x19] sm:$0xff] }
 0x2e4   :  { %421 = vrot.lane.b32.xlu1 %v6972_v61, %s6759_s25  ;;  %427 = vrot.lane.b32.xlu0 %v6972_v61, %s6760_s26 }
 0x2e8   :  { %419 = vrot.lane.b32.xlu1 %v6977_v0, %s6759_s25  ;;  %425 = vrot.lane.b32.xlu0 %v6977_v0, %s6760_s26 }
 0x2ec   :  { %438 = vrot.lane.b32.xlu1 %v6998_v4, %s6758_s24  ;;  %436 = vrot.lane.b32.xlu0 %v7000_v5, %s6758_s24 }
 0x2f0   :  { %434 = vrot.lane.b32.xlu1 %v7006_v6, %s6758_s24  ;;  %444 = vrot.lane.b32.xlu0 %v6998_v4, %s6759_s25 }
 0x2f4   :  { %450 = vrot.lane.b32.xlu1 %v6998_v4, %s6760_s26  ;;  %442 = vrot.lane.b32.xlu0 %v7000_v5, %s6759_s25 }
 0x2f8   :  { %448 = vrot.lane.b32.xlu1 %v7000_v5, %s6760_s26  ;;  %440 = vrot.lane.b32.xlu0 %v7006_v6, %s6759_s25 }
 0x2fc   :  { %446 = vrot.lane.b32.xlu1 %v7006_v6, %s6760_s26  ;;  %456 = vrot.lane.b32.xlu0 %v6979_v2, %s6761_s27 }
 0x300   :  { %454 = vrot.lane.b32.xlu0 %v6972_v61, %s6761_s27 }
 0x304   :  { %452 = vrot.lane.b32.xlu0 %v6977_v0, %s6761_s27 }
 0x34a   :  { %v7028_v7 = vpop.permute.xlu1 %415 }
 0x34e   :  { %v7030_v8 = vpop.permute.xlu1 %413  ;;  %v7032_v9 = vpop.permute.xlu0 %417 }
 0x34f   :  { %555 = vrot.lane.b32.xlu1 %v7032_v9, %s6761_s27 }
 0x352   :  { %v7036_v10 = vpop.permute.xlu1 %423  ;;  %v7038_v11 = vpop.permute.xlu0 %429 }
 0x353   :  { %653 = vrot.lane.b32.xlu0 %v7036_v10, %s6761_s27  ;;  %553 = vrot.lane.b32.xlu1 %v7028_v7, %s6761_s27 }
 0x356   :  { %v7044_v12 = vpop.permute.xlu1 %421  ;;  %v7046_v13 = vpop.permute.xlu0 %427 }
 0x357   :  { %651 = vrot.lane.b32.xlu0 %v7044_v12, %s6761_s27  ;;  %551 = vrot.lane.b32.xlu1 %v7030_v8, %s6761_s27 }
 0x35a   :  { %v7052_v14 = vpop.permute.xlu1 %419  ;;  %v7054_v15 = vpop.permute.xlu0 %425 }
 0x35b   :  { %649 = vrot.lane.b32.xlu0 %v7052_v14, %s6761_s27  ;;  %751 = vrot.lane.b32.xlu1 %v7038_v11, %s6761_s27 }
 0x35e   :  { %v7060_v16 = vpop.permute.xlu0 %436  ;;  %v7066_v17 = vpop.permute.xlu1 %438 }
 0x35f   :  { %849 = vrot.lane.b32.xlu0 %v6998_v4, %s6761_s27  ;;  %749 = vrot.lane.b32.xlu1 %v7046_v13, %s6761_s27 }
 0x362   :  { %v7068_v18 = vpop.permute.xlu0 %444  ;;  %v7080_v20 = vpop.permute.xlu1 %434 }
 0x363   :  { %847 = vrot.lane.b32.xlu0 %v7000_v5, %s6761_s27  ;;  %747 = vrot.lane.b32.xlu1 %v7054_v15, %s6761_s27 }
 0x366   :  { %v7074_v19 = vpop.permute.xlu0 %442  ;;  %v7088_v22 = vpop.permute.xlu1 %450 }
 0x367   :  { %845 = vrot.lane.b32.xlu0 %v7006_v6, %s6761_s27  ;;  %947 = vrot.lane.b32.xlu1 %v7066_v17, %s6761_s27 }
 0x36a   :  { %v7082_v21 = vpop.permute.xlu0 %440  ;;  %v7100_v25 = vpop.permute.xlu1 %448 }
 0x36b   :  { %945 = vrot.lane.b32.xlu1 %v7060_v16, %s6761_s27  ;;  %1045 = vrot.lane.b32.xlu0 %v7068_v18, %s6761_s27 }
 0x36e   :  { %v457_v23 = vpop.permute.xlu0 %456  ;;  %v7110_v27 = vpop.permute.xlu1 %446 }
 0x36f   :  { %943 = vrot.lane.b32.xlu1 %v7080_v20, %s6761_s27  ;;  %1043 = vrot.lane.b32.xlu0 %v7074_v19, %s6761_s27 }
 0x370   :  { %5897 = vmatpush3.xpose.msk.msra.mxu1 %vm458_vm8, %v457_v23 }
 0x371   :  { %5898 = vmatprep.subr.mxu1 %v6756_v1 }
 0x372   :  { %v455_v24 = vpop.permute.xlu0 %454 }
 0x373   :  { %1143 = vrot.lane.b32.xlu1 %v7088_v22, %s6761_s27  ;;  %1041 = vrot.lane.b32.xlu0 %v7082_v21, %s6761_s27 }
 0x374   :  { %5899 = vmatpush3.xpose.msk.msra.mxu1 %vm458_vm8, %v455_v24 }
 0x375   :  { %5900 = vmatprep.subr.mxu1 %v6756_v1 }
 0x376   :  { %v453_v26 = vpop.permute.xlu0 %452 }
 0x377   :  { %1141 = vrot.lane.b32.xlu1 %v7100_v25, %s6761_s27  ;;  %1507 = vrot.lane.b32.xlu0 %v6979_v2, %s6762_s0 }
 0x378   :  { %5901 = vmatpush3.xpose.msk.msra.mxu1 %vm458_vm8, %v453_v26 }
 0x379   :  { %5926 = vmatprep.subr.mxu1 %v6756_v1 }
 0x37b   :  { %5903 = vmatmul.mubr.msk.f32.vlgmr.msra.gmra.mxu1 %vm458_vm8, %v6977_v0  ;;  %1139 = vrot.lane.b32.xlu1 %v7110_v27, %s6761_s27 }
 0x37c   :  { %1505 = vrot.lane.b32.xlu0 %v6972_v61, %s6762_s0  ;;  %5905 = vmatprep.mubr.msk.f32.mxu1 %vm6757_vm0, %v6756_v1 }
 0x37f   :  { %5906 = vmatmul.mubr.msk.f32.gmra.mxu1 %vm458_vm8, %v6972_v61  ;;  %1607 = vrot.lane.b32.xlu1 %v7032_v9, %s6762_s0 }
 0x380   :  { %1605 = vrot.lane.b32.xlu0 %v7028_v7, %s6762_s0  ;;  %5908 = vmatprep.mubr.msk.f32.mxu1 %vm6757_vm0, %v6756_v1 }
 0x383   :  { %5909 = vmatmul.mubr.msk.f32.gmra.mxu1 %vm458_vm8, %v6979_v2  ;;  %1603 = vrot.lane.b32.xlu1 %v7030_v8, %s6762_s0 }
 0x384   :  { %1503 = vrot.lane.b32.xlu0 %v6977_v0, %s6762_s0  ;;  %5932 = vmatprep.mubr.msk.f32.mxu1 %vm6757_vm0, %v6756_v1 }
 0x387   :  { %1706 = vrot.lane.b32.xlu1 %v7036_v10, %s6762_s0 }
 0x388   :  { %1803 = vrot.lane.b32.xlu0 %v7046_v13, %s6762_s0 }
 0x38b   :  { %1805 = vrot.lane.b32.xlu1 %v7038_v11, %s6762_s0 }
 0x38f   :  { %1704 = vrot.lane.b32.xlu1 %v7044_v12, %s6762_s0 }
 0x393   :  { %1702 = vrot.lane.b32.xlu1 %v7052_v14, %s6762_s0 }
 0x397   :  { %1801 = vrot.lane.b32.xlu1 %v7054_v15, %s6762_s0 }
 0x39b   :  { %1904 = vrot.lane.b32.xlu1 %v6998_v4, %s6762_s0 }
 0x39f   :  { %1902 = vrot.lane.b32.xlu1 %v7000_v5, %s6762_s0 }
 0x3a3   :  { %2003 = vrot.lane.b32.xlu1 %v7066_v17, %s6762_s0 }
 0x3a7   :  { %2001 = vrot.lane.b32.xlu1 %v7060_v16, %s6762_s0 }
 0x3c1   :  { %v556_v28 = vpop.permute.xlu1 %555 }
 0x3c2   :  { %5912 = vmatpush3.xpose.msk.msra.mxu0 %vm458_vm8, %v556_v28 }
 0x3c3   :  { %5913 = vmatprep.subr.mxu0 %v6756_v1 }
 0x3c5   :  { %v554_v29 = vpop.permute.xlu1 %553  ;;  %v654_v30 = vpop.permute.xlu0 %653 }
 0x3c6   :  { %5914 = vmatpush3.xpose.msk.msra.mxu0 %vm458_vm8, %v554_v29  ;;  %5927 = vmatpush3.xpose.msk.msra.mxu1 %vm458_vm8, %v654_v30 }
 0x3c7   :  { %5915 = vmatprep.subr.mxu0 %v6756_v1  ;;  %5928 = vmatprep.subr.mxu1 %v6756_v1 }
 0x3c9   :  { %v552_v31 = vpop.permute.xlu1 %551  ;;  %v652_v32 = vpop.permute.xlu0 %651 }
 0x3ca   :  { %5916 = vmatpush3.xpose.msk.msra.mxu0 %vm458_vm8, %v552_v31  ;;  %5929 = vmatpush3.xpose.msk.msra.mxu1 %vm458_vm8, %v652_v32 }
 0x3cb   :  { %5941 = vmatprep.subr.mxu0 %v6756_v1  ;;  %5930 = vmatprep.subr.mxu1 %v6756_v1 }
 0x3cd   :  { %5918 = vmatmul.mubr.msk.f32.vlgmr.msra.gmra.mxu0 %vm458_vm8, %v7030_v8  ;;  %v752_v33 = vpop.permute.xlu1 %751  ;;  %v650_v34 = vpop.permute.xlu0 %649 }
 0x3ce   :  { %5931 = vmatpush3.xpose.msk.msra.mxu1 %vm458_vm8, %v650_v34  ;;  %5942 = vmatpush3.xpose.msk.msra.mxu0 %vm458_vm8, %v752_v33 }
 0x3cf   :  { %5920 = vmatprep.mubr.msk.f32.mxu0 %vm6757_vm0, %v6756_v1  ;;  %5943 = vmatprep.subr.mxu0 %v6756_v1 }
 0x3d0   :  { %5956 = vmatprep.subr.mxu1 %v6756_v1 }
 0x3d1   :  { %5921 = vmatmul.mubr.msk.f32.gmra.mxu0 %vm458_vm8, %v7028_v7  ;;  %v750_v35 = vpop.permute.xlu1 %749  ;;  %5933 = vmatmul.mubr.msk.f32.vlgmr.msra.gmra.mxu1 %vm458_vm8, %v7052_v14  ;;  %v850_v36 = vpop.permute.xlu0 %849 }
 0x3d2   :  { %5944 = vmatpush3.xpose.msk.msra.mxu0 %vm458_vm8, %v750_v35  ;;  %5957 = vmatpush3.xpose.msk.msra.mxu1 %vm458_vm8, %v850_v36 }
 0x3d3   :  { %5923 = vmatprep.mubr.msk.f32.mxu0 %vm6757_vm0, %v6756_v1  ;;  %5935 = vmatprep.mubr.msk.f32.mxu1 %vm6757_vm0, %v6756_v1 }
 0x3d4   :  { %5945 = vmatprep.subr.mxu0 %v6756_v1  ;;  %5958 = vmatprep.subr.mxu1 %v6756_v1 }
 0x3d5   :  { %5924 = vmatmul.mubr.msk.f32.gmra.mxu0 %vm458_vm8, %v7032_v9  ;;  %v748_v37 = vpop.permute.xlu1 %747  ;;  %5936 = vmatmul.mubr.msk.f32.gmra.mxu1 %vm458_vm8, %v7044_v12  ;;  %v848_v39 = vpop.permute.xlu0 %847 }
 0x3d6   :  { %5946 = vmatpush3.xpose.msk.msra.mxu0 %vm458_vm8, %v748_v37  ;;  %5959 = vmatpush3.xpose.msk.msra.mxu1 %vm458_vm8, %v848_v39 }
 0x3d7   :  { %5938 = vmatprep.mubr.msk.f32.mxu1 %vm6757_vm0, %v6756_v1  ;;  %5947 = vmatprep.mubr.msk.f32.mxu0 %vm6757_vm0, %v6756_v1 }
 0x3d8   :  { %5971 = vmatprep.subr.mxu0 %v6756_v1  ;;  %5960 = vmatprep.subr.mxu1 %v6756_v1 }
 0x3d9   :  { %5948 = vmatmul.mubr.msk.f32.vlgmr.msra.gmra.mxu0 %vm458_vm8, %v7054_v15  ;;  %v948_v40 = vpop.permute.xlu1 %947  ;;  %5939 = vmatmul.mubr.msk.f32.gmra.mxu1 %vm458_vm8, %v7036_v10  ;;  %v846_v41 = vpop.permute.xlu0 %845 }
 0x3da   :  { %5961 = vmatpush3.xpose.msk.msra.mxu1 %vm458_vm8, %v846_v41  ;;  %5972 = vmatpush3.xpose.msk.msra.mxu0 %vm458_vm8, %v948_v40 }
 0x3db   :  { %5950 = vmatprep.mubr.msk.f32.mxu0 %vm6757_vm0, %v6756_v1  ;;  %5962 = vmatprep.mubr.msk.f32.mxu1 %vm6757_vm0, %v6756_v1 }
 0x3dc   :  { %5973 = vmatprep.subr.mxu0 %v6756_v1  ;;  %5986 = vmatprep.subr.mxu1 %v6756_v1 }
 0x3dd   :  { %5951 = vmatmul.mubr.msk.f32.gmra.mxu0 %vm458_vm8, %v7046_v13  ;;  %v946_v43 = vpop.permute.xlu1 %945  ;;  %5963 = vmatmul.mubr.msk.f32.vlgmr.msra.gmra.mxu1 %vm458_vm8, %v7006_v6  ;;  %v1046_v44 = vpop.permute.xlu0 %1045 }
 0x3de   :  { %5974 = vmatpush3.xpose.msk.msra.mxu0 %vm458_vm8, %v946_v43  ;;  %5987 = vmatpush3.xpose.msk.msra.mxu1 %vm458_vm8, %v1046_v44 }
 0x3df   :  { %5953 = vmatprep.mubr.msk.f32.mxu0 %vm6757_vm0, %v6756_v1  ;;  %5965 = vmatprep.mubr.msk.f32.mxu1 %vm6757_vm0, %v6756_v1 }
 0x3e0   :  { %5975 = vmatprep.subr.mxu0 %v6756_v1  ;;  %5988 = vmatprep.subr.mxu1 %v6756_v1 }
 0x3e1   :  { %5954 = vmatmul.mubr.msk.f32.gmra.mxu0 %vm458_vm8, %v7038_v11  ;;  %v944_v45 = vpop.permute.xlu1 %943  ;;  %5966 = vmatmul.mubr.msk.f32.gmra.mxu1 %vm458_vm8, %v7000_v5  ;;  %v1044_v47 = vpop.permute.xlu0 %1043 }
 0x3e2   :  { %5976 = vmatpush3.xpose.msk.msra.mxu0 %vm458_vm8, %v944_v45  ;;  %5989 = vmatpush3.xpose.msk.msra.mxu1 %vm458_vm8, %v1044_v47 }
 0x3e3   :  { %5968 = vmatprep.mubr.msk.f32.mxu1 %vm6757_vm0, %v6756_v1  ;;  %5977 = vmatprep.mubr.msk.f32.mxu0 %vm6757_vm0, %v6756_v1 }
 0x3e4   :  { %6001 = vmatprep.subr.mxu0 %v6756_v1  ;;  %5990 = vmatprep.subr.mxu1 %v6756_v1 }
 0x3e5   :  { %5978 = vmatmul.mubr.msk.f32.vlgmr.msra.gmra.mxu0 %vm458_vm8, %v7080_v20  ;;  %v1144_v48 = vpop.permute.xlu1 %1143  ;;  %5969 = vmatmul.mubr.msk.f32.gmra.mxu1 %vm458_vm8, %v6998_v4  ;;  %v1042_v49 = vpop.permute.xlu0 %1041 }
 0x3e6   :  { %5991 = vmatpush3.xpose.msk.msra.mxu1 %vm458_vm8, %v1042_v49  ;;  %6002 = vmatpush3.xpose.msk.msra.mxu0 %vm458_vm8, %v1144_v48 }
 0x3e7   :  { %5980 = vmatprep.mubr.msk.f32.mxu0 %vm6757_vm0, %v6756_v1  ;;  %5992 = vmatprep.mubr.msk.f32.mxu1 %vm6757_vm0, %v6756_v1 }
 0x3e8   :  { %6003 = vmatprep.subr.mxu0 %v6756_v1  ;;  %6016 = vmatprep.subr.mxu1 %v6756_v1 }
 0x3e9   :  { %5981 = vmatmul.mubr.msk.f32.gmra.mxu0 %vm458_vm8, %v7060_v16  ;;  %v1142_v50 = vpop.permute.xlu1 %1141  ;;  %5993 = vmatmul.mubr.msk.f32.vlgmr.msra.gmra.mxu1 %vm458_vm8, %v7082_v21  ;;  %v1508_v52 = vpop.permute.xlu0 %1507 }
 0x3ea   :  { %6004 = vmatpush3.xpose.msk.msra.mxu0 %vm458_vm8, %v1142_v50  ;;  %6017 = vmatpush3.msk.msra.mxu1 %vm1520_vm9, %v1508_v52 }
 0x3eb   :  { %5983 = vmatprep.mubr.msk.f32.mxu0 %vm6757_vm0, %v6756_v1  ;;  %5995 = vmatprep.mubr.msk.f32.mxu1 %vm6757_vm0, %v6756_v1 }
 0x3ec   :  { %6005 = vmatprep.subr.mxu0 %v6756_v1  ;;  %6018 = vmatprep.subr.mxu1 %v6756_v1 }
 0x3ed   :  { %5984 = vmatmul.mubr.msk.f32.gmra.mxu0 %vm458_vm8, %v7066_v17  ;;  %v1140_v54 = vpop.permute.xlu1 %1139  ;;  %5996 = vmatmul.mubr.msk.f32.gmra.mxu1 %vm458_vm8, %v7074_v19 }
 0x3ee   :  { %v1506_v55 = vpop.permute.xlu0 %1505  ;;  %6006 = vmatpush3.xpose.msk.msra.mxu0 %vm458_vm8, %v1140_v54  ;;  %5998 = vmatprep.mubr.msk.f32.mxu1 %vm6757_vm0, %v6756_v1 }
 0x3ef   :  { %6019 = vmatpush3.msra.mxu1 %v1506_v55  ;;  %6007 = vmatprep.mubr.msk.f32.mxu0 %vm6757_vm0, %v6756_v1 }
 0x3f0   :  { %6031 = vmatprep.subr.mxu0 %v6756_v1  ;;  %6020 = vmatprep.subr.mxu1 %v6756_v1 }
 0x3f1   :  { %6008 = vmatmul.mubr.msk.f32.vlgmr.msra.gmra.mxu0 %vm458_vm8, %v7110_v27  ;;  %v1608_v56 = vpop.permute.xlu1 %1607  ;;  %5999 = vmatmul.mubr.msk.f32.gmra.mxu1 %vm458_vm8, %v7068_v18 }
 0x3f2   :  { %v1606_v57 = vpop.permute.xlu0 %1605  ;;  %6032 = vmatpush3.msk.msra.mxu0 %vm1520_vm9, %v1608_v56  ;;  %6010 = vmatprep.mubr.msk.f32.mxu0 %vm6757_vm0, %v6756_v1 }
 0x3f3   :  { %6033 = vmatprep.subr.mxu0 %v6756_v1  ;;  %6022 = vmatprep.mubr.msk.f32.mxu1 %vm6757_vm0, %v6756_v1 }
 0x3f4   :  { %6034 = vmatpush3.msra.mxu0 %v1606_v57 }
 0x3f5   :  { %6011 = vmatmul.mubr.msk.f32.gmra.mxu0 %vm458_vm8, %v7100_v25  ;;  %v1604_v58 = vpop.permute.xlu1 %1603  ;;  %6035 = vmatprep.subr.mxu0 %v6756_v1 }
 0x3f6   :  { %v1504_v59 = vpop.permute.xlu0 %1503  ;;  %6036 = vmatpush3.msra.mxu0 %v1604_v58  ;;  %6013 = vmatprep.mubr.msk.f32.mxu0 %vm6757_vm0, %v6756_v1 }
 0x3f7   :  { %6021 = vmatpush3.msra.mxu1 %v1504_v59  ;;  %6061 = vmatprep.subr.mxu0 %v6756_v1 }
 0x3f8   :  { %6046 = vmatprep.subr.mxu1 %v6756_v1 }
 0x3f9   :  { %6014 = vmatmul.mubr.msk.f32.gmra.mxu0 %vm458_vm8, %v7088_v22 }
 0x3fa   :  { %6037 = vmatprep.mubr.msk.f32.mxu0 %vm6757_vm0, %v6756_v1 }
 0x43b   :  { %v7290_v60 = vpop.f32.mrf.mxu1 }
 0x43c   :  { %v1238_v61 = vsel %vm1237_vm10, %v7290_v60, -inf }
 0x43d   :  { %1239 = vmax.xlane.f32.xlu0 %v1238_v61  ;;  %v5904_v62 = vpop.f32.mrf.mxu1 }
 0x43f   :  { %v7294_v63 = vpop.f32.mrf.mxu1 }
 0x440   :  { %v1241_v0 = vsel %vm1237_vm10, %v7294_v63, -inf }
 0x441   :  { %1242 = vmax.xlane.f32.xlu0 %v1241_v0  ;;  %v5907_v2 = vpop.f32.mrf.mxu1 }
 0x443   :  { %v7298_v3 = vpop.f32.mrf.mxu1 }
 0x444   :  { %v1245_v4 = vsel %vm1244_vm11, %v7298_v3, -inf }
 0x445   :  { %1246 = vmax.xlane.f32.xlu0 %v1245_v4  ;;  %v5910_v5 = vpop.f32.mrf.mxu1 }
 0x48d   :  { %v7302_v7 = vpop.f32.mrf.mxu0 }
 0x48e   :  { %v1248_v8 = vsel %vm1237_vm10, %v7302_v7, -inf }
 0x48f   :  { %1249 = vmax.xlane.f32.xlu1 %v1248_v8  ;;  %v5919_v9 = vpop.f32.mrf.mxu0 }
 0x491   :  { %v7306_v10 = vpop.f32.mrf.mxu0  ;;  %v7308_v11 = vpop.f32.mrf.mxu1 }
 0x492   :  { %v1257_v12 = vsel %vm1237_vm10, %v7308_v11, -inf  ;;  %v1251_v17 = vsel %vm1237_vm10, %v7306_v10, -inf }
 0x493   :  { %1258 = vmax.xlane.f32.xlu0 %v1257_v12  ;;  %v5922_v13 = vpop.f32.mrf.mxu0  ;;  %v5934_v14 = vpop.f32.mrf.mxu1 }
 0x495   :  { %v7312_v15 = vpop.f32.mrf.mxu0  ;;  %v7314_v16 = vpop.f32.mrf.mxu1 }
 0x496   :  { %v1254_v23 = vsel %vm1244_vm11, %v7312_v15, -inf  ;;  %v1260_v30 = vsel %vm1237_vm10, %v7314_v16, -inf }
 0x497   :  { %v5937_v24 = vpop.f32.mrf.mxu1  ;;  %1252 = vmax.xlane.f32.xlu0 %v1251_v17  ;;  %1255 = vmax.xlane.f32.xlu1 %v1254_v23  ;;  %v5925_v26 = vpop.f32.mrf.mxu0 }
 0x499   :  { %v7320_v28 = vpop.f32.mrf.mxu1  ;;  %v7322_v29 = vpop.f32.mrf.mxu0 }
 0x49a   :  { %v1266_v31 = vsel %vm1237_vm10, %v7322_v29, -inf  ;;  %v1263_v36 = vsel %vm1244_vm11, %v7320_v28, -inf }
 0x49b   :  { %v5940_v32 = vpop.f32.mrf.mxu1  ;;  %1261 = vmax.xlane.f32.xlu0 %v1260_v30  ;;  %1267 = vmax.xlane.f32.xlu1 %v1266_v31  ;;  %v5949_v33 = vpop.f32.mrf.mxu0 }
 0x49c   :  { %v7376_v30 = vpop.permute.xlu0 %1803 }
 0x49d   :  { %v7328_v34 = vpop.f32.mrf.mxu0  ;;  %v7330_v35 = vpop.f32.mrf.mxu1 }
 0x49e   :  { %v1269_v37 = vsel %vm1237_vm10, %v7328_v34, -inf  ;;  %v1275_v44 = vsel %vm1237_vm10, %v7330_v35, -inf }
 0x49f   :  { %v5964_v39 = vpop.f32.mrf.mxu1  ;;  %1264 = vmax.xlane.f32.xlu0 %v1263_v36  ;;  %1270 = vmax.xlane.f32.xlu1 %v1269_v37  ;;  %v5952_v40 = vpop.f32.mrf.mxu0 }
 0x4a1   :  { %v7336_v41 = vpop.f32.mrf.mxu0  ;;  %v7338_v43 = vpop.f32.mrf.mxu1 }
 0x4a2   :  { %v1272_v45 = vsel %vm1244_vm11, %v7336_v41, -inf  ;;  %v1278_v52 = vsel %vm1237_vm10, %v7338_v43, -inf }
 0x4a3   :  { %v5967_v47 = vpop.f32.mrf.mxu1  ;;  %1276 = vmax.xlane.f32.xlu0 %v1275_v44  ;;  %1273 = vmax.xlane.f32.xlu1 %v1272_v45  ;;  %v5955_v48 = vpop.f32.mrf.mxu0 }
 0x4a4   :  { %v7389_v47 = vpop.permute.xlu1 %1706 }
 0x4a5   :  { %v7344_v49 = vpop.f32.mrf.mxu1  ;;  %v7346_v50 = vpop.f32.mrf.mxu0 }
 0x4a6   :  { %v1284_v54 = vsel %vm1237_vm10, %v7346_v50, -inf  ;;  %v1281_v59 = vsel %vm1244_vm11, %v7344_v49, -inf }
 0x4a7   :  { %v5970_v55 = vpop.f32.mrf.mxu1  ;;  %1279 = vmax.xlane.f32.xlu0 %v1278_v52  ;;  %1285 = vmax.xlane.f32.xlu1 %v1284_v54  ;;  %v5979_v56 = vpop.f32.mrf.mxu0 }
 0x4a8   :  { %v7397_v54 = vpop.permute.xlu1 %1805 }
 0x4a9   :  { %v7352_v57 = vpop.f32.mrf.mxu0  ;;  %v7354_v58 = vpop.f32.mrf.mxu1 }
 0x4aa   :  { %v1293_v4 = vsel %vm1237_vm10, %v7354_v58, -inf  ;;  %v1287_v44 = vsel %vm1237_vm10, %v7352_v57, -inf }
 0x4ab   :  { %v5994_v61 = vpop.f32.mrf.mxu1  ;;  %1282 = vmax.xlane.f32.xlu0 %v1281_v59  ;;  %v5982_v62 = vpop.f32.mrf.mxu0 }
 0x4ad   :  { %v7358_v0 = vpop.f32.mrf.mxu0  ;;  %v7360_v2 = vpop.f32.mrf.mxu1 }
 0x4ae   :  { %v1290_v45 = vsel %vm1244_vm11, %v7358_v0, -inf }
 0x4af   :  { %v5997_v5 = vpop.f32.mrf.mxu1  ;;  %1294 = vmax.xlane.f32.xlu0 %v1293_v4  ;;  %v5985_v8 = vpop.f32.mrf.mxu0 }
 0x4b0   :  { %v7409_v4 = vpop.permute.xlu1 %1704 }
 0x4b1   :  { %v7364_v9 = vpop.f32.mrf.mxu1  ;;  %v7366_v12 = vpop.f32.mrf.mxu0 }
 0x4b3   :  { %v6000_v13 = vpop.f32.mrf.mxu1  ;;  %v6009_v14 = vpop.f32.mrf.mxu0 }
 0x4b4   :  { %v7413_v8 = vpop.permute.xlu1 %1702 }
 0x4b5   :  { %v7368_v17 = vpop.f32.mrf.mxu0 }
 0x4b6   :  { %v1305_v48 = vsel %vm1237_vm10, %v7368_v17, -inf }
 0x4b7   :  { %v6012_v23 = vpop.f32.mrf.mxu0 }
 0x4b8   :  { %1999 = vrot.lane.b32.xlu1 %v7080_v20, %s6762_s0  ;;  %v7415_v13 = vpop.permute.xlu1 %1801 }
 0x4b9   :  { %v7372_v24 = vpop.f32.mrf.mxu0 }
 0x4ba   :  { %v1308_v56 = vsel %vm1244_vm11, %v7372_v24, -inf }
 0x4bb   :  { %v6015_v26 = vpop.f32.mrf.mxu0 }
 0x4bc   :  { %v7417_v14 = vpop.permute.xlu1 %1904 }
 0x4c0   :  { %v7419_v23 = vpop.permute.xlu1 %1902 }
 0x4c4   :  { %v7421_v26 = vpop.permute.xlu1 %2003 }
 0x4c5   :  { %1900 = vrot.lane.b32.xlu0 %v7006_v6, %s6762_s0 }
 0x4c6   :  { %v1240_v31 = vpop.xlane.xlu0 %1239 }
 0x4c7   :  { %v1311_v33 = vsub.f32 %v7290_v60, %v1240_v31  ;;  %v1296_v60 = vsel %vm1237_vm10, %v7360_v2, -inf }
 0x4c8   :  { %v7423_v31 = vpop.permute.xlu1 %2001 }
 0x4c9   :  { %v1335_v36 = vmul.f32 1.442695, %v1311_v33 }
 0x4ca   :  { %v1243_v32 = vpop.xlane.xlu0 %1242 }
 0x4cb   :  { %v1312_v37 = vsub.f32 %v7294_v63, %v1243_v32  ;;  %6513 = vpow2.f32 %v1335_v36  ;;  %v1302_v63 = vsel %vm1237_vm10, %v7366_v12, -inf }
 0x4cd   :  { %v1337_v40 = vmul.f32 1.442695, %v1312_v37 }
 0x4ce   :  { %v1247_v39 = vpop.xlane.xlu0 %1246 }
 0x4cf   :  { %v1313_v20 = vsub.f32 %v7298_v3, %v1247_v39  ;;  %6515 = vpow2.f32 %v1337_v40  ;;  %v1299_v3 = vsel %vm1244_vm11, %v7364_v9, -inf }
 0x4d1   :  { %v1339_v6 = vmul.f32 1.442695, %v1313_v20 }
 0x4d3   :  { %6517 = vpow2.f32 %v1339_v6 }
 0x4d8   :  { %v7395_v52 = vpop.eup %6513 }
 0x4d9   :  { %v1383_v55 = vsel %vm1237_vm10, %v7395_v52, 0.0 }
 0x4dc   :  { %1288 = vmax.xlane.f32.xlu1 %v1287_v44  ;;  %v7403_v59 = vpop.eup %6515 }
 0x4dd   :  { %v1386_v61 = vsel %vm1237_vm10, %v7403_v59, 0.0 }
 0x4e0   :  { %1291 = vmax.xlane.f32.xlu1 %v1290_v45  ;;  %v7407_v62 = vpop.eup %6517 }
 0x4e1   :  { %v1389_v5 = vsel %vm1244_vm11, %v7407_v62, 0.0 }
 0x4e4   :  { %1297 = vmax.xlane.f32.xlu0 %v1296_v60  ;;  %1303 = vmax.xlane.f32.xlu1 %v1302_v63 }
 0x4e8   :  { %1300 = vmax.xlane.f32.xlu0 %v1299_v3  ;;  %1306 = vmax.xlane.f32.xlu1 %v1305_v48 }
 0x4ec   :  { %1384 = vadd.xlane.f32.xlu0 %v1383_v55  ;;  %1309 = vmax.xlane.f32.xlu1 %v1308_v56 }
 0x4f0   :  { %1387 = vadd.xlane.f32.xlu0 %v1386_v61 }
 0x4f4   :  { %1390 = vadd.xlane.f32.xlu0 %v1389_v5 }
 0x518   :  { %v1250_v32 = vpop.xlane.xlu1 %1249 }
 0x519   :  { %v1314_v33 = vsub.f32 %v7302_v7, %v1250_v32 }
 0x51b   :  { %v1341_v36 = vmul.f32 1.442695, %v1314_v33 }
 0x51c   :  { %v1259_v37 = vpop.xlane.xlu0 %1258 }
 0x51d   :  { %6519 = vpow2.f32 %v1341_v36  ;;  %v1317_v39 = vsub.f32 %v7308_v11, %v1259_v37 }
 0x51f   :  { %v1347_v40 = vmul.f32 1.442695, %v1317_v39 }
 0x520   :  { %v1253_v20 = vpop.xlane.xlu0 %1252  ;;  %v1256_v44 = vpop.xlane.xlu1 %1255 }
 0x521   :  { %6521 = vpow2.f32 %v1347_v40  ;;  %v1315_v6 = vsub.f32 %v7306_v10, %v1253_v20  ;;  %v1316_v45 = vsub.f32 %v7312_v15, %v1256_v44 }
 0x523   :  { %v1343_v60 = vmul.f32 1.442695, %v1315_v6  ;;  %v1345_v63 = vmul.f32 1.442695, %v1316_v45 }
 0x524   :  { %v1262_v3 = vpop.xlane.xlu0 %1261  ;;  %v1268_v48 = vpop.xlane.xlu1 %1267 }
 0x525   :  { %6523 = vpow2.f32 %v1343_v60  ;;  %v1318_v7 = vsub.f32 %v7314_v16, %v1262_v3  ;;  %v1320_v55 = vsub.f32 %v7322_v29, %v1268_v48 }
 0x526   :  { %6525 = vpow2.f32 %v1345_v63 }
 0x527   :  { %v1349_v56 = vmul.f32 1.442695, %v1318_v7  ;;  %v1353_v11 = vmul.f32 1.442695, %v1320_v55 }
 0x528   :  { %v1265_v61 = vpop.xlane.xlu0 %1264  ;;  %v1271_v5 = vpop.xlane.xlu1 %1270 }
 0x529   :  { %6527 = vpow2.f32 %v1349_v56  ;;  %v1319_v32 = vsub.f32 %v7320_v28, %v1265_v61  ;;  %v1321_v33 = vsub.f32 %v7328_v34, %v1271_v5 }
 0x52a   :  { %v7432_v10 = vpop.eup %6519  ;;  %6529 = vpow2.f32 %v1353_v11 }
 0x52b   :  { %v1351_v15 = vmul.f32 1.442695, %v1319_v32  ;;  %v1392_v36 = vsel %vm1237_vm10, %v7432_v10, 0.0  ;;  %v1355_v28 = vmul.f32 1.442695, %v1321_v33 }
 0x52c   :  { %v1277_v16 = vpop.xlane.xlu0 %1276  ;;  %v1274_v37 = vpop.xlane.xlu1 %1273  ;;  %1393 = vadd.xlane.f32.xlu1 %v1392_v36 }
 0x52d   :  { %6531 = vpow2.f32 %v1351_v15  ;;  %v1323_v29 = vsub.f32 %v7330_v35, %v1277_v16  ;;  %v1322_v40 = vsub.f32 %v7336_v41, %v1274_v37 }
 0x52e   :  { %v7438_v39 = vpop.eup %6521 }
 0x52f   :  { %v1359_v20 = vmul.f32 1.442695, %v1323_v29  ;;  %v1401_v44 = vsel %vm1237_vm10, %v7438_v39, 0.0  ;;  %v1357_v63 = vmul.f32 1.442695, %v1322_v40 }
 0x530   :  { %1402 = vadd.xlane.f32.xlu0 %v1401_v44  ;;  %v1280_v34 = vpop.xlane.xlu0 %1279  ;;  %v1286_v6 = vpop.xlane.xlu1 %1285 }
 0x531   :  { %6533 = vpow2.f32 %v1359_v20  ;;  %v1324_v45 = vsub.f32 %v7338_v43, %v1280_v34  ;;  %v1326_v3 = vsub.f32 %v7346_v50, %v1286_v6 }
 0x532   :  { %v7444_v60 = vpop.eup %6523  ;;  %6535 = vpow2.f32 %v1355_v28 }
 0x533   :  { %v1361_v35 = vmul.f32 1.442695, %v1324_v45  ;;  %v1395_v41 = vsel %vm1237_vm10, %v7444_v60, 0.0  ;;  %v7449_v48 = vpop.eup %6525  ;;  %v1365_v43 = vmul.f32 1.442695, %v1326_v3 }
 0x534   :  { %v1283_v7 = vpop.xlane.xlu0 %1282  ;;  %1396 = vadd.xlane.f32.xlu1 %v1395_v41  ;;  %v1398_v50 = vsel %vm1244_vm11, %v7449_v48, 0.0 }
 0x535   :  { %6537 = vpow2.f32 %v1361_v35  ;;  %v1325_v55 = vsub.f32 %v7344_v49, %v1283_v7  ;;  %v7495_v7 = vpop.permute.xlu1 %1999 }
 0x536   :  { %v7452_v56 = vpop.eup %6527  ;;  %6539 = vpow2.f32 %v1357_v63 }
 0x537   :  { %v1363_v11 = vmul.f32 1.442695, %v1325_v55  ;;  %v1404_v61 = vsel %vm1237_vm10, %v7452_v56, 0.0  ;;  %v7458_v5 = vpop.eup %6529 }
 0x538   :  { %1405 = vadd.xlane.f32.xlu0 %v1404_v61  ;;  %v1295_v32 = vpop.xlane.xlu0 %1294  ;;  %1399 = vadd.xlane.f32.xlu1 %v1398_v50  ;;  %v1410_v16 = vsel %vm1237_vm10, %v7458_v5, 0.0 }
 0x539   :  { %6541 = vpow2.f32 %v1363_v11  ;;  %v1329_v15 = vsub.f32 %v7354_v58, %v1295_v32 }
 0x53a   :  { %v7461_v49 = vpop.eup %6531  ;;  %6543 = vpow2.f32 %v1365_v43 }
 0x53b   :  { %v1371_v33 = vmul.f32 1.442695, %v1329_v15  ;;  %v1407_v36 = vsel %vm1244_vm11, %v7461_v49, 0.0 }
 0x53c   :  { %1408 = vadd.xlane.f32.xlu0 %v1407_v36  ;;  %1411 = vadd.xlane.f32.xlu1 %v1410_v16  ;;  %v7498_v61 = vpop.permute.xlu0 %1900 }
 0x53d   :  { %6545 = vpow2.f32 %v1371_v33 }
 0x53e   :  { %v7467_v37 = vpop.eup %6533 }
 0x53f   :  { %v1419_v29 = vsel %vm1237_vm10, %v7467_v37, 0.0  ;;  %v7471_v40 = vpop.eup %6535 }
 0x540   :  { %1420 = vadd.xlane.f32.xlu1 %v1419_v29  ;;  %v1413_v44 = vsel %vm1237_vm10, %v7471_v40, 0.0 }
 0x542   :  { %v7473_v58 = vpop.eup %6537 }
 0x543   :  { %v7475_v28 = vpop.eup %6539  ;;  %v1422_v20 = vsel %vm1237_vm10, %v7473_v58, 0.0 }
 0x544   :  { %1423 = vadd.xlane.f32.xlu0 %v1422_v20  ;;  %1414 = vadd.xlane.f32.xlu1 %v1413_v44  ;;  %v1416_v45 = vsel %vm1244_vm11, %v7475_v28, 0.0 }
 0x546   :  { %v7481_v34 = vpop.eup %6541 }
 0x547   :  { %v1425_v6 = vsel %vm1244_vm11, %v7481_v34, 0.0  ;;  %v7487_v63 = vpop.eup %6543 }
 0x548   :  { %1426 = vadd.xlane.f32.xlu0 %v1425_v6  ;;  %1417 = vadd.xlane.f32.xlu1 %v1416_v45  ;;  %v1428_v41 = vsel %vm1237_vm10, %v7487_v63, 0.0 }
 0x54a   :  { %v7489_v35 = vpop.eup %6545 }
 0x54b   :  { %v1437_v3 = vsel %vm1237_vm10, %v7489_v35, 0.0 }
 0x54c   :  { %1438 = vadd.xlane.f32.xlu0 %v1437_v3  ;;  %1429 = vadd.xlane.f32.xlu1 %v1428_v41 }
 0x565   :  { %v1289_v55 = vpop.xlane.xlu1 %1288 }
 0x566   :  { %v1327_v43 = vsub.f32 %v7352_v57, %v1289_v55 }
 0x568   :  { %v1367_v11 = vmul.f32 1.442695, %v1327_v43 }
 0x569   :  { %v1292_v50 = vpop.xlane.xlu1 %1291 }
 0x56a   :  { %6547 = vpow2.f32 %v1367_v11  ;;  %v1328_v32 = vsub.f32 %v7358_v0, %v1292_v50 }
 0x56c   :  { %v1369_v16 = vmul.f32 1.442695, %v1328_v32 }
 0x56d   :  { %v1298_v15 = vpop.xlane.xlu0 %1297  ;;  %v1304_v36 = vpop.xlane.xlu1 %1303 }
 0x56e   :  { %v1330_v33 = vsub.f32 %v7360_v2, %v1298_v15  ;;  %v1332_v20 = vsub.f32 %v7366_v12, %v1304_v36 }
 0x570   :  { %v1373_v29 = vmul.f32 1.442695, %v1330_v33  ;;  %v1377_v45 = vmul.f32 1.442695, %v1332_v20 }
 0x571   :  { %v1301_v44 = vpop.xlane.xlu0 %1300 }
 0x572   :  { %6549 = vpow2.f32 %v1373_v29  ;;  %v1331_v6 = vsub.f32 %v7364_v9, %v1301_v44 }
 0x573   :  { %6551 = vpow2.f32 %v1369_v16 }
 0x574   :  { %v1375_v57 = vmul.f32 1.442695, %v1331_v6 }
 0x575   :  { %v1385_v3 = vpop.xlane.xlu0 %1384 }
 0x576   :  { %6553 = vpow2.f32 %v1375_v57 }
 0x577   :  { %v7504_v41 = vpop.eup %6547  ;;  %6555 = vrcp.f32 %v1385_v3 }
 0x578   :  { %v1431_v0 = vsel %vm1237_vm10, %v7504_v41, 0.0  ;;  %6557 = vpow2.f32 %v1377_v45 }
 0x579   :  { %v1388_v2 = vpop.xlane.xlu0 %1387  ;;  %1432 = vadd.xlane.f32.xlu0 %v1431_v0 }
 0x57a   :  { %6559 = vrcp.f32 %v1388_v2 }
 0x57d   :  { %v1391_v12 = vpop.xlane.xlu0 %1390 }
 0x57e   :  { %6561 = vrcp.f32 %v1391_v12 }
 0x57f   :  { %v7508_v55 = vpop.eup %6549 }
 0x580   :  { %v1440_v9 = vsel %vm1237_vm10, %v7508_v55, 0.0  ;;  %v7512_v43 = vpop.eup %6551 }
 0x581   :  { %1441 = vadd.xlane.f32.xlu0 %v1440_v9  ;;  %v1434_v50 = vsel %vm1244_vm11, %v7512_v43, 0.0 }
 0x583   :  { %v7514_v11 = vpop.eup %6553 }
 0x584   :  { %v1443_v32 = vsel %vm1244_vm11, %v7514_v11, 0.0  ;;  %v6556_v15 = vpop.eup %6555 }
 0x585   :  { %1435 = vadd.xlane.f32.xlu0 %v1434_v50  ;;  %1444 = vadd.xlane.f32.xlu1 %v1443_v32  ;;  %v7520_v33 = vpop.eup %6557  ;;  %v1479_v36 = vmul.f32 %v6556_v15, %v7395_v52  ;;  %v1307_v52 = vpop.xlane.xlu1 %1306 }
 0x586   :  { %v1446_v29 = vsel %vm1237_vm10, %v7520_v33, 0.0 }
 0x587   :  { %v6560_v16 = vpop.eup %6559  ;;  %6023 = vmatmul.mubr.msk.f32.vlgmr.msra.gmra.mxu1 %vm1237_vm10, %v1479_v36 }
 0x588   :  { %6047 = vmatpush3.msk.msra.mxu1 %vm1520_vm9, %v7389_v47  ;;  %6025 = vmatprep.mubr.msk.f32.mxu1 %vm6757_vm0, %v6756_v1  ;;  %v1480_v20 = vmul.f32 %v6560_v16, %v7403_v59  ;;  %v1333_v59 = vsub.f32 %v7368_v17, %v1307_v52 }
 0x589   :  { %6048 = vmatprep.subr.mxu1 %v6756_v1  ;;  %1447 = vadd.xlane.f32.xlu0 %v1446_v29 }
 0x58a   :  { %6049 = vmatpush3.msra.mxu1 %v7409_v4  ;;  %v1379_v4 = vmul.f32 1.442695, %v1333_v59  ;;  %v6732_v59 = vld [vmem:[%s8871_s1] sm:$0xff] }
 0x58b   :  { %v6562_v44 = vpop.eup %6561  ;;  %6050 = vmatprep.subr.mxu1 %v6756_v1  ;;  %6026 = vmatmul.mubr.msk.f32.gmra.mxu1 %vm1237_vm10, %v1480_v20 }
 0x58c   :  { %v1481_v47 = vmul.f32 %v6562_v44, %v7407_v62  ;;  %6051 = vmatpush3.msra.mxu1 %v7413_v8  ;;  %6028 = vmatprep.mubr.msk.f32.mxu1 %vm6757_vm0, %v6756_v1  ;;  %v1310_v62 = vpop.xlane.xlu1 %1309  ;;  %6563 = vpow2.f32 %v1379_v4 }
 0x58d   :  { %6076 = vmatprep.subr.mxu1 %v6756_v1  ;;  %v1334_v8 = vsub.f32 %v7372_v24, %v1310_v62 }
 0x58f   :  { %6029 = vmatmul.mubr.msk.f32.gmra.mxu1 %vm1237_vm10, %v1481_v47  ;;  %v1381_v6 = vmul.f32 1.442695, %v1334_v8 }
 0x590   :  { %6052 = vmatprep.mubr.msk.f32.mxu1 %vm6757_vm0, %v6756_v1 }
 0x591   :  { %6565 = vpow2.f32 %v1381_v6 }
 0x596   :  { %2201 = vrot.lane.b32.xlu1 %v7088_v22, %s6762_s0 }
 0x599   :  { %v7549_v45 = vpop.eup %6563 }
 0x59a   :  { %v1449_v22 = vsel %vm1237_vm10, %v7549_v45, 0.0 }
 0x59f   :  { %2102 = vrot.lane.b32.xlu0 %v7068_v18, %s6762_s0  ;;  %v7553_v18 = vpop.eup %6565 }
 0x5a0   :  { %v1452_v24 = vsel %vm1244_vm11, %v7553_v18, 0.0 }
 0x5b5   :  { %v1394_v57 = vpop.xlane.xlu1 %1393 }
 0x5b6   :  { %6567 = vrcp.f32 %v1394_v57 }
 0x5b9   :  { %v1403_v3 = vpop.xlane.xlu0 %1402 }
 0x5ba   :  { %6569 = vrcp.f32 %v1403_v3  ;;  %1450 = vadd.xlane.f32.xlu1 %v1449_v22 }
 0x5bd   :  { %v1397_v17 = vpop.xlane.xlu1 %1396 }
 0x5be   :  { %6571 = vrcp.f32 %v1397_v17  ;;  %1453 = vadd.xlane.f32.xlu0 %v1452_v24 }
 0x5c1   :  { %v1406_v0 = vpop.xlane.xlu0 %1405  ;;  %v1400_v2 = vpop.xlane.xlu1 %1399 }
 0x5c2   :  { %6573 = vrcp.f32 %v1406_v0 }
 0x5c3   :  { %v6568_v12 = vpop.eup %6567  ;;  %6575 = vrcp.f32 %v1400_v2 }
 0x5c4   :  { %v1482_v9 = vmul.f32 %v6568_v12, %v7432_v10 }
 0x5c5   :  { %v1409_v50 = vpop.xlane.xlu0 %1408  ;;  %v1412_v32 = vpop.xlane.xlu1 %1411 }
 0x5c6   :  { %6577 = vrcp.f32 %v1409_v50  ;;  %6038 = vmatmul.mubr.msk.f32.vlgmr.msra.gmra.mxu0 %vm1237_vm10, %v1482_v9 }
 0x5c7   :  { %v6570_v15 = vpop.eup %6569  ;;  %6579 = vrcp.f32 %v1412_v32  ;;  %6062 = vmatpush3.msk.msra.mxu0 %vm1520_vm9, %v7397_v54  ;;  %6040 = vmatprep.mubr.msk.f32.mxu0 %vm6757_vm0, %v6756_v1 }
 0x5c8   :  { %v1485_v36 = vmul.f32 %v6570_v15, %v7438_v39  ;;  %6063 = vmatprep.subr.mxu0 %v6756_v1 }
 0x5c9   :  { %6064 = vmatpush3.msra.mxu0 %v7376_v30  ;;  %v1421_v10 = vpop.xlane.xlu1 %1420 }
 0x5ca   :  { %6065 = vmatprep.subr.mxu0 %v6756_v1  ;;  %6581 = vrcp.f32 %v1421_v10  ;;  %6053 = vmatmul.mubr.msk.f32.vlgmr.msra.gmra.mxu1 %vm1237_vm10, %v1485_v36 }
 0x5cb   :  { %v6572_v16 = vpop.eup %6571  ;;  %6066 = vmatpush3.msra.mxu0 %v7415_v13  ;;  %6077 = vmatpush3.msk.msra.mxu1 %vm1520_vm9, %v7417_v14 }
 0x5cc   :  { %6078 = vmatprep.subr.mxu1 %v6756_v1  ;;  %2100 = vrot.lane.b32.xlu1 %v7074_v19, %s6762_s0  ;;  %v1483_v54 = vmul.f32 %v6572_v16, %v7444_v60 }
 0x5cd   :  { %6079 = vmatpush3.msra.mxu1 %v7419_v23  ;;  %v1424_v30 = vpop.xlane.xlu0 %1423  ;;  %v1415_v39 = vpop.xlane.xlu1 %1414  ;;  %6055 = vmatprep.mubr.msk.f32.mxu1 %vm6757_vm0, %v6756_v1 }
 0x5ce   :  { %6080 = vmatprep.subr.mxu1 %v6756_v1  ;;  %6583 = vrcp.f32 %v1424_v30  ;;  %6041 = vmatmul.mubr.msk.f32.gmra.mxu0 %vm1237_vm10, %v1483_v54 }
 0x5cf   :  { %v6574_v13 = vpop.eup %6573  ;;  %6585 = vrcp.f32 %v1415_v39  ;;  %6081 = vmatpush3.msra.mxu1 %v7498_v61  ;;  %6043 = vmatprep.mubr.msk.f32.mxu0 %vm6757_vm0, %v6756_v1 }
 0x5d0   :  { %v6576_v19 = vpop.eup %6575  ;;  %2199 = vrot.lane.b32.xlu1 %v7100_v25, %s6762_s0  ;;  %v1486_v14 = vmul.f32 %v6574_v13, %v7452_v56  ;;  %6091 = vmatprep.subr.mxu0 %v6756_v1 }
 0x5d1   :  { %v1427_v23 = vpop.xlane.xlu0 %1426  ;;  %v1418_v60 = vpop.xlane.xlu1 %1417  ;;  %v1484_v29 = vmul.f32 %v6576_v19, %v7449_v48  ;;  %6106 = vmatprep.subr.mxu1 %v6756_v1 }
 0x5d2   :  { %6587 = vrcp.f32 %v1427_v23  ;;  %6056 = vmatmul.mubr.msk.f32.gmra.mxu1 %vm1237_vm10, %v1486_v14 }
 0x5d3   :  { %v6578_v61 = vpop.eup %6577  ;;  %6589 = vrcp.f32 %v1418_v60  ;;  %6044 = vmatmul.mubr.msk.f32.gmra.mxu0 %vm1237_vm10, %v1484_v29  ;;  %6058 = vmatprep.mubr.msk.f32.mxu1 %vm6757_vm0, %v6756_v1 }
 0x5d4   :  { %v6580_v25 = vpop.eup %6579  ;;  %2098 = vrot.lane.b32.xlu1 %v7082_v21, %s6762_s0  ;;  %6067 = vmatprep.mubr.msk.f32.mxu0 %vm6757_vm0, %v6756_v1  ;;  %v1487_v48 = vmul.f32 %v6578_v61, %v7461_v49 }
 0x5d5   :  { %v1488_v56 = vmul.f32 %v6580_v25, %v7458_v5  ;;  %v1430_v20 = vpop.xlane.xlu1 %1429  ;;  %v1439_v62 = vpop.xlane.xlu0 %1438 }
 0x5d6   :  { %6059 = vmatmul.mubr.msk.f32.gmra.mxu1 %vm1237_vm10, %v1487_v48  ;;  %6591 = vrcp.f32 %v1430_v20 }
 0x5d7   :  { %v6582_v44 = vpop.eup %6581  ;;  %6068 = vmatmul.mubr.msk.f32.vlgmr.msra.gmra.mxu0 %vm1237_vm10, %v1488_v56  ;;  %6082 = vmatprep.mubr.msk.f32.mxu1 %vm6757_vm0, %v6756_v1 }
 0x5d8   :  { %v1491_v47 = vmul.f32 %v6582_v44, %v7467_v37  ;;  %6092 = vmatpush3.msk.msra.mxu0 %vm1520_vm9, %v7421_v26  ;;  %2197 = vrot.lane.b32.xlu1 %v7110_v27, %s6762_s0 }
 0x5d9   :  { %6093 = vmatprep.subr.mxu0 %v6756_v1  ;;  %6070 = vmatprep.mubr.msk.f32.mxu0 %vm6757_vm0, %v6756_v1 }
 0x5da   :  { %6094 = vmatpush3.msra.mxu0 %v7423_v31  ;;  %6083 = vmatmul.mubr.msk.f32.vlgmr.msra.gmra.mxu1 %vm1237_vm10, %v1491_v47  ;;  %v6729_v31 = vld [vmem:[%s8871_s1 + $0x18] sm:$0xff] }
 0x5db   :  { %v6584_v21 = vpop.eup %6583  ;;  %6095 = vmatprep.subr.mxu0 %v6756_v1  ;;  %6085 = vmatprep.mubr.msk.f32.mxu1 %vm6757_vm0, %v6756_v1 }
 0x5dc   :  { %v6586_v5 = vpop.eup %6585  ;;  %6096 = vmatpush3.msra.mxu0 %v7495_v7  ;;  %v1492_v27 = vmul.f32 %v6584_v21, %v7473_v58  ;;  %2413 = vrot.lane.b32.xlu1 %v6729_v31, %s6763_s30  ;;  %v6730_v7 = vld [vmem:[%s8871_s1 + $0x10] sm:$0xff] }
 0x5dd   :  { %v1489_v26 = vmul.f32 %v6586_v5, %v7471_v40  ;;  %6121 = vmatprep.subr.mxu0 %v6756_v1 }
 0x5de   :  { %6086 = vmatmul.mubr.msk.f32.gmra.mxu1 %vm1237_vm10, %v1492_v27 }
 0x5df   :  { %v6588_v49 = vpop.eup %6587  ;;  %6071 = vmatmul.mubr.msk.f32.gmra.mxu0 %vm1237_vm10, %v1489_v26  ;;  %6088 = vmatprep.mubr.msk.f32.mxu1 %vm6757_vm0, %v6756_v1 }
 0x5e0   :  { %v6590_v37 = vpop.eup %6589  ;;  %6073 = vmatprep.mubr.msk.f32.mxu0 %vm6757_vm0, %v6756_v1  ;;  %v1493_v40 = vmul.f32 %v6588_v49, %v7481_v34  ;;  %2411 = vrot.lane.b32.xlu1 %v6730_v7, %s6763_s30 }
 0x5e1   :  { %v1490_v58 = vmul.f32 %v6590_v37, %v7475_v28  ;;  %v6731_v28 = vld [vmem:[%s8871_s1 + $0x8] sm:$0xff] }
 0x5e2   :  { %6089 = vmatmul.mubr.msk.f32.gmra.mxu1 %vm1237_vm10, %v1493_v40 }
 0x5e3   :  { %6074 = vmatmul.mubr.msk.f32.gmra.mxu0 %vm1237_vm10, %v1490_v58  ;;  %6112 = vmatprep.mubr.msk.f32.mxu1 %vm6757_vm0, %v6756_v1  ;;  %v6592_v52 = vpop.eup %6591 }
 0x5e4   :  { %6097 = vmatprep.mubr.msk.f32.mxu0 %vm6757_vm0, %v6756_v1  ;;  %v1494_v34 = vmul.f32 %v6592_v52, %v7487_v63  ;;  %2409 = vrot.lane.b32.xlu1 %v6731_v28, %s6763_s30 }
 0x5e7   :  { %6098 = vmatmul.mubr.msk.f32.vlgmr.msra.gmra.mxu0 %vm1237_vm10, %v1494_v34 }
 0x5e8   :  { %6100 = vmatprep.mubr.msk.f32.mxu0 %vm6757_vm0, %v6756_v1  ;;  %2407 = vrot.lane.b32.xlu1 %v6732_v59, %s6763_s30 }
 0x602   :  { %v1433_v4 = vpop.xlane.xlu0 %1432 }
 0x603   :  { %6593 = vrcp.f32 %v1433_v4 }
 0x60a   :  { %v1442_v63 = vpop.xlane.xlu0 %1441 }
 0x60e   :  { %v1436_v8 = vpop.xlane.xlu0 %1435  ;;  %v1445_v6 = vpop.xlane.xlu1 %1444 }
 0x60f   :  { %6595 = vrcp.f32 %v1436_v8 }
 0x610   :  { %v6594_v57 = vpop.eup %6593  ;;  %6597 = vrcp.f32 %v1439_v62 }
 0x611   :  { %v1495_v3 = vmul.f32 %v6594_v57, %v7504_v41  ;;  %6599 = vrcp.f32 %v1442_v63 }
 0x612   :  { %v2202_v22 = vpop.permute.xlu1 %2201  ;;  %v1448_v17 = vpop.xlane.xlu0 %1447 }
 0x613   :  { %6101 = vmatmul.mubr.msk.f32.gmra.mxu0 %vm1237_vm10, %v1495_v3  ;;  %6601 = vrcp.f32 %v1448_v17 }
 0x614   :  { %6122 = vmatpush3.msk.msra.mxu0 %vm1520_vm9, %v2202_v22  ;;  %6103 = vmatprep.mubr.msk.f32.mxu0 %vm6757_vm0, %v6756_v1  ;;  %6603 = vrcp.f32 %v1445_v6 }
 0x615   :  { %6123 = vmatprep.subr.mxu0 %v6756_v1 }
 0x616   :  { %v2103_v24 = vpop.permute.xlu0 %2102 }
 0x617   :  { %6107 = vmatpush3.msk.msra.mxu1 %vm1520_vm9, %v2103_v24 }
 0x618   :  { %6108 = vmatprep.subr.mxu1 %v6756_v1 }
 0x61c   :  { %v6596_v0 = vpop.eup %6595 }
 0x61d   :  { %v1496_v2 = vmul.f32 %v6596_v0, %v7512_v43  ;;  %v6598_v15 = vpop.eup %6597 }
 0x61e   :  { %v6600_v16 = vpop.eup %6599  ;;  %v1497_v54 = vmul.f32 %v6598_v15, %v7489_v35 }
 0x61f   :  { %6104 = vmatmul.mubr.msk.f32.gmra.mxu0 %vm1237_vm10, %v1496_v2  ;;  %v1498_v29 = vmul.f32 %v6600_v16, %v7508_v55 }
 0x620   :  { %6127 = vmatprep.mubr.msk.f32.mxu0 %vm6757_vm0, %v6756_v1  ;;  %v6602_v39 = vpop.eup %6601 }
 0x621   :  { %v6604_v14 = vpop.eup %6603  ;;  %v1500_v23 = vmul.f32 %v6602_v39, %v7520_v33 }
 0x622   :  { %v1499_v61 = vmul.f32 %v6604_v14, %v7514_v11 }
 0x643   :  { %v1451_v41 = vpop.xlane.xlu1 %1450 }
 0x644   :  { %6605 = vrcp.f32 %v1451_v41 }
 0x647   :  { %v2101_v12 = vpop.permute.xlu1 %2100  ;;  %v7666_v9 = vpop.f32.mrf.mxu1 }
 0x648   :  { %v1454_v50 = vpop.xlane.xlu0 %1453  ;;  %6109 = vmatpush3.msra.mxu1 %v2101_v12 }
 0x649   :  { %6110 = vmatprep.subr.mxu1 %v6756_v1  ;;  %v6024_v32 = vpop.f32.mrf.mxu1  ;;  %6607 = vrcp.f32 %v1454_v50 }
 0x64b   :  { %v2200_v43 = vpop.permute.xlu1 %2199  ;;  %v7669_v36 = vpop.f32.mrf.mxu1 }
 0x64c   :  { %6124 = vmatpush3.msra.mxu0 %v2200_v43 }
 0x64d   :  { %6125 = vmatprep.subr.mxu0 %v6756_v1  ;;  %v6027_v10 = vpop.f32.mrf.mxu1 }
 0x64f   :  { %v2099_v30 = vpop.permute.xlu1 %2098  ;;  %v7673_v13 = vpop.f32.mrf.mxu1 }
 0x650   :  { %6111 = vmatpush3.msra.mxu1 %v2099_v30 }
 0x651   :  { %6113 = vmatmul.mubr.msk.f32.vlgmr.msra.gmra.mxu1 %vm1237_vm10, %v1497_v54  ;;  %6136 = vmatprep.subr.mxu1 %v6756_v1  ;;  %v6030_v19 = vpop.f32.mrf.mxu1  ;;  %v6606_v35 = vpop.eup %6605 }
 0x652   :  { %6115 = vmatprep.mubr.msk.f32.mxu1 %vm6757_vm0, %v6756_v1  ;;  %v1501_v25 = vmul.f32 %v6606_v35, %v7549_v45 }
 0x653   :  { %v2198_v60 = vpop.permute.xlu1 %2197 }
 0x654   :  { %6126 = vmatpush3.msra.mxu0 %v2198_v60 }
 0x655   :  { %6116 = vmatmul.mubr.msk.f32.gmra.mxu1 %vm1237_vm10, %v1498_v29  ;;  %6128 = vmatmul.mubr.msk.f32.vlgmr.msra.gmra.mxu0 %vm1237_vm10, %v1500_v23 }
 0x656   :  { %6118 = vmatprep.mubr.msk.f32.mxu1 %vm6757_vm0, %v6756_v1  ;;  %6130 = vmatprep.mubr.msk.f32.mxu0 %vm6757_vm0, %v6756_v1  ;;  %v6608_v33 = vpop.eup %6607 }
 0x657   :  { %6159 = vmatprep.subr.mxu0 %v6756_v1  ;;  %v1502_v55 = vmul.f32 %v6608_v33, %v7553_v18  ;;  %v2414_v11 = vpop.permute.xlu1 %2413 }
 0x658   :  { %6137 = vmatpush3.msra.mxu1 %v2414_v11 }
 0x659   :  { %6119 = vmatmul.mubr.msk.f32.gmra.mxu1 %vm1237_vm10, %v1499_v61  ;;  %6131 = vmatmul.mubr.msk.f32.gmra.mxu0 %vm1237_vm10, %v1501_v25 }
 0x65a   :  { %6133 = vmatprep.mubr.msk.f32.mxu0 %vm6757_vm0, %v6756_v1  ;;  %6144 = vmatprep.mubr.msk.f32.mxu1 %vm6757_vm0, %v6756_v1 }
 0x65b   :  { %6138 = vmatprep.subr.mxu1 %v6756_v1  ;;  %v2412_v45 = vpop.permute.xlu1 %2411 }
 0x65c   :  { %6139 = vmatpush3.msra.mxu1 %v2412_v45 }
 0x65d   :  { %6134 = vmatmul.mubr.msk.f32.gmra.mxu0 %vm1237_vm10, %v1502_v55  ;;  %6140 = vmatprep.subr.mxu1 %v6756_v1 }
 0x65e   :  { %6167 = vmatprep.mubr.msk.f32.mxu0 %vm6757_vm0, %v6756_v1 }
 0x65f   :  { %v2410_v48 = vpop.permute.xlu1 %2409 }
 0x660   :  { %6141 = vmatpush3.msra.mxu1 %v2410_v48 }
 0x661   :  { %6142 = vmatprep.subr.mxu1 %v6756_v1 }
 0x663   :  { %v2408_v56 = vpop.permute.xlu1 %2407 }
 0x664   :  { %6143 = vmatpush3.msra.mxu1 %v2408_v56 }
 0x665   :  { %6182 = vmatprep.subr.mxu1 %v6756_v1 }
 0x686   :  { %v1688_v18 = vpop.f32.mrf.mxu0 }
 0x687   :  { %2299 = vrot.lane.b32.xlu0 %v1688_v18, %s6764_s13 }
 0x688   :  { %v6039_v20 = vpop.f32.mrf.mxu0 }
 0x68a   :  { %v1787_v44 = vpop.f32.mrf.mxu1 }
 0x68b   :  { %2311 = vrot.lane.b32.xlu1 %v1787_v44, %s6765_s14 }
 0x68c   :  { %v6054_v47 = vpop.f32.mrf.mxu1 }
 0x68e   :  { %v1693_v21 = vpop.f32.mrf.mxu0 }
 0x68f   :  { %2301 = vrot.lane.b32.xlu1 %v1693_v21, %s6764_s13 }
 0x690   :  { %v6042_v5 = vpop.f32.mrf.mxu0 }
 0x692   :  { %v1792_v27 = vpop.f32.mrf.mxu1 }
 0x693   :  { %v1698_v26 = vpop.f32.mrf.mxu0  ;;  %2313 = vrot.lane.b32.xlu1 %v1792_v27, %s6765_s14 }
 0x694   :  { %v6057_v31 = vpop.f32.mrf.mxu1 }
 0x695   :  { %v6045_v49 = vpop.f32.mrf.mxu0 }
 0x696   :  { %v1797_v37 = vpop.f32.mrf.mxu1 }
 0x697   :  { %v1886_v40 = vpop.f32.mrf.mxu0  ;;  %2303 = vrot.lane.b32.xlu1 %v1698_v26, %s6764_s13 }
 0x698   :  { %v6060_v58 = vpop.f32.mrf.mxu1 }
 0x699   :  { %v6069_v7 = vpop.f32.mrf.mxu0 }
 0x69a   :  { %v7709_v52 = vpop.f32.mrf.mxu1 }
 0x69b   :  { %2323 = vrot.lane.b32.xlu1 %v1886_v40, %s6766_s15 }
 0x69c   :  { %v6084_v34 = vpop.f32.mrf.mxu1 }
 0x69e   :  { %v7712_v28 = vpop.f32.mrf.mxu1 }
 0x69f   :  { %v1891_v59 = vpop.f32.mrf.mxu0 }
 0x6a0   :  { %2325 = vrot.lane.b32.xlu1 %v1891_v59, %s6766_s15  ;;  %v6087_v62 = vpop.f32.mrf.mxu1 }
 0x6a1   :  { %v6072_v4 = vpop.f32.mrf.mxu0 }
 0x6a2   :  { %v7715_v63 = vpop.f32.mrf.mxu1 }
 0x6a3   :  { %v1896_v8 = vpop.f32.mrf.mxu0 }
 0x6a4   :  { %2315 = vrot.lane.b32.xlu1 %v1797_v37, %s6765_s14  ;;  %v6090_v6 = vpop.f32.mrf.mxu1 }
 0x6a5   :  { %v6075_v57 = vpop.f32.mrf.mxu0 }
 0x6a7   :  { %v2084_v3 = vpop.f32.mrf.mxu0 }
 0x6a8   :  { %2346 = vrot.lane.b32.xlu0 %v2084_v3, %s6764_s13 }
 0x6a9   :  { %v6099_v22 = vpop.f32.mrf.mxu0 }
 0x6d3   :  { %v2089_v17 = vpop.f32.mrf.mxu0 }
 0x6d4   :  { %2348 = vrot.lane.b32.xlu1 %v2089_v17, %s6764_s13 }
 0x6d5   :  { %v6102_v24 = vpop.f32.mrf.mxu0 }
 0x6df   :  { %v2094_v0 = vpop.f32.mrf.mxu0 }
 0x6e1   :  { %v6105_v2 = vpop.f32.mrf.mxu0 }
 0x6f9   :  { %v2300_v32 = vpop.permute.xlu0 %2299 }
 0x6fa   :  { %v2332_v15 = vsel %vm458_vm8, %v7666_v9, %v2300_v32 }
 0x6fd   :  { %v2312_v41 = vpop.permute.xlu1 %2311 }
 0x6fe   :  { %v2336_v10 = vsel %vm2335_vm12, %v2332_v15, %v2312_v41 }
 0x701   :  { %v2302_v12 = vpop.permute.xlu1 %2301 }
 0x702   :  { %v2333_v30 = vsel %vm458_vm8, %v7669_v36, %v2302_v12 }
 0x705   :  { %v2314_v50 = vpop.permute.xlu1 %2313 }
 0x706   :  { %v2337_v19 = vsel %vm2335_vm12, %v2333_v30, %v2314_v50 }
 0x709   :  { %v2304_v43 = vpop.permute.xlu1 %2303 }
 0x70a   :  { %v2334_v5 = vsel %vm458_vm8, %v7673_v13, %v2304_v43 }
 0x70d   :  { %v2324_v16 = vpop.permute.xlu1 %2323 }
 0x70e   :  { %v2340_v54 = vsel %vm2339_vm13, %v2336_v10, %v2324_v16 }
 0x70f   :  { %6145 = vmatmul.mubr.msk.f32.vlgmr.msra.gmra.mxu1 %vm190_vm3, %v2340_v54 }
 0x710   :  { %6147 = vmatprep.mubr.msk.f32.mxu1 %vm6757_vm0, %v6756_v1 }
 0x711   :  { %v2183_v39 = vpop.f32.mrf.mxu1 }
 0x712   :  { %v2326_v14 = vpop.permute.xlu1 %2325  ;;  %2358 = vrot.lane.b32.xlu0 %v2183_v39, %s6765_s14 }
 0x713   :  { %v2341_v9 = vsel %vm2339_vm13, %v2337_v19, %v2326_v14  ;;  %v6114_v23 = vpop.f32.mrf.mxu1 }
 0x714   :  { %6148 = vmatmul.mubr.msk.f32.gmra.mxu1 %vm190_vm3, %v2341_v9 }
 0x715   :  { %v2188_v60 = vpop.f32.mrf.mxu1  ;;  %v2282_v29 = vpop.f32.mrf.mxu0  ;;  %6150 = vmatprep.mubr.msk.f32.mxu1 %vm6757_vm0, %v6756_v1 }
 0x716   :  { %2370 = vrot.lane.b32.xlu0 %v2282_v29, %s6766_s15  ;;  %v2316_v47 = vpop.permute.xlu1 %2315 }
 0x717   :  { %v6117_v35 = vpop.f32.mrf.mxu1  ;;  %v6129_v36 = vpop.f32.mrf.mxu0  ;;  %v2338_v27 = vsel %vm2335_vm12, %v2334_v5, %v2316_v47  ;;  %v280_v47 = vld [vmem:[%s8872_s2] sm:$0xff] }
 0x719   :  { %v2193_v61 = vpop.f32.mrf.mxu1  ;;  %v2287_v25 = vpop.f32.mrf.mxu0 }
 0x71a   :  { %2327 = vrot.lane.b32.xlu0 %v1896_v8, %s6766_s15  ;;  %2372 = vrot.lane.b32.xlu1 %v2287_v25, %s6766_s15  ;;  %v2347_v48 = vpop.permute.xlu0 %2346 }
 0x71b   :  { %v6120_v33 = vpop.f32.mrf.mxu1  ;;  %v6132_v55 = vpop.f32.mrf.mxu0  ;;  %v2379_v18 = vsel %vm458_vm8, %v7709_v52, %v2347_v48 }
 0x71d   :  { %v2292_v11 = vpop.f32.mrf.mxu0 }
 0x71e   :  { %2360 = vrot.lane.b32.xlu0 %v2188_v60, %s6765_s14  ;;  %2362 = vrot.lane.b32.xlu1 %v2193_v61, %s6765_s14 }
 0x71f   :  { %v6135_v45 = vpop.f32.mrf.mxu0 }
 0x722   :  { %2350 = vrot.lane.b32.xlu0 %v2094_v0, %s6764_s13 }
 0x726   :  { %2374 = vrot.lane.b32.xlu0 %v2292_v11, %s6766_s15 }
 0x746   :  { %v2349_v49 = vpop.permute.xlu1 %2348 }
 0x747   :  { %v2380_v58 = vsel %vm458_vm8, %v7712_v28, %v2349_v49 }
 0x784   :  { %v2359_v56 = vpop.permute.xlu0 %2358 }
 0x785   :  { %v2382_v20 = vsel %vm2335_vm12, %v2379_v18, %v2359_v56 }
 0x788   :  { %v2371_v44 = vpop.permute.xlu0 %2370 }
 0x789   :  { %v2385_v21 = vsel %vm2339_vm13, %v2382_v20, %v2371_v44  ;;  %v283_v20 = vld [vmem:[%s8872_s2 + $0x18] sm:$0xff]  ;;  %v281_v44 = vld [vmem:[%s8872_s2 + $0x8] sm:$0xff] }
 0x78a   :  { %v2391_v26 = vrot.slane %v2385_v21, 7  ;;  %6160 = vmatpush3.msra.mxu0 %v283_v20 }
 0x78b   :  { %6161 = vmatprep.subr.mxu0 %v6756_v1 }
 0x78c   :  { %v2328_v31 = vpop.permute.xlu0 %2327  ;;  %v2373_v52 = vpop.permute.xlu1 %2372 }
 0x78d   :  { %v2342_v37 = vsel %vm2339_vm13, %v2338_v27, %v2328_v31 }
 0x78e   :  { %v2397_v40 = vsel %vm1520_vm9, %v2342_v37, %v2391_v26 }
 0x78f   :  { %6151 = vmatmul.mubr.msk.f32.gmra.mxu1 %vm190_vm3, %v2397_v40 }
 0x790   :  { %v2361_v7 = vpop.permute.xlu0 %2360  ;;  %6153 = vmatprep.mubr.msk.f32.mxu1 %vm6757_vm0, %v6756_v1  ;;  %v2363_v6 = vpop.permute.xlu1 %2362 }
 0x791   :  { %v2383_v13 = vsel %vm2335_vm12, %v2380_v58, %v2361_v7 }
 0x792   :  { %v2386_v34 = vsel %vm2339_vm13, %v2383_v13, %v2373_v52 }
 0x793   :  { %v2392_v59 = vrot.slane %v2386_v34, 7 }
 0x794   :  { %v2351_v62 = vpop.permute.xlu0 %2350 }
 0x795   :  { %v2381_v4 = vsel %vm458_vm8, %v7715_v63, %v2351_v62  ;;  %v2393_v8 = vsel %vm1520_vm9, %v2391_v26, %v2392_v59  ;;  %v5454_v63 = vld [vmem:[%s8874_s4 + $0x28] ss:$0 sm:$0xff] }
 0x796   :  { %6154 = vmatmul.mubr.msk.f32.gmra.mxu1 %vm190_vm3, %v2393_v8  ;;  %v2384_v28 = vsel %vm2335_vm12, %v2381_v4, %v2363_v6 }
 0x797   :  { %6156 = vmatprep.mubr.msk.f32.mxu1 %vm6757_vm0, %v6756_v1 }
 0x798   :  { %v2375_v57 = vpop.permute.xlu0 %2374 }
 0x799   :  { %v2387_v3 = vsel %vm2339_vm13, %v2384_v28, %v2375_v57 }
 0x79a   :  { %v2394_v22 = vrot.slane %v2387_v3, 7 }
 0x79c   :  { %v2395_v17 = vsel %vm1520_vm9, %v2392_v59, %v2394_v22 }
 0x79d   :  { %6157 = vmatmul.mubr.msk.f32.gmra.mxu1 %vm190_vm3, %v2395_v17  ;;  %v7819_v17 = vld [vmem:[%s8874_s4 + $0x29] ss:$0 sm:$0xff] }
 0x79e   :  { %6198 = vmatprep.mubr.msk.f32.mxu1 %vm6757_vm0, %v6756_v1 }
 0x7cf   :  { %v2498_v24 = vpop.f32.mrf.mxu1 }
 0x7d0   :  { %v2499_v0 = vadd.f32 %v5454_v63, %v2498_v24  ;;  %v5461_v24 = vld [vmem:[%s8874_s4 + $0x2a] ss:$0 sm:$0xff] }
 0x7d1   :  { %v6146_v2 = vpop.f32.mrf.mxu1 }
 0x7d2   :  { %v2522_v41 = vadd.f32 %v2499_v0, %v6936_v38 }
 0x7d4   :  { %v2503_v12 = vpop.f32.mrf.mxu1  ;;  %v2529_v50 = vsel %vm190_vm3, %v2522_v41, 0.0 }
 0x7d5   :  { %v2504_v32 = vadd.f32 %v5454_v63, %v2503_v12  ;;  %2530 = vadd.xlane.f32.xlu1 %v2529_v50 }
 0x7d6   :  { %v6149_v43 = vpop.f32.mrf.mxu1 }
 0x7d7   :  { %v2523_v15 = vadd.f32 %v2504_v32, %v6943_v42  ;;  %v291_v43 = vld [vmem:[%s8872_s2 + $0x58] sm:$0xff] }
 0x7d8   :  { %6183 = vmatpush3.msra.mxu1 %v291_v43 }
 0x7d9   :  { %v2532_v10 = vsel %vm190_vm3, %v2523_v15, 0.0  ;;  %6184 = vmatprep.subr.mxu1 %v6756_v1 }
 0x7da   :  { %2533 = vadd.xlane.f32.xlu0 %v2532_v10  ;;  %v289_v10 = vld [vmem:[%s8872_s2 + $0x48] sm:$0xff] }
 0x84f   :  { %v2508_v16 = vpop.f32.mrf.mxu1 }
 0x850   :  { %v2509_v54 = vadd.f32 %v5454_v63, %v2508_v16  ;;  %v288_v16 = vld [vmem:[%s8872_s2 + $0x40] sm:$0xff] }
 0x851   :  { %v6152_v30 = vpop.f32.mrf.mxu1 }
 0x852   :  { %v2524_v39 = vadd.f32 %v2509_v54, %v6950_v46  ;;  %v287_v54 = vld [vmem:[%s8872_s2 + $0x38] sm:$0xff]  ;;  %v286_v30 = vld [vmem:[%s8872_s2 + $0x30] sm:$0xff] }
 0x854   :  { %v2535_v19 = vsel %vm190_vm3, %v2524_v39, 0.0 }
 0x855   :  { %2536 = vadd.xlane.f32.xlu0 %v2535_v19  ;;  %v284_v19 = vld [vmem:[%s8872_s2 + $0x20] sm:$0xff] }
 0x856   :  { %v2513_v38 = vpop.f32.mrf.mxu1 }
 0x857   :  { %v2514_v14 = vadd.f32 %v5454_v63, %v2513_v38 }
 0x858   :  { %v6155_v9 = vpop.f32.mrf.mxu1 }
 0x859   :  { %v2525_v23 = vadd.f32 %v2514_v14, %v6957_v51 }
 0x85b   :  { %v2538_v60 = vsel %vm190_vm3, %v2525_v23, 0.0 }
 0x85c   :  { %2539 = vadd.xlane.f32.xlu1 %v2538_v60 }
 0x85d   :  { %v2518_v42 = vpop.f32.mrf.mxu1 }
 0x85e   :  { %v2519_v29 = vadd.f32 %v5454_v63, %v2518_v42  ;;  %v2531_v35 = vpop.xlane.xlu1 %2530 }
 0x85f   :  { %v2544_v36 = vmul.f32 0.03125, %v2531_v35  ;;  %v6158_v61 = vpop.f32.mrf.mxu1 }
 0x860   :  { %v2526_v25 = vadd.f32 %v2519_v29, %v6963_v53  ;;  %v282_v53 = vld [vmem:[%s8872_s2 + $0x10] sm:$0xff] }
 0x861   :  { %v2549_v33 = vsub.f32 %v2522_v41, %v2544_v36  ;;  %6162 = vmatpush3.msra.mxu0 %v282_v53  ;;  %v5462_v53 = vld [vmem:[%s8874_s4 + $0x2b] ss:$0 sm:$0xff] }
 0x862   :  { %v2541_v46 = vsel %vm203_vm5, %v2526_v25, 0.0  ;;  %6163 = vmatprep.subr.mxu0 %v6756_v1 }
 0x863   :  { %v2534_v55 = vpop.xlane.xlu0 %2533  ;;  %2542 = vadd.xlane.f32.xlu0 %v2541_v46  ;;  %v2554_v11 = vmul.f32 %v2549_v33, %v2549_v33  ;;  %6164 = vmatpush3.msra.mxu0 %v281_v44 }
 0x864   :  { %v2545_v45 = vmul.f32 0.03125, %v2534_v55  ;;  %6165 = vmatprep.subr.mxu0 %v6756_v1 }
 0x865   :  { %v2559_v48 = vsel %vm190_vm3, %v2554_v11, 0.0  ;;  %6166 = vmatpush3.msra.mxu0 %v280_v47 }
 0x866   :  { %v2550_v51 = vsub.f32 %v2523_v15, %v2545_v45  ;;  %2560 = vadd.xlane.f32.xlu1 %v2559_v48  ;;  %6213 = vmatprep.subr.mxu0 %v6756_v1  ;;  %v290_v15 = vld [vmem:[%s8872_s2 + $0x50] sm:$0xff] }
 0x867   :  { %6185 = vmatpush3.msra.mxu1 %v290_v15 }
 0x868   :  { %v2555_v56 = vmul.f32 %v2550_v51, %v2550_v51  ;;  %6186 = vmatprep.subr.mxu1 %v6756_v1 }
 0x869   :  { %6187 = vmatpush3.msra.mxu1 %v289_v10 }
 0x86a   :  { %v2562_v18 = vsel %vm190_vm3, %v2555_v56, 0.0  ;;  %6188 = vmatprep.subr.mxu1 %v6756_v1 }
 0x86b   :  { %2563 = vadd.xlane.f32.xlu0 %v2562_v18  ;;  %6189 = vmatpush3.msra.mxu1 %v288_v16 }
 0x86c   :  { %6190 = vmatprep.subr.mxu1 %v6756_v1 }
 0x86d   :  { %6191 = vmatpush3.msra.mxu1 %v287_v54 }
 0x86e   :  { %6192 = vmatprep.subr.mxu1 %v6756_v1 }
 0x86f   :  { %6193 = vmatpush3.msra.mxu1 %v286_v30 }
 0x870   :  { %6194 = vmatprep.subr.mxu1 %v6756_v1 }
 0x8de   :  { %v2537_v21 = vpop.xlane.xlu0 %2536 }
 0x8df   :  { %v2546_v5 = vmul.f32 0.03125, %v2537_v21 }
 0x8e1   :  { %v7801_v27 = vsub.f32 %v2524_v39, %v2546_v5  ;;  %v285_v39 = vld [vmem:[%s8872_s2 + $0x28] sm:$0xff] }
 0x8e2   :  { %6195 = vmatpush3.msra.mxu1 %v285_v39 }
 0x8e3   :  { %v2556_v26 = vmul.f32 %v7801_v27, %v7801_v27  ;;  %6196 = vmatprep.subr.mxu1 %v6756_v1 }
 0x8e4   :  { %6197 = vmatpush3.msra.mxu1 %v284_v19 }
 0x8e5   :  { %v2540_v31 = vpop.xlane.xlu1 %2539  ;;  %v2565_v49 = vsel %vm190_vm3, %v2556_v26, 0.0  ;;  %6236 = vmatprep.subr.mxu1 %v6756_v1 }
 0x8e6   :  { %v2547_v37 = vmul.f32 0.03125, %v2540_v31  ;;  %2566 = vadd.xlane.f32.xlu1 %v2565_v49 }
 0x8e8   :  { %v7806_v40 = vsub.f32 %v2525_v23, %v2547_v37 }
 0x8ea   :  { %v2557_v58 = vmul.f32 %v7806_v40, %v7806_v40 }
 0x8ec   :  { %v2543_v7 = vpop.xlane.xlu0 %2542  ;;  %v2568_v52 = vsel %vm190_vm3, %v2557_v58, 0.0 }
 0x8ed   :  { %v2548_v13 = vmul.f32 0.03125, %v2543_v7  ;;  %2569 = vadd.xlane.f32.xlu0 %v2568_v52 }
 0x8ef   :  { %v7811_v34 = vsub.f32 %v2526_v25, %v2548_v13  ;;  %v2561_v59 = vpop.xlane.xlu1 %2560 }
 0x8f0   :  { %v2574_v62 = vmul.f32 0.03125, %v2561_v59 }
 0x8f1   :  { %v2558_v4 = vmul.f32 %v7811_v34, %v7811_v34 }
 0x8f2   :  { %v2579_v8 = vadd.f32 1e-05, %v2574_v62 }
 0x8f3   :  { %v2571_v6 = vsel %vm203_vm5, %v2558_v4, 0.0 }
 0x8f4   :  { %6609 = vrsqrt.f32 %v2579_v8  ;;  %v2564_v28 = vpop.xlane.xlu0 %2563  ;;  %2572 = vadd.xlane.f32.xlu1 %v2571_v6 }
 0x8f5   :  { %v2575_v57 = vmul.f32 0.03125, %v2564_v28  ;;  %v5468_v28 = vld [vmem:[%s8874_s4 + $0x2c] ss:$0 sm:$0xff] }
 0x8f7   :  { %v2580_v3 = vadd.f32 1e-05, %v2575_v57 }
 0x8f9   :  { %6611 = vrsqrt.f32 %v2580_v3 }
 0x901   :  { %v6610_v22 = vpop.eup %6609 }
 0x902   :  { %v2589_v63 = vmul.f32 %v6610_v22, %v2549_v33 }
 0x904   :  { %v2598_v0 = vmul.f32 %v7819_v17, %v2589_v63 }
 0x906   :  { %v6612_v2 = vpop.eup %6611  ;;  %v7825_v41 = vadd.f32 %v5461_v24, %v2598_v0 }
 0x907   :  { %v2590_v12 = vmul.f32 %v6612_v2, %v2550_v51 }
 0x908   :  { %6168 = vmatmul.mubr.msk.f32.vlgmr.msra.gmra.mxu0 %vm190_vm3, %v7825_v41 }
 0x909   :  { %6170 = vmatprep.mubr.msk.f32.mxu0 %vm6757_vm0, %v6756_v1  ;;  %v2599_v50 = vmul.f32 %v7819_v17, %v2590_v12 }
 0x90b   :  { %v7832_v32 = vadd.f32 %v5461_v24, %v2599_v50 }
 0x90d   :  { %6171 = vmatmul.mubr.msk.f32.gmra.mxu0 %vm190_vm3, %v7832_v32 }
 0x90e   :  { %6173 = vmatprep.mubr.msk.f32.mxu0 %vm6757_vm0, %v6756_v1 }
 0x96f   :  { %v2567_v38 = vpop.xlane.xlu1 %2566 }
 0x970   :  { %v2576_v14 = vmul.f32 0.03125, %v2567_v38 }
 0x972   :  { %v2581_v9 = vadd.f32 1e-05, %v2576_v14 }
 0x974   :  { %6613 = vrsqrt.f32 %v2581_v9 }
 0x976   :  { %v2570_v23 = vpop.xlane.xlu0 %2569 }
 0x977   :  { %v2577_v60 = vmul.f32 0.03125, %v2570_v23 }
 0x979   :  { %v2582_v42 = vadd.f32 1e-05, %v2577_v60 }
 0x97b   :  { %6615 = vrsqrt.f32 %v2582_v42 }
 0x97d   :  { %v2573_v29 = vpop.xlane.xlu1 %2572 }
 0x97e   :  { %v2578_v35 = vmul.f32 0.03125, %v2573_v29 }
 0x980   :  { %v2583_v36 = vadd.f32 1e-05, %v2578_v35 }
 0x981   :  { %v6614_v61 = vpop.eup %6613 }
 0x982   :  { %6617 = vrsqrt.f32 %v2583_v36  ;;  %v2591_v25 = vmul.f32 %v6614_v61, %v7801_v27 }
 0x984   :  { %v2600_v33 = vmul.f32 %v7819_v17, %v2591_v25 }
 0x986   :  { %v2609_v46 = vadd.f32 %v5461_v24, %v2600_v33 }
 0x988   :  { %v6616_v55 = vpop.eup %6615  ;;  %6174 = vmatmul.mubr.msk.f32.gmra.mxu0 %vm190_vm3, %v2609_v46 }
 0x989   :  { %6176 = vmatprep.mubr.msk.f32.mxu0 %vm6757_vm0, %v6756_v1  ;;  %v2592_v11 = vmul.f32 %v6616_v55, %v7806_v40 }
 0x98b   :  { %v2601_v45 = vmul.f32 %v7819_v17, %v2592_v11 }
 0x98d   :  { %v2610_v48 = vadd.f32 %v5461_v24, %v2601_v45  ;;  %v7922_v45 = vld [vmem:[%s8871_s1 + $0x38] sm:$0xff] }
 0x98e   :  { %6214 = vmatpush3.msra.mxu0 %v7922_v45 }
 0x98f   :  { %v6618_v51 = vpop.eup %6617  ;;  %6177 = vmatmul.mubr.msk.f32.gmra.mxu0 %vm190_vm3, %v2610_v48  ;;  %6215 = vmatprep.subr.mxu0 %v6756_v1 }
 0x990   :  { %6179 = vmatprep.mubr.msk.f32.mxu0 %vm6757_vm0, %v6756_v1  ;;  %v2593_v56 = vmul.f32 %v6618_v51, %v7811_v34  ;;  %v7934_v51 = vld [vmem:[%s8871_s1 + $0x28] sm:$0xff] }
 0x992   :  { %v2602_v18 = vmul.f32 %v7819_v17, %v2593_v56  ;;  %v5476_v56 = vld [vmem:[%s8871_s1 + $0x20] sm:$0xff] }
 0x994   :  { %v7882_v20 = vadd.f32 %v5461_v24, %v2602_v18 }
 0x996   :  { %6180 = vmatmul.mubr.msk.f32.gmra.mxu0 %vm190_vm3, %v7882_v20 }
 0x997   :  { %6221 = vmatprep.mubr.msk.f32.mxu0 %vm6757_vm0, %v6756_v1 }
 0x9c8   :  { %v2698_v44 = vpop.f32.mrf.mxu0 }
 0x9c9   :  { %v2699_v47 = vadd.f32 %v5462_v53, %v2698_v44 }
 0x9ca   :  { %v6169_v21 = vpop.f32.mrf.mxu0 }
 0x9cb   :  { %v2722_v5 = vmax.f32 %v2699_v47, 0.0 }
 0x9cd   :  { %v2703_v27 = vpop.f32.mrf.mxu0  ;;  %6199 = vmatmul.mubr.msk.f32.vlgmr.msra.gmra.mxu1 %vm41_vm1, %v2722_v5 }
 0x9ce   :  { %v2704_v26 = vadd.f32 %v5462_v53, %v2703_v27  ;;  %6201 = vmatprep.mubr.msk.f32.mxu1 %vm6757_vm0, %v6756_v1 }
 0x9cf   :  { %v6172_v31 = vpop.f32.mrf.mxu0 }
 0x9d0   :  { %v2723_v49 = vmax.f32 %v2704_v26, 0.0 }
 0x9d2   :  { %6202 = vmatmul.mubr.msk.f32.gmra.mxu1 %vm41_vm1, %v2723_v49 }
 0x9d3   :  { %6204 = vmatprep.mubr.msk.f32.mxu1 %vm6757_vm0, %v6756_v1 }
 0xa48   :  { %v2708_v37 = vpop.f32.mrf.mxu0 }
 0xa49   :  { %v2709_v40 = vadd.f32 %v5462_v53, %v2708_v37 }
 0xa4a   :  { %v6175_v58 = vpop.f32.mrf.mxu0 }
 0xa4b   :  { %v2724_v7 = vmax.f32 %v2709_v40, 0.0 }
 0xa4d   :  { %6205 = vmatmul.mubr.msk.f32.gmra.mxu1 %vm41_vm1, %v2724_v7 }
 0xa4e   :  { %6207 = vmatprep.mubr.msk.f32.mxu1 %vm6757_vm0, %v6756_v1 }
 0xa4f   :  { %v2713_v52 = vpop.f32.mrf.mxu0 }
 0xa50   :  { %v2714_v13 = vadd.f32 %v5462_v53, %v2713_v52 }
 0xa51   :  { %v6178_v34 = vpop.f32.mrf.mxu0 }
 0xa52   :  { %v2725_v59 = vmax.f32 %v2714_v13, 0.0 }
 0xa54   :  { %6208 = vmatmul.mubr.msk.f32.gmra.mxu1 %vm41_vm1, %v2725_v59 }
 0xa55   :  { %6210 = vmatprep.mubr.msk.f32.mxu1 %vm6757_vm0, %v6756_v1 }
 0xa56   :  { %v2718_v62 = vpop.f32.mrf.mxu0 }
 0xa57   :  { %v2719_v4 = vadd.f32 %v5462_v53, %v2718_v62 }
 0xa58   :  { %v6181_v8 = vpop.f32.mrf.mxu0 }
 0xa59   :  { %v2726_v6 = vmax.f32 %v2719_v4, 0.0 }
 0xa5b   :  { %6211 = vmatmul.mubr.msk.f32.gmra.mxu1 %vm41_vm1, %v2726_v6  ;;  %v5474_v6 = vld [vmem:[%s8874_s4 + $0x2d] ss:$0 sm:$0xff] }
 0xa5c   :  { %6242 = vmatprep.mubr.msk.f32.mxu1 %vm6757_vm0, %v6756_v1 }
 0xa8d   :  { %v2813_v57 = vpop.f32.mrf.mxu1 }
 0xa8e   :  { %v2814_v3 = vadd.f32 %v5468_v28, %v2813_v57  ;;  %v5475_v57 = vld [vmem:[%s8874_s4 + $0x2e] ss:$0 sm:$0xff] }
 0xa8f   :  { %v6200_v22 = vpop.f32.mrf.mxu1 }
 0xa90   :  { %v2837_v17 = vadd.f32 %v2814_v3, %v7825_v41 }
 0xa92   :  { %v2818_v63 = vpop.f32.mrf.mxu1  ;;  %v2844_v24 = vsel %vm190_vm3, %v2837_v17, 0.0 }
 0xa93   :  { %v2819_v0 = vadd.f32 %v5468_v28, %v2818_v63  ;;  %2845 = vadd.xlane.f32.xlu0 %v2844_v24 }
 0xa94   :  { %v6203_v2 = vpop.f32.mrf.mxu1 }
 0xa95   :  { %v2838_v12 = vadd.f32 %v2819_v0, %v7832_v32 }
 0xa97   :  { %v2847_v50 = vsel %vm190_vm3, %v2838_v12, 0.0 }
 0xa98   :  { %2848 = vadd.xlane.f32.xlu1 %v2847_v50 }
 0xb0d   :  { %v2823_v43 = vpop.f32.mrf.mxu1 }
 0xb0e   :  { %v2824_v15 = vadd.f32 %v5468_v28, %v2823_v43 }
 0xb0f   :  { %v6206_v10 = vpop.f32.mrf.mxu1 }
 0xb10   :  { %v2839_v16 = vadd.f32 %v2824_v15, %v2609_v46 }
 0xb12   :  { %v2850_v54 = vsel %vm190_vm3, %v2839_v16, 0.0 }
 0xb13   :  { %2851 = vadd.xlane.f32.xlu0 %v2850_v54 }
 0xb14   :  { %v2828_v30 = vpop.f32.mrf.mxu1 }
 0xb15   :  { %v2829_v41 = vadd.f32 %v5468_v28, %v2828_v30 }
 0xb16   :  { %v6209_v39 = vpop.f32.mrf.mxu1 }
 0xb17   :  { %v2840_v19 = vadd.f32 %v2829_v41, %v2610_v48  ;;  %v7928_v48 = vld [vmem:[%s8871_s1 + $0x30] sm:$0xff] }
 0xb18   :  { %6216 = vmatpush3.msra.mxu0 %v7928_v48 }
 0xb19   :  { %v2853_v38 = vsel %vm190_vm3, %v2840_v19, 0.0  ;;  %6217 = vmatprep.subr.mxu0 %v6756_v1 }
 0xb1a   :  { %2854 = vadd.xlane.f32.xlu1 %v2853_v38  ;;  %6218 = vmatpush3.msra.mxu0 %v7934_v51 }
 0xb1b   :  { %v2833_v14 = vpop.f32.mrf.mxu1  ;;  %6219 = vmatprep.subr.mxu0 %v6756_v1 }
 0xb1c   :  { %v2834_v9 = vadd.f32 %v5468_v28, %v2833_v14  ;;  %v2846_v32 = vpop.xlane.xlu0 %2845  ;;  %6220 = vmatpush3.msra.mxu0 %v5476_v56 }
 0xb1d   :  { %v2859_v23 = vmul.f32 0.03125, %v2846_v32  ;;  %v6212_v60 = vpop.f32.mrf.mxu1  ;;  %6251 = vmatprep.subr.mxu0 %v6756_v1 }
 0xb1e   :  { %v2841_v42 = vadd.f32 %v2834_v9, %v7882_v20 }
 0xb1f   :  { %v2864_v29 = vsub.f32 %v2837_v17, %v2859_v23 }
 0xb20   :  { %v2856_v35 = vsel %vm203_vm5, %v2841_v42, 0.0 }
 0xb21   :  { %v2849_v36 = vpop.xlane.xlu1 %2848  ;;  %2857 = vadd.xlane.f32.xlu0 %v2856_v35  ;;  %v2869_v61 = vmul.f32 %v2864_v29, %v2864_v29 }
 0xb22   :  { %v2860_v25 = vmul.f32 0.03125, %v2849_v36 }
 0xb23   :  { %v2874_v33 = vsel %vm190_vm3, %v2869_v61, 0.0 }
 0xb24   :  { %v2865_v46 = vsub.f32 %v2838_v12, %v2860_v25  ;;  %2875 = vadd.xlane.f32.xlu1 %v2874_v33 }
 0xb26   :  { %v2870_v55 = vmul.f32 %v2865_v46, %v2865_v46 }
 0xb28   :  { %v2877_v11 = vsel %vm190_vm3, %v2870_v55, 0.0 }
 0xb29   :  { %2878 = vadd.xlane.f32.xlu0 %v2877_v11 }
 0xb9c   :  { %v2852_v18 = vpop.xlane.xlu0 %2851 }
 0xb9d   :  { %v2861_v20 = vmul.f32 0.03125, %v2852_v18 }
 0xb9f   :  { %v2866_v53 = vsub.f32 %v2839_v16, %v2861_v20 }
 0xba1   :  { %v2871_v44 = vmul.f32 %v2866_v53, %v2866_v53 }
 0xba3   :  { %v2855_v47 = vpop.xlane.xlu1 %2854  ;;  %v2880_v21 = vsel %vm190_vm3, %v2871_v44, 0.0 }
 0xba4   :  { %v2862_v5 = vmul.f32 0.03125, %v2855_v47  ;;  %2881 = vadd.xlane.f32.xlu1 %v2880_v21 }
 0xba6   :  { %v2867_v27 = vsub.f32 %v2840_v19, %v2862_v5 }
 0xba8   :  { %v2872_v26 = vmul.f32 %v2867_v27, %v2867_v27 }
 0xbaa   :  { %v2858_v31 = vpop.xlane.xlu0 %2857  ;;  %v2883_v49 = vsel %vm190_vm3, %v2872_v26, 0.0 }
 0xbab   :  { %v2863_v37 = vmul.f32 0.03125, %v2858_v31  ;;  %2884 = vadd.xlane.f32.xlu0 %v2883_v49 }
 0xbad   :  { %v2868_v40 = vsub.f32 %v2841_v42, %v2863_v37  ;;  %v2876_v58 = vpop.xlane.xlu1 %2875 }
 0xbae   :  { %v2889_v7 = vmul.f32 0.03125, %v2876_v58 }
 0xbaf   :  { %v2873_v52 = vmul.f32 %v2868_v40, %v2868_v40 }
 0xbb0   :  { %v2894_v13 = vadd.f32 1e-05, %v2889_v7 }
 0xbb1   :  { %v2886_v34 = vsel %vm203_vm5, %v2873_v52, 0.0 }
 0xbb2   :  { %6619 = vrsqrt.f32 %v2894_v13  ;;  %v2879_v59 = vpop.xlane.xlu0 %2878  ;;  %2887 = vadd.xlane.f32.xlu1 %v2886_v34 }
 0xbb3   :  { %v2890_v62 = vmul.f32 0.03125, %v2879_v59 }
 0xbb5   :  { %v2895_v4 = vadd.f32 1e-05, %v2890_v62 }
 0xbb7   :  { %6621 = vrsqrt.f32 %v2895_v4 }
 0xbbf   :  { %v6620_v8 = vpop.eup %6619 }
 0xbc0   :  { %v2904_v28 = vmul.f32 %v6620_v8, %v2864_v29 }
 0xbc2   :  { %v2913_v3 = vmul.f32 %v5474_v6, %v2904_v28 }
 0xbc4   :  { %v6622_v22 = vpop.eup %6621  ;;  %v7953_v17 = vadd.f32 %v5475_v57, %v2913_v3 }
 0xbc5   :  { %v2905_v63 = vmul.f32 %v6622_v22, %v2865_v46 }
 0xbc6   :  { %6222 = vmatmul.mubr.msk.f32.vlgmr.msra.gmra.mxu0 %vm190_vm3, %v7953_v17 }
 0xbc7   :  { %6224 = vmatprep.mubr.msk.f32.mxu0 %vm6757_vm0, %v6756_v1  ;;  %v2914_v24 = vmul.f32 %v5474_v6, %v2905_v63 }
 0xbc9   :  { %v2923_v0 = vadd.f32 %v5475_v57, %v2914_v24 }
 0xbcb   :  { %6225 = vmatmul.mubr.msk.f32.gmra.mxu0 %vm190_vm3, %v2923_v0 }
 0xbcc   :  { %6227 = vmatprep.mubr.msk.f32.mxu0 %vm6757_vm0, %v6756_v1 }
 0xc2d   :  { %v2882_v2 = vpop.xlane.xlu1 %2881 }
 0xc2e   :  { %v2891_v12 = vmul.f32 0.03125, %v2882_v2 }
 0xc30   :  { %v2896_v50 = vadd.f32 1e-05, %v2891_v12 }
 0xc32   :  { %6623 = vrsqrt.f32 %v2896_v50 }
 0xc34   :  { %v2885_v43 = vpop.xlane.xlu0 %2884 }
 0xc35   :  { %v2892_v15 = vmul.f32 0.03125, %v2885_v43 }
 0xc37   :  { %v2897_v10 = vadd.f32 1e-05, %v2892_v15 }
 0xc39   :  { %6625 = vrsqrt.f32 %v2897_v10 }
 0xc3b   :  { %v2888_v16 = vpop.xlane.xlu1 %2887 }
 0xc3c   :  { %v2893_v54 = vmul.f32 0.03125, %v2888_v16 }
 0xc3e   :  { %v2898_v30 = vadd.f32 1e-05, %v2893_v54 }
 0xc3f   :  { %v6624_v41 = vpop.eup %6623 }
 0xc40   :  { %6627 = vrsqrt.f32 %v2898_v30  ;;  %v2906_v39 = vmul.f32 %v6624_v41, %v2866_v53 }
 0xc42   :  { %v2915_v19 = vmul.f32 %v5474_v6, %v2906_v39 }
 0xc44   :  { %v7962_v38 = vadd.f32 %v5475_v57, %v2915_v19 }
 0xc46   :  { %v6626_v14 = vpop.eup %6625  ;;  %6228 = vmatmul.mubr.msk.f32.gmra.mxu0 %vm190_vm3, %v7962_v38 }
 0xc47   :  { %6230 = vmatprep.mubr.msk.f32.mxu0 %vm6757_vm0, %v6756_v1  ;;  %v2907_v9 = vmul.f32 %v6626_v14, %v2867_v27 }
 0xc49   :  { %v2916_v32 = vmul.f32 %v5474_v6, %v2907_v9 }
 0xc4b   :  { %v2925_v23 = vadd.f32 %v5475_v57, %v2916_v32 }
 0xc4d   :  { %v6628_v60 = vpop.eup %6627  ;;  %6231 = vmatmul.mubr.msk.f32.gmra.mxu0 %vm190_vm3, %v2925_v23 }
 0xc4e   :  { %6233 = vmatprep.mubr.msk.f32.mxu0 %vm6757_vm0, %v6756_v1  ;;  %v2908_v42 = vmul.f32 %v6628_v60, %v2868_v40 }
 0xc50   :  { %v2917_v29 = vmul.f32 %v5474_v6, %v2908_v42 }
 0xc52   :  { %v2926_v35 = vadd.f32 %v5475_v57, %v2917_v29 }
 0xc54   :  { %6234 = vmatmul.mubr.msk.f32.gmra.mxu0 %vm190_vm3, %v2926_v35 }
 0xc55   :  { %6257 = vmatprep.mubr.msk.f32.mxu0 %vm6757_vm0, %v6756_v1 }
 0xc86   :  { %v3026_v36 = vpop.f32.mrf.mxu0 }
 0xc87   :  { %3050 = vst.msk [vmem:[#allocation2] sm:$0xff] %vm397_vm6, %v3026_v36 }
 0xc88   :  { %v6223_v61 = vpop.f32.mrf.mxu0 }
 0xc8b   :  { %v3031_v25 = vpop.f32.mrf.mxu0 }
 0xc8c   :  { %3051 = vst.msk [vmem:[#allocation2 + $0x8] sm:$0xff] %vm397_vm6, %v3031_v25 }
 0xc8d   :  { %v6226_v33 = vpop.f32.mrf.mxu0 }
 0xc8e   :  { %v7980_v55 = vld [vmem:[#allocation2] sm:$0xff] }
 0xc93   :  { %v7976_v46 = vld [vmem:[#allocation2 + $0x8] sm:$0xff] }
 0xc94   :  { %3066 = vrot.lane.b32.xlu1 %v7976_v46, %s6758_s24 }
 0xc98   :  { %3064 = vrot.lane.b32.xlu1 %v7980_v55, %s6758_s24 }
 0xd06   :  { %v3036_v11 = vpop.f32.mrf.mxu0  ;;  %v8033_v26 = vpop.permute.xlu1 %3066 }
 0xd07   :  { %3052 = vst.msk [vmem:[#allocation2 + $0x10] sm:$0xff] %vm397_vm6, %v3036_v11 }
 0xd08   :  { %v6229_v56 = vpop.f32.mrf.mxu0 }
 0xd0a   :  { %v8035_v31 = vpop.permute.xlu1 %3064 }
 0xd0d   :  { %v3041_v18 = vpop.f32.mrf.mxu0 }
 0xd0e   :  { %3053 = vst.msk [vmem:[#allocation2 + $0x18] sm:$0xff] %vm397_vm6, %v3041_v18  ;;  %v7986_v20 = vld [vmem:[#allocation2 + $0x10] sm:$0x1] }
 0xd0f   :  { %3080 = vrot.lane.b32.xlu1 %v7986_v20, %s6760_s26  ;;  %3068 = vrot.lane.b32.xlu0 %v7986_v20, %s6758_s24  ;;  %v6232_v53 = vpop.f32.mrf.mxu0 }
 0xd13   :  { %3078 = vrot.lane.b32.xlu1 %v7976_v46, %s6760_s26  ;;  %3074 = vrot.lane.b32.xlu0 %v7986_v20, %s6759_s25 }
 0xd14   :  { %v3046_v44 = vpop.f32.mrf.mxu0 }
 0xd15   :  { %3054 = vst.msk [vmem:[#allocation2 + $0x20] sm:$0x3] %vm402_vm7, %v3046_v44  ;;  %v8013_v27 = vld [vmem:[#allocation2 + $0x11] sm:$0xff] }
 0xd16   :  { %v6235_v47 = vpop.f32.mrf.mxu0 }
 0xd17   :  { %3076 = vrot.lane.b32.xlu1 %v7980_v55, %s6760_s26  ;;  %3072 = vrot.lane.b32.xlu0 %v7976_v46, %s6759_s25 }
 0xd1b   :  { %3070 = vrot.lane.b32.xlu0 %v7980_v55, %s6759_s25 }
 0xd1c   :  { %v8003_v21 = vld [vmem:[#allocation2 + $0x19] sm:$0xff]  ;;  %v8007_v5 = vld [vmem:[#allocation2 + $0x21] sm:$0x1] }
 0xd1d   :  { %3087 = vrot.lane.b32.xlu1 %v8003_v21, %s6758_s24 }
 0xd1f   :  { %3089 = vrot.lane.b32.xlu0 %v8007_v5, %s6758_s24 }
 0xd21   :  { %3095 = vrot.lane.b32.xlu1 %v8007_v5, %s6759_s25 }
 0xd23   :  { %3085 = vrot.lane.b32.xlu0 %v8013_v27, %s6758_s24 }
 0xd25   :  { %3093 = vrot.lane.b32.xlu1 %v8003_v21, %s6759_s25 }
 0xd27   :  { %3101 = vrot.lane.b32.xlu0 %v8007_v5, %s6760_s26 }
 0xd29   :  { %3091 = vrot.lane.b32.xlu1 %v8013_v27, %s6759_s25 }
 0xd2b   :  { %3099 = vrot.lane.b32.xlu0 %v8003_v21, %s6760_s26 }
 0xd2d   :  { %3107 = vrot.lane.b32.xlu1 %v7986_v20, %s6761_s27 }
 0xd2f   :  { %3097 = vrot.lane.b32.xlu0 %v8013_v27, %s6760_s26 }
 0xd31   :  { %3105 = vrot.lane.b32.xlu1 %v7976_v46, %s6761_s27 }
 0xd35   :  { %3103 = vrot.lane.b32.xlu1 %v7980_v55, %s6761_s27 }
 0xd81   :  { %v8037_v49 = vpop.permute.xlu1 %3080  ;;  %v8039_v37 = vpop.permute.xlu0 %3068 }
 0xd82   :  { %3205 = vrot.lane.b32.xlu0 %v8039_v37, %s6761_s27 }
 0xd85   :  { %v8043_v40 = vpop.permute.xlu1 %3078  ;;  %v8045_v58 = vpop.permute.xlu0 %3074 }
 0xd86   :  { %3203 = vrot.lane.b32.xlu0 %v8033_v26, %s6761_s27  ;;  %3303 = vrot.lane.b32.xlu1 %v8045_v58, %s6761_s27 }
 0xd89   :  { %v8051_v7 = vpop.permute.xlu0 %3072  ;;  %v8057_v52 = vpop.permute.xlu1 %3076 }
 0xd8a   :  { %3201 = vrot.lane.b32.xlu0 %v8035_v31, %s6761_s27  ;;  %3301 = vrot.lane.b32.xlu1 %v8051_v7, %s6761_s27 }
 0xd8d   :  { %v8059_v13 = vpop.permute.xlu0 %3070 }
 0xd8e   :  { %3401 = vrot.lane.b32.xlu0 %v8037_v49, %s6761_s27  ;;  %3299 = vrot.lane.b32.xlu1 %v8059_v13, %s6761_s27 }
 0xd8f   :  { %v8065_v34 = vpop.permute.xlu1 %3087 }
 0xd91   :  { %v8073_v62 = vpop.permute.xlu0 %3089 }
 0xd92   :  { %3399 = vrot.lane.b32.xlu0 %v8043_v40, %s6761_s27  ;;  %3499 = vrot.lane.b32.xlu1 %v8007_v5, %s6761_s27 }
 0xd93   :  { %v8071_v59 = vpop.permute.xlu1 %3095 }
 0xd95   :  { %v8085_v8 = vpop.permute.xlu0 %3085 }
 0xd96   :  { %3397 = vrot.lane.b32.xlu0 %v8057_v52, %s6761_s27  ;;  %3497 = vrot.lane.b32.xlu1 %v8003_v21, %s6761_s27 }
 0xd97   :  { %v8079_v4 = vpop.permute.xlu1 %3093 }
 0xd99   :  { %v8094_v57 = vpop.permute.xlu0 %3101 }
 0xd9a   :  { %3597 = vrot.lane.b32.xlu0 %v8073_v62, %s6761_s27  ;;  %3495 = vrot.lane.b32.xlu1 %v8013_v27, %s6761_s27 }
 0xd9b   :  { %v8087_v6 = vpop.permute.xlu1 %3091 }
 0xd9d   :  { %v8107_v22 = vpop.permute.xlu0 %3099 }
 0xd9e   :  { %3595 = vrot.lane.b32.xlu0 %v8065_v34, %s6761_s27  ;;  %3695 = vrot.lane.b32.xlu1 %v8071_v59, %s6761_s27 }
 0xd9f   :  { %v3108_v28 = vpop.permute.xlu1 %3107 }
 0xda0   :  { %6237 = vmatpush3.xpose.msk.msra.mxu1 %vm458_vm8, %v3108_v28 }
 0xda1   :  { %6238 = vmatprep.subr.mxu1 %v6756_v1  ;;  %v8119_v24 = vpop.permute.xlu0 %3097 }
 0xda2   :  { %3593 = vrot.lane.b32.xlu0 %v8085_v8, %s6761_s27  ;;  %3693 = vrot.lane.b32.xlu1 %v8079_v4, %s6761_s27 }
 0xda3   :  { %v3106_v3 = vpop.permute.xlu1 %3105 }
 0xda4   :  { %6239 = vmatpush3.xpose.msk.msra.mxu1 %vm458_vm8, %v3106_v3 }
 0xda5   :  { %6240 = vmatprep.subr.mxu1 %v6756_v1 }
 0xda6   :  { %3793 = vrot.lane.b32.xlu0 %v8094_v57, %s6761_s27  ;;  %3691 = vrot.lane.b32.xlu1 %v8087_v6, %s6761_s27 }
 0xda7   :  { %v3104_v63 = vpop.permute.xlu1 %3103 }
 0xda8   :  { %6241 = vmatpush3.xpose.msk.msra.mxu1 %vm458_vm8, %v3104_v63 }
 0xda9   :  { %6266 = vmatprep.subr.mxu1 %v6756_v1 }
 0xdaa   :  { %3791 = vrot.lane.b32.xlu0 %v8107_v22, %s6761_s27  ;;  %4180 = vrot.lane.b32.xlu1 %v7986_v20, %s6762_s0 }
 0xdab   :  { %6243 = vmatmul.mubr.msk.f32.vlgmr.msra.gmra.mxu1 %vm458_vm8, %v7980_v55 }
 0xdac   :  { %6245 = vmatprep.mubr.msk.f32.mxu1 %vm6757_vm0, %v6756_v1 }
 0xdae   :  { %3789 = vrot.lane.b32.xlu0 %v8119_v24, %s6761_s27  ;;  %4176 = vrot.lane.b32.xlu1 %v7980_v55, %s6762_s0 }
 0xdaf   :  { %6246 = vmatmul.mubr.msk.f32.gmra.mxu1 %vm458_vm8, %v7976_v46 }
 0xdb0   :  { %6248 = vmatprep.mubr.msk.f32.mxu1 %vm6757_vm0, %v6756_v1 }
 0xdb2   :  { %4178 = vrot.lane.b32.xlu0 %v7976_v46, %s6762_s0  ;;  %4263 = vrot.lane.b32.xlu1 %v8039_v37, %s6762_s0 }
 0xdb3   :  { %6249 = vmatmul.mubr.msk.f32.gmra.mxu1 %vm458_vm8, %v7986_v20 }
 0xdb4   :  { %6272 = vmatprep.mubr.msk.f32.mxu1 %vm6757_vm0, %v6756_v1 }
 0xdb6   :  { %4259 = vrot.lane.b32.xlu0 %v8035_v31, %s6762_s0  ;;  %4261 = vrot.lane.b32.xlu1 %v8033_v26, %s6762_s0 }
 0xdba   :  { %4429 = vrot.lane.b32.xlu0 %v8037_v49, %s6762_s0  ;;  %4346 = vrot.lane.b32.xlu1 %v8045_v58, %s6762_s0 }
 0xdf4   :  { %v3206_v0 = vpop.permute.xlu0 %3205 }
 0xdf5   :  { %6252 = vmatpush3.xpose.msk.msra.mxu0 %vm458_vm8, %v3206_v0 }
 0xdf6   :  { %6253 = vmatprep.subr.mxu0 %v6756_v1 }
 0xdf8   :  { %v3204_v2 = vpop.permute.xlu0 %3203  ;;  %v3304_v12 = vpop.permute.xlu1 %3303 }
 0xdf9   :  { %6254 = vmatpush3.xpose.msk.msra.mxu0 %vm458_vm8, %v3204_v2  ;;  %6267 = vmatpush3.xpose.msk.msra.mxu1 %vm458_vm8, %v3304_v12 }
 0xdfa   :  { %6255 = vmatprep.subr.mxu0 %v6756_v1  ;;  %6268 = vmatprep.subr.mxu1 %v6756_v1 }
 0xdfc   :  { %v3202_v50 = vpop.permute.xlu0 %3201  ;;  %v3302_v43 = vpop.permute.xlu1 %3301 }
 0xdfd   :  { %6256 = vmatpush3.xpose.msk.msra.mxu0 %vm458_vm8, %v3202_v50  ;;  %6269 = vmatpush3.xpose.msk.msra.mxu1 %vm458_vm8, %v3302_v43 }
 0xdfe   :  { %6281 = vmatprep.subr.mxu0 %v6756_v1  ;;  %6270 = vmatprep.subr.mxu1 %v6756_v1 }
 0xe00   :  { %6258 = vmatmul.mubr.msk.f32.vlgmr.msra.gmra.mxu0 %vm458_vm8, %v8035_v31  ;;  %v3402_v15 = vpop.permute.xlu0 %3401  ;;  %v3300_v10 = vpop.permute.xlu1 %3299 }
 0xe01   :  { %6271 = vmatpush3.xpose.msk.msra.mxu1 %vm458_vm8, %v3300_v10  ;;  %6282 = vmatpush3.xpose.msk.msra.mxu0 %vm458_vm8, %v3402_v15 }
 0xe02   :  { %6260 = vmatprep.mubr.msk.f32.mxu0 %vm6757_vm0, %v6756_v1  ;;  %6283 = vmatprep.subr.mxu0 %v6756_v1 }
 0xe03   :  { %6296 = vmatprep.subr.mxu1 %v6756_v1 }
 0xe04   :  { %6261 = vmatmul.mubr.msk.f32.gmra.mxu0 %vm458_vm8, %v8033_v26  ;;  %v3400_v16 = vpop.permute.xlu0 %3399  ;;  %6273 = vmatmul.mubr.msk.f32.vlgmr.msra.gmra.mxu1 %vm458_vm8, %v8059_v13  ;;  %v3500_v54 = vpop.permute.xlu1 %3499 }
 0xe05   :  { %6284 = vmatpush3.xpose.msk.msra.mxu0 %vm458_vm8, %v3400_v16  ;;  %6297 = vmatpush3.xpose.msk.msra.mxu1 %vm458_vm8, %v3500_v54 }
 0xe06   :  { %6263 = vmatprep.mubr.msk.f32.mxu0 %vm6757_vm0, %v6756_v1  ;;  %6275 = vmatprep.mubr.msk.f32.mxu1 %vm6757_vm0, %v6756_v1 }
 0xe07   :  { %6285 = vmatprep.subr.mxu0 %v6756_v1  ;;  %6298 = vmatprep.subr.mxu1 %v6756_v1 }
 0xe08   :  { %6264 = vmatmul.mubr.msk.f32.gmra.mxu0 %vm458_vm8, %v8039_v37  ;;  %v3398_v30 = vpop.permute.xlu0 %3397  ;;  %6276 = vmatmul.mubr.msk.f32.gmra.mxu1 %vm458_vm8, %v8051_v7  ;;  %v3498_v41 = vpop.permute.xlu1 %3497 }
 0xe09   :  { %6286 = vmatpush3.xpose.msk.msra.mxu0 %vm458_vm8, %v3398_v30  ;;  %6299 = vmatpush3.xpose.msk.msra.mxu1 %vm458_vm8, %v3498_v41 }
 0xe0a   :  { %6278 = vmatprep.mubr.msk.f32.mxu1 %vm6757_vm0, %v6756_v1  ;;  %6287 = vmatprep.mubr.msk.f32.mxu0 %vm6757_vm0, %v6756_v1 }
 0xe0b   :  { %6311 = vmatprep.subr.mxu0 %v6756_v1  ;;  %6300 = vmatprep.subr.mxu1 %v6756_v1 }
 0xe0c   :  { %6288 = vmatmul.mubr.msk.f32.vlgmr.msra.gmra.mxu0 %vm458_vm8, %v8057_v52  ;;  %v3598_v39 = vpop.permute.xlu0 %3597  ;;  %6279 = vmatmul.mubr.msk.f32.gmra.mxu1 %vm458_vm8, %v8045_v58  ;;  %v3496_v19 = vpop.permute.xlu1 %3495 }
 0xe0d   :  { %6301 = vmatpush3.xpose.msk.msra.mxu1 %vm458_vm8, %v3496_v19  ;;  %6312 = vmatpush3.xpose.msk.msra.mxu0 %vm458_vm8, %v3598_v39 }
 0xe0e   :  { %6290 = vmatprep.mubr.msk.f32.mxu0 %vm6757_vm0, %v6756_v1  ;;  %6302 = vmatprep.mubr.msk.f32.mxu1 %vm6757_vm0, %v6756_v1 }
 0xe0f   :  { %6313 = vmatprep.subr.mxu0 %v6756_v1  ;;  %6326 = vmatprep.subr.mxu1 %v6756_v1 }
 0xe10   :  { %6291 = vmatmul.mubr.msk.f32.gmra.mxu0 %vm458_vm8, %v8043_v40  ;;  %v3596_v14 = vpop.permute.xlu0 %3595  ;;  %6303 = vmatmul.mubr.msk.f32.vlgmr.msra.gmra.mxu1 %vm458_vm8, %v8013_v27  ;;  %v3696_v9 = vpop.permute.xlu1 %3695 }
 0xe11   :  { %6314 = vmatpush3.xpose.msk.msra.mxu0 %vm458_vm8, %v3596_v14  ;;  %6327 = vmatpush3.xpose.msk.msra.mxu1 %vm458_vm8, %v3696_v9 }
 0xe12   :  { %6293 = vmatprep.mubr.msk.f32.mxu0 %vm6757_vm0, %v6756_v1  ;;  %6305 = vmatprep.mubr.msk.f32.mxu1 %vm6757_vm0, %v6756_v1 }
 0xe13   :  { %6315 = vmatprep.subr.mxu0 %v6756_v1  ;;  %6328 = vmatprep.subr.mxu1 %v6756_v1 }
 0xe14   :  { %6294 = vmatmul.mubr.msk.f32.gmra.mxu0 %vm458_vm8, %v8037_v49  ;;  %v3594_v32 = vpop.permute.xlu0 %3593  ;;  %6306 = vmatmul.mubr.msk.f32.gmra.mxu1 %vm458_vm8, %v8003_v21  ;;  %v3694_v23 = vpop.permute.xlu1 %3693 }
 0xe15   :  { %6316 = vmatpush3.xpose.msk.msra.mxu0 %vm458_vm8, %v3594_v32  ;;  %6329 = vmatpush3.xpose.msk.msra.mxu1 %vm458_vm8, %v3694_v23 }
 0xe16   :  { %6308 = vmatprep.mubr.msk.f32.mxu1 %vm6757_vm0, %v6756_v1  ;;  %6317 = vmatprep.mubr.msk.f32.mxu0 %vm6757_vm0, %v6756_v1 }
 0xe17   :  { %6341 = vmatprep.subr.mxu0 %v6756_v1  ;;  %6330 = vmatprep.subr.mxu1 %v6756_v1 }
 0xe18   :  { %6318 = vmatmul.mubr.msk.f32.vlgmr.msra.gmra.mxu0 %vm458_vm8, %v8085_v8  ;;  %v3794_v60 = vpop.permute.xlu0 %3793  ;;  %6309 = vmatmul.mubr.msk.f32.gmra.mxu1 %vm458_vm8, %v8007_v5  ;;  %v3692_v42 = vpop.permute.xlu1 %3691 }
 0xe19   :  { %6331 = vmatpush3.xpose.msk.msra.mxu1 %vm458_vm8, %v3692_v42  ;;  %6342 = vmatpush3.xpose.msk.msra.mxu0 %vm458_vm8, %v3794_v60 }
 0xe1a   :  { %6320 = vmatprep.mubr.msk.f32.mxu0 %vm6757_vm0, %v6756_v1  ;;  %6332 = vmatprep.mubr.msk.f32.mxu1 %vm6757_vm0, %v6756_v1 }
 0xe1b   :  { %6343 = vmatprep.subr.mxu0 %v6756_v1  ;;  %6356 = vmatprep.subr.mxu1 %v6756_v1 }
 0xe1c   :  { %6321 = vmatmul.mubr.msk.f32.gmra.mxu0 %vm458_vm8, %v8065_v34  ;;  %v3792_v29 = vpop.permute.xlu0 %3791  ;;  %6333 = vmatmul.mubr.msk.f32.vlgmr.msra.gmra.mxu1 %vm458_vm8, %v8087_v6  ;;  %v4181_v35 = vpop.permute.xlu1 %4180 }
 0xe1d   :  { %6344 = vmatpush3.xpose.msk.msra.mxu0 %vm458_vm8, %v3792_v29  ;;  %6357 = vmatpush3.msk.msra.mxu1 %vm1520_vm9, %v4181_v35 }
 0xe1e   :  { %6323 = vmatprep.mubr.msk.f32.mxu0 %vm6757_vm0, %v6756_v1  ;;  %6335 = vmatprep.mubr.msk.f32.mxu1 %vm6757_vm0, %v6756_v1 }
 0xe1f   :  { %6345 = vmatprep.subr.mxu0 %v6756_v1  ;;  %6358 = vmatprep.subr.mxu1 %v6756_v1 }
 0xe20   :  { %6324 = vmatmul.mubr.msk.f32.gmra.mxu0 %vm458_vm8, %v8073_v62  ;;  %v3790_v36 = vpop.permute.xlu0 %3789  ;;  %6336 = vmatmul.mubr.msk.f32.gmra.mxu1 %vm458_vm8, %v8079_v4  ;;  %v4177_v61 = vpop.permute.xlu1 %4176 }
 0xe21   :  { %6346 = vmatpush3.xpose.msk.msra.mxu0 %vm458_vm8, %v3790_v36  ;;  %6338 = vmatprep.mubr.msk.f32.mxu1 %vm6757_vm0, %v6756_v1 }
 0xe22   :  { %6347 = vmatprep.mubr.msk.f32.mxu0 %vm6757_vm0, %v6756_v1  ;;  %6374 = vmatprep.subr.mxu0 %v6756_v1 }
 0xe24   :  { %6348 = vmatmul.mubr.msk.f32.vlgmr.msra.gmra.mxu0 %vm458_vm8, %v8119_v24  ;;  %v4179_v25 = vpop.permute.xlu0 %4178  ;;  %6339 = vmatmul.mubr.msk.f32.gmra.mxu1 %vm458_vm8, %v8071_v59  ;;  %v8261_v33 = vpop.permute.xlu1 %4263 }
 0xe25   :  { %6359 = vmatpush3.msra.mxu1 %v4179_v25  ;;  %6350 = vmatprep.mubr.msk.f32.mxu0 %vm6757_vm0, %v6756_v1 }
 0xe26   :  { %6360 = vmatprep.subr.mxu1 %v6756_v1  ;;  %6362 = vmatprep.mubr.msk.f32.mxu1 %vm6757_vm0, %v6756_v1 }
 0xe27   :  { %6361 = vmatpush3.msra.mxu1 %v4177_v61 }
 0xe28   :  { %6351 = vmatmul.mubr.msk.f32.gmra.mxu0 %vm458_vm8, %v8107_v22  ;;  %v8270_v46 = vpop.permute.xlu1 %4261  ;;  %6365 = vmatprep.subr.mxu1 %v6756_v1 }
 0xe29   :  { %6353 = vmatprep.mubr.msk.f32.mxu0 %vm6757_vm0, %v6756_v1 }
 0xe2c   :  { %6354 = vmatmul.mubr.msk.f32.gmra.mxu0 %vm458_vm8, %v8094_v57  ;;  %v4347_v55 = vpop.permute.xlu1 %4346 }
 0xe2d   :  { %6375 = vmatpush3.msk.msra.mxu0 %vm1520_vm9, %v4347_v55  ;;  %6380 = vmatprep.mubr.msk.f32.mxu0 %vm6757_vm0, %v6756_v1 }
 0xe2e   :  { %6376 = vmatprep.subr.mxu0 %v6756_v1 }
 0xe6b   :  { %v8281_v11 = vpop.f32.mrf.mxu1 }
 0xe6c   :  { %v3887_v56 = vsel %vm1237_vm10, %v8281_v11, -inf }
 0xe6d   :  { %3888 = vmax.xlane.f32.xlu1 %v3887_v56  ;;  %v6244_v18 = vpop.f32.mrf.mxu1 }
 0xe6f   :  { %v8285_v20 = vpop.f32.mrf.mxu1 }
 0xe71   :  { %v6247_v53 = vpop.f32.mrf.mxu1 }
 0xe73   :  { %v8287_v44 = vpop.f32.mrf.mxu1 }
 0xe75   :  { %v6250_v47 = vpop.f32.mrf.mxu1 }
 0xec0   :  { %v8289_v26 = vpop.f32.mrf.mxu0 }
 0xec1   :  { %v3896_v31 = vsel %vm1237_vm10, %v8289_v26, -inf }
 0xec2   :  { %3897 = vmax.xlane.f32.xlu0 %v3896_v31  ;;  %v6259_v49 = vpop.f32.mrf.mxu0 }
 0xec4   :  { %v8293_v37 = vpop.f32.mrf.mxu0  ;;  %v8295_v58 = vpop.f32.mrf.mxu1 }
 0xec5   :  { %v3905_v28 = vsel %vm1237_vm10, %v8295_v58, -inf }
 0xec6   :  { %v6274_v3 = vpop.f32.mrf.mxu1  ;;  %3906 = vmax.xlane.f32.xlu0 %v3905_v28  ;;  %v6262_v63 = vpop.f32.mrf.mxu0 }
 0xec8   :  { %v8299_v0 = vpop.f32.mrf.mxu0  ;;  %v8301_v2 = vpop.f32.mrf.mxu1 }
 0xeca   :  { %v6265_v12 = vpop.f32.mrf.mxu0  ;;  %v6277_v50 = vpop.f32.mrf.mxu1 }
 0xecc   :  { %v8303_v43 = vpop.f32.mrf.mxu1  ;;  %v8305_v15 = vpop.f32.mrf.mxu0 }
 0xecd   :  { %v3914_v10 = vsel %vm1237_vm10, %v8305_v15, -inf }
 0xece   :  { %v6280_v16 = vpop.f32.mrf.mxu1  ;;  %3915 = vmax.xlane.f32.xlu1 %v3914_v10  ;;  %v6289_v54 = vpop.f32.mrf.mxu0 }
 0xed0   :  { %v8309_v30 = vpop.f32.mrf.mxu0  ;;  %v8311_v41 = vpop.f32.mrf.mxu1 }
 0xed2   :  { %v6292_v39 = vpop.f32.mrf.mxu0  ;;  %v6304_v19 = vpop.f32.mrf.mxu1 }
 0xed4   :  { %v8313_v14 = vpop.f32.mrf.mxu0  ;;  %v8315_v9 = vpop.f32.mrf.mxu1 }
 0xed6   :  { %v6295_v32 = vpop.f32.mrf.mxu0  ;;  %v6307_v23 = vpop.f32.mrf.mxu1 }
 0xed8   :  { %v8317_v60 = vpop.f32.mrf.mxu1  ;;  %v8319_v42 = vpop.f32.mrf.mxu0 }
 0xed9   :  { %v3932_v16 = vsel %vm1237_vm10, %v8319_v42, -inf }
 0xeda   :  { %v6310_v29 = vpop.f32.mrf.mxu1  ;;  %v6319_v35 = vpop.f32.mrf.mxu0 }
 0xedc   :  { %v8321_v36 = vpop.f32.mrf.mxu1  ;;  %4427 = vrot.lane.b32.xlu0 %v8043_v40, %s6762_s0  ;;  %v8325_v61 = vpop.f32.mrf.mxu0 }
 0xedd   :  { %v3941_v10 = vsel %vm1237_vm10, %v8321_v36, -inf }
 0xede   :  { %v6322_v25 = vpop.f32.mrf.mxu0  ;;  %v6334_v55 = vpop.f32.mrf.mxu1 }
 0xedf   :  { %4344 = vrot.lane.b32.xlu1 %v8051_v7, %s6762_s0  ;;  %v3923_v7 = vsel %vm1237_vm10, %v8311_v41, -inf }
 0xee0   :  { %v8329_v56 = vpop.f32.mrf.mxu0  ;;  %v8331_v18 = vpop.f32.mrf.mxu1 }
 0xee2   :  { %v6325_v53 = vpop.f32.mrf.mxu0  ;;  %v6337_v47 = vpop.f32.mrf.mxu1 }
 0xee4   :  { %v8333_v31 = vpop.f32.mrf.mxu1  ;;  %v8335_v49 = vpop.f32.mrf.mxu0 }
 0xee5   :  { %v3950_v54 = vsel %vm1237_vm10, %v8335_v49, -inf }
 0xee6   :  { %v6340_v28 = vpop.f32.mrf.mxu1  ;;  %v6349_v3 = vpop.f32.mrf.mxu0 }
 0xee8   :  { %v8337_v40 = vpop.f32.mrf.mxu0 }
 0xeea   :  { %v6352_v63 = vpop.f32.mrf.mxu0 }
 0xeec   :  { %v8339_v12 = vpop.f32.mrf.mxu0 }
 0xeee   :  { %v6355_v50 = vpop.f32.mrf.mxu0 }
 0xefb   :  { %3924 = vmax.xlane.f32.xlu0 %v3923_v7 }
 0xeff   :  { %3942 = vmax.xlane.f32.xlu0 %v3941_v10 }
 0xf03   :  { %3933 = vmax.xlane.f32.xlu1 %v3932_v16 }
 0xf07   :  { %3951 = vmax.xlane.f32.xlu1 %v3950_v54 }
 0xf15   :  { %4425 = vrot.lane.b32.xlu0 %v8057_v52, %s6762_s0  ;;  %v3889_v52 = vpop.xlane.xlu1 %3888 }
 0xf18   :  { %4342 = vrot.lane.b32.xlu1 %v8059_v13, %s6762_s0 }
 0xf19   :  { %4595 = vrot.lane.b32.xlu0 %v8073_v62, %s6762_s0 }
 0xf1c   :  { %4512 = vrot.lane.b32.xlu1 %v8007_v5, %s6762_s0  ;;  %v3959_v5 = vsub.f32 %v8281_v11, %v3889_v52 }
 0xf1d   :  { %4593 = vrot.lane.b32.xlu0 %v8065_v34, %s6762_s0  ;;  %v8374_v34 = vpop.permute.xlu0 %4259 }
 0xf1e   :  { %v3983_v13 = vmul.f32 1.442695, %v3959_v5 }
 0xf20   :  { %4510 = vrot.lane.b32.xlu1 %v8003_v21, %s6762_s0  ;;  %6629 = vpow2.f32 %v3983_v13 }
 0xf21   :  { %4591 = vrot.lane.b32.xlu0 %v8085_v8, %s6762_s0  ;;  %v8378_v62 = vpop.permute.xlu0 %4429 }
 0xf24   :  { %4508 = vrot.lane.b32.xlu1 %v8013_v27, %s6762_s0 }
 0xf25   :  { %4761 = vrot.lane.b32.xlu0 %v8094_v57, %s6762_s0 }
 0xf28   :  { %4678 = vrot.lane.b32.xlu1 %v8071_v59, %s6762_s0 }
 0xf2c   :  { %4676 = vrot.lane.b32.xlu1 %v8079_v4, %s6762_s0 }
 0xf2d   :  { %v8372_v21 = vpop.eup %6629 }
 0xf2e   :  { %v4031_v27 = vsel %vm1237_vm10, %v8372_v21, 0.0 }
 0xf44   :  { %4032 = vadd.xlane.f32.xlu0 %v4031_v27 }
 0xf4b   :  { %v3898_v8 = vpop.xlane.xlu0 %3897 }
 0xf4c   :  { %v3962_v59 = vsub.f32 %v8289_v26, %v3898_v8 }
 0xf4e   :  { %v3989_v57 = vmul.f32 1.442695, %v3962_v59 }
 0xf4f   :  { %v3907_v23 = vpop.xlane.xlu0 %3906 }
 0xf50   :  { %6631 = vpow2.f32 %v3989_v57  ;;  %v3965_v29 = vsub.f32 %v8295_v58, %v3907_v23 }
 0xf52   :  { %v3995_v35 = vmul.f32 1.442695, %v3965_v29 }
 0xf53   :  { %v8398_v53 = vpop.permute.xlu0 %4427 }
 0xf57   :  { %v3916_v11 = vpop.xlane.xlu1 %3915 }
 0xf58   :  { %v3968_v4 = vsub.f32 %v8305_v15, %v3916_v11 }
 0xf5a   :  { %v4001_v39 = vmul.f32 1.442695, %v3968_v4  ;;  %4759 = vrot.lane.b32.xlu0 %v8107_v22, %s6762_s0 }
 0xf5b   :  { %v4345_v19 = vpop.permute.xlu1 %4344 }
 0xf5c   :  { %6633 = vpow2.f32 %v4001_v39  ;;  %6377 = vmatpush3.msra.mxu0 %v4345_v19 }
 0xf5d   :  { %v8384_v32 = vpop.eup %6631  ;;  %6378 = vmatprep.subr.mxu0 %v6756_v1  ;;  %6635 = vpow2.f32 %v3995_v35 }
 0xf5e   :  { %v4040_v26 = vsel %vm1237_vm10, %v8384_v32, 0.0 }
 0xf5f   :  { %4041 = vadd.xlane.f32.xlu1 %v4040_v26 }
 0xf69   :  { %v8390_v15 = vpop.eup %6633 }
 0xf6a   :  { %v4058_v22 = vsel %vm1237_vm10, %v8390_v15, 0.0  ;;  %v8394_v25 = vpop.eup %6635 }
 0xf6b   :  { %4059 = vadd.xlane.f32.xlu1 %v4058_v22  ;;  %v4049_v55 = vsel %vm1237_vm10, %v8394_v25, 0.0 }
 0xf79   :  { %4050 = vadd.xlane.f32.xlu0 %v4049_v55 }
 0xf84   :  { %v3925_v47 = vpop.xlane.xlu0 %3924 }
 0xf85   :  { %v3971_v28 = vsub.f32 %v8311_v41, %v3925_v47 }
 0xf87   :  { %v4007_v58 = vmul.f32 1.442695, %v3971_v28 }
 0xf88   :  { %v3943_v3 = vpop.xlane.xlu0 %3942 }
 0xf89   :  { %6637 = vpow2.f32 %v4007_v58  ;;  %v3977_v63 = vsub.f32 %v8321_v36, %v3943_v3 }
 0xf8b   :  { %v4019_v50 = vmul.f32 1.442695, %v3977_v63 }
 0xf8c   :  { %v3934_v7 = vpop.xlane.xlu1 %3933  ;;  %v4426_v11 = vpop.permute.xlu0 %4425 }
 0xf8d   :  { %6639 = vpow2.f32 %v4019_v50  ;;  %v3974_v10 = vsub.f32 %v8319_v42, %v3934_v7 }
 0xf8f   :  { %v4013_v16 = vmul.f32 1.442695, %v3974_v10 }
 0xf90   :  { %v3952_v54 = vpop.xlane.xlu1 %3951  ;;  %v4596_v4 = vpop.permute.xlu0 %4595 }
 0xf91   :  { %6641 = vpow2.f32 %v4013_v16  ;;  %v3980_v52 = vsub.f32 %v8335_v49, %v3952_v54 }
 0xf93   :  { %v4025_v5 = vmul.f32 1.442695, %v3980_v52 }
 0xf94   :  { %v4343_v13 = vpop.permute.xlu1 %4342  ;;  %v4594_v39 = vpop.permute.xlu0 %4593 }
 0xf95   :  { %6643 = vpow2.f32 %v4025_v5  ;;  %6379 = vmatpush3.msra.mxu0 %v4343_v13 }
 0xf96   :  { %v8404_v41 = vpop.eup %6637  ;;  %6392 = vmatprep.subr.mxu0 %v6756_v1 }
 0xf97   :  { %v4067_v36 = vsel %vm1237_vm10, %v8404_v41, 0.0 }
 0xf98   :  { %4068 = vadd.xlane.f32.xlu0 %v4067_v36  ;;  %v4592_v19 = vpop.permute.xlu0 %4591  ;;  %v4513_v26 = vpop.permute.xlu1 %4512 }
 0xf9a   :  { %v8409_v27 = vpop.eup %6639 }
 0xf9b   :  { %v4085_v42 = vsel %vm1237_vm10, %v8409_v27, 0.0 }
 0xf9c   :  { %4086 = vadd.xlane.f32.xlu0 %v4085_v42  ;;  %v8431_v23 = vpop.permute.xlu0 %4761 }
 0xf9e   :  { %v8413_v8 = vpop.eup %6641 }
 0xf9f   :  { %v4076_v49 = vsel %vm1237_vm10, %v8413_v8, 0.0 }
 0xfa0   :  { %4077 = vadd.xlane.f32.xlu1 %v4076_v49 }
 0xfa2   :  { %v8417_v59 = vpop.eup %6643 }
 0xfa3   :  { %v4094_v57 = vsel %vm1237_vm10, %v8417_v59, 0.0 }
 0xfa4   :  { %4095 = vadd.xlane.f32.xlu0 %v4094_v57 }
 0xfb1   :  { %4674 = vrot.lane.b32.xlu1 %v8087_v6, %s6762_s0  ;;  %v4511_v6 = vpop.permute.xlu1 %4510 }
 0xfb5   :  { %4889 = vrot.lane.b32.xlu1 %v7922_v45, %s6763_s30  ;;  %v4509_v35 = vpop.permute.xlu1 %4508 }
 0xfb9   :  { %v8434_v55 = vpop.permute.xlu1 %4678 }
 0xfba   :  { %4757 = vrot.lane.b32.xlu0 %v8119_v24, %s6762_s0 }
 0xfbe   :  { %4887 = vrot.lane.b32.xlu0 %v7928_v48, %s6763_s30  ;;  %v4677_v48 = vpop.permute.xlu1 %4676 }
 0xfc2   :  { %4885 = vrot.lane.b32.xlu0 %v7934_v51, %s6763_s30 }
 0xfcd   :  { %v4033_v29 = vpop.xlane.xlu0 %4032 }
 0xfce   :  { %6645 = vrcp.f32 %v4033_v29 }
 0xfdb   :  { %v6646_v45 = vpop.eup %6645 }
 0xfdc   :  { %v4127_v22 = vmul.f32 %v6646_v45, %v8372_v21 }
 0xfde   :  { %4151 = vst.msk [vmem:[%s8876_s6] sm:$0xff] %vm1237_vm10, %v4127_v22  ;;  %6363 = vmatmul.mubr.msk.f32.vlgmr.msra.gmra.mxu1 %vm1237_vm10, %v4127_v22 }
 0xfdf   :  { %6366 = vmatpush3.msk.msra.mxu1 %vm1520_vm9, %v8261_v33  ;;  %6371 = vmatprep.mubr.msk.f32.mxu1 %vm6757_vm0, %v6756_v1 }
 0xfe0   :  { %6367 = vmatprep.subr.mxu1 %v6756_v1 }
 0xfe1   :  { %6368 = vmatpush3.msra.mxu1 %v8270_v46  ;;  %v4760_v46 = vpop.permute.xlu0 %4759 }
 0xfe2   :  { %6369 = vmatprep.subr.mxu1 %v6756_v1 }
 0xfe3   :  { %6370 = vmatpush3.msra.mxu1 %v8374_v34 }
 0xfe4   :  { %6383 = vmatprep.subr.mxu1 %v6756_v1 }
 0xfe8   :  { %v4042_v51 = vpop.xlane.xlu1 %4041 }
 0xfe9   :  { %6647 = vrcp.f32 %v4042_v51 }
 0xff4   :  { %v4060_v24 = vpop.xlane.xlu1 %4059 }
 0xff5   :  { %6649 = vrcp.f32 %v4060_v24 }
 0xff6   :  { %v6648_v21 = vpop.eup %6647 }
 0xff7   :  { %v4130_v33 = vmul.f32 %v6648_v21, %v8384_v32 }
 0xff9   :  { %4154 = vst.msk [vmem:[%s8876_s6 + $0x18] sm:$0xff] %vm1237_vm10, %v4130_v33  ;;  %6372 = vmatmul.mubr.msk.f32.vlgmr.msra.gmra.mxu1 %vm1237_vm10, %v4130_v33 }
 0xffa   :  { %6384 = vmatpush3.msk.msra.mxu1 %vm1520_vm9, %v8378_v62  ;;  %6389 = vmatprep.mubr.msk.f32.mxu1 %vm6757_vm0, %v6756_v1 }
 0xffb   :  { %6385 = vmatprep.subr.mxu1 %v6756_v1 }
 0xffc   :  { %6386 = vmatpush3.msra.mxu1 %v8398_v53 }
 0xffd   :  { %6387 = vmatprep.subr.mxu1 %v6756_v1 }
 0xffe   :  { %6388 = vmatpush3.msra.mxu1 %v4426_v11 }
 0xfff   :  { %6401 = vmatprep.subr.mxu1 %v6756_v1 }
0x1002   :  { %v6650_v34 = vpop.eup %6649  ;;  %v4051_v32 = vpop.xlane.xlu0 %4050 }
0x1003   :  { %6651 = vrcp.f32 %v4051_v32  ;;  %v4136_v47 = vmul.f32 %v6650_v34, %v8390_v15 }
0x1005   :  { %4160 = vst.msk [vmem:[%s8876_s6 + $0x48] sm:$0xff] %vm1237_vm10, %v4136_v47  ;;  %6390 = vmatmul.mubr.msk.f32.vlgmr.msra.gmra.mxu1 %vm1237_vm10, %v4136_v47 }
0x1006   :  { %6402 = vmatpush3.msk.msra.mxu1 %vm1520_vm9, %v4596_v4  ;;  %6407 = vmatprep.mubr.msk.f32.mxu1 %vm6757_vm0, %v6756_v1 }
0x1007   :  { %6403 = vmatprep.subr.mxu1 %v6756_v1 }
0x1008   :  { %6404 = vmatpush3.msra.mxu1 %v4594_v39 }
0x1009   :  { %6405 = vmatprep.subr.mxu1 %v6756_v1 }
0x100a   :  { %6406 = vmatpush3.msra.mxu1 %v4592_v19 }
0x100b   :  { %6419 = vmatprep.subr.mxu1 %v6756_v1 }
0x1010   :  { %v6652_v62 = vpop.eup %6651 }
0x1011   :  { %v4133_v15 = vmul.f32 %v6652_v62, %v8394_v25 }
0x1013   :  { %4157 = vst.msk [vmem:[%s8876_s6 + $0x30] sm:$0xff] %vm1237_vm10, %v4133_v15  ;;  %6381 = vmatmul.mubr.msk.f32.vlgmr.msra.gmra.mxu0 %vm1237_vm10, %v4133_v15 }
0x1014   :  { %6393 = vmatpush3.msk.msra.mxu0 %vm1520_vm9, %v4513_v26  ;;  %6398 = vmatprep.mubr.msk.f32.mxu0 %vm6757_vm0, %v6756_v1 }
0x1015   :  { %6394 = vmatprep.subr.mxu0 %v6756_v1 }
0x1016   :  { %6395 = vmatpush3.msra.mxu0 %v4511_v6 }
0x1017   :  { %6396 = vmatprep.subr.mxu0 %v6756_v1 }
0x1018   :  { %6397 = vmatpush3.msra.mxu0 %v4509_v35 }
0x1019   :  { %6410 = vmatprep.subr.mxu0 %v6756_v1 }
0x1021   :  { %v4069_v25 = vpop.xlane.xlu0 %4068 }
0x1022   :  { %6653 = vrcp.f32 %v4069_v25 }
0x1025   :  { %v4087_v53 = vpop.xlane.xlu0 %4086 }
0x1026   :  { %6655 = vrcp.f32 %v4087_v53 }
0x1029   :  { %v4078_v28 = vpop.xlane.xlu1 %4077 }
0x102a   :  { %6657 = vrcp.f32 %v4078_v28 }
0x102d   :  { %v4096_v58 = vpop.xlane.xlu0 %4095  ;;  %v4675_v10 = vpop.permute.xlu1 %4674 }
0x102e   :  { %6659 = vrcp.f32 %v4096_v58 }
0x102f   :  { %v6654_v3 = vpop.eup %6653 }
0x1030   :  { %v4139_v63 = vmul.f32 %v6654_v3, %v8404_v41  ;;  %v5561_v3 = vld [vmem:[%s8874_s4 + $0x2f] ss:$0 sm:$0xff] }
0x1031   :  { %v4758_v13 = vpop.permute.xlu0 %4757  ;;  %v4890_v41 = vpop.permute.xlu1 %4889 }
0x1032   :  { %4163 = vst.msk [vmem:[%s8876_s6 + $0x60] sm:$0xff] %vm1237_vm10, %v4139_v63  ;;  %6399 = vmatmul.mubr.msk.f32.vlgmr.msra.gmra.mxu0 %vm1237_vm10, %v4139_v63 }
0x1033   :  { %v6656_v50 = vpop.eup %6655  ;;  %6411 = vmatpush3.msk.msra.mxu0 %vm1520_vm9, %v8434_v55  ;;  %6416 = vmatprep.mubr.msk.f32.mxu0 %vm6757_vm0, %v6756_v1  ;;  %v6733_v55 = vld [vmem:[%s8871_s1 + $0x20] sm:$0xff] }
0x1034   :  { %6412 = vmatprep.subr.mxu0 %v6756_v1  ;;  %v4145_v7 = vmul.f32 %v6656_v50, %v8409_v27 }
0x1035   :  { %6413 = vmatpush3.msra.mxu0 %v4677_v48  ;;  %v4888_v57 = vpop.permute.xlu0 %4887 }
0x1036   :  { %6414 = vmatprep.subr.mxu0 %v6756_v1  ;;  %4169 = vst.msk [vmem:[%s8876_s6 + $0x90] sm:$0xff] %vm1237_vm10, %v4145_v7 }
0x1037   :  { %v6658_v16 = vpop.eup %6657  ;;  %6415 = vmatpush3.msra.mxu0 %v4675_v10 }
0x1038   :  { %6417 = vmatmul.mubr.msk.f32.vlgmr.msra.gmra.mxu0 %vm1237_vm10, %v4145_v7  ;;  %v4142_v54 = vmul.f32 %v6658_v16, %v8413_v8  ;;  %6428 = vmatprep.subr.mxu0 %v6756_v1  ;;  %v4175_v7 = vsel %vm1520_vm9, %v7953_v17, %v7962_v38  ;;  %v5482_v17 = vld [vmem:[%s8872_s2 + $0x70] sm:$0xff]  ;;  %v5481_v38 = vld [vmem:[%s8872_s2 + $0x68] sm:$0xff] }
0x1039   :  { %6436 = vmatprep.mubr.msk.f32.mxu0 %vm6757_vm0, %v6756_v1  ;;  %6429 = vmatpush3.msra.mxu0 %v4890_v41  ;;  %v4886_v11 = vpop.permute.xlu0 %4885 }
0x103a   :  { %4166 = vst.msk [vmem:[%s8876_s6 + $0x78] sm:$0xff] %vm1237_vm10, %v4142_v54  ;;  %6408 = vmatmul.mubr.msk.f32.vlgmr.msra.gmra.mxu1 %vm1237_vm10, %v4142_v54  ;;  %6430 = vmatprep.subr.mxu0 %v6756_v1 }
0x103b   :  { %v6660_v52 = vpop.eup %6659  ;;  %6420 = vmatpush3.msk.msra.mxu1 %vm1520_vm9, %v8431_v23  ;;  %6425 = vmatprep.mubr.msk.f32.mxu1 %vm6757_vm0, %v6756_v1 }
0x103c   :  { %6421 = vmatprep.subr.mxu1 %v6756_v1  ;;  %v4148_v5 = vmul.f32 %v6660_v52, %v8417_v59  ;;  %6431 = vmatpush3.msra.mxu0 %v4888_v57  ;;  %v5488_v57 = vld [vmem:[%s8872_s2 + $0xa0] sm:$0xff] }
0x103d   :  { %6422 = vmatpush3.msra.mxu1 %v4760_v46  ;;  %6432 = vmatprep.subr.mxu0 %v6756_v1 }
0x103e   :  { %6423 = vmatprep.subr.mxu1 %v6756_v1  ;;  %4172 = vst.msk [vmem:[%s8876_s6 + $0xa8] sm:$0xff] %vm1237_vm10, %v4148_v5  ;;  %6433 = vmatpush3.msra.mxu0 %v4886_v11  ;;  %v5487_v11 = vld [vmem:[%s8872_s2 + $0x98] sm:$0xff] }
0x103f   :  { %6424 = vmatpush3.msra.mxu1 %v4758_v13  ;;  %6434 = vmatprep.subr.mxu0 %v6756_v1 }
0x1040   :  { %6426 = vmatmul.mubr.msk.f32.vlgmr.msra.gmra.mxu1 %vm1237_vm10, %v4148_v5  ;;  %6439 = vmatprep.subr.mxu1 %v6756_v1 }
0x1041   :  { %6447 = vmatprep.mubr.msk.f32.mxu1 %vm6757_vm0, %v6756_v1 }
0x109e   :  { %v4255_v36 = vpop.f32.mrf.mxu1 }
0x10a0   :  { %v6364_v27 = vpop.f32.mrf.mxu1 }
0x10a1   :  { %v5483_v27 = vld [vmem:[%s8872_s2 + $0x78] sm:$0xff] }
0x10a2   :  { %6440 = vmatpush3.msra.mxu1 %v5483_v27 }
0x10a3   :  { %6441 = vmatprep.subr.mxu1 %v6756_v1 }
0x10a4   :  { %6442 = vmatpush3.msra.mxu1 %v5482_v17 }
0x10a5   :  { %6443 = vmatprep.subr.mxu1 %v6756_v1 }
0x10a6   :  { %6444 = vmatpush3.msra.mxu1 %v5481_v38 }
0x10a7   :  { %6445 = vmatprep.subr.mxu1 %v6756_v1 }
0x10b9   :  { %v4338_v42 = vpop.f32.mrf.mxu1 }
0x10ba   :  { %4841 = vrot.lane.b32.xlu1 %v4338_v42, %s6764_s13  ;;  %v5480_v42 = vld [vmem:[%s8872_s2 + $0x60] sm:$0xff] }
0x10bb   :  { %v6373_v8 = vpop.f32.mrf.mxu1  ;;  %6446 = vmatpush3.msra.mxu1 %v5480_v42 }
0x10bc   :  { %v5491_v8 = vld [vmem:[%s8872_s2 + $0xb8] sm:$0xff]  ;;  %6469 = vmatprep.subr.mxu1 %v6756_v1 }
0x10c5   :  { %v4504_v49 = vpop.f32.mrf.mxu1 }
0x10c7   :  { %v6391_v59 = vpop.f32.mrf.mxu1 }
0x10c8   :  { %v5489_v59 = vld [vmem:[%s8872_s2 + $0xa8] sm:$0xff] }
0x10d3   :  { %v4421_v4 = vpop.f32.mrf.mxu0 }
0x10d4   :  { %4845 = vrot.lane.b32.xlu1 %v4421_v4, %s6765_s14 }
0x10d5   :  { %v6382_v39 = vpop.f32.mrf.mxu0 }
0x10f2   :  { %v4587_v19 = vpop.f32.mrf.mxu0 }
0x10f4   :  { %v6400_v23 = vpop.f32.mrf.mxu0 }
0x10f8   :  { %v4753_v26 = vpop.f32.mrf.mxu0 }
0x10f9   :  { %4860 = vrot.lane.b32.xlu1 %v4753_v26, %s6765_s14  ;;  %v5563_v26 = vld [vmem:[%s8874_s4 + $0x30] ss:$0 sm:$0xff] }
0x10fa   :  { %v6418_v29 = vpop.f32.mrf.mxu0  ;;  %v4670_v6 = vpop.f32.mrf.mxu1 }
0x10fb   :  { %4856 = vrot.lane.b32.xlu0 %v4670_v6, %s6764_s13  ;;  %v5564_v6 = vld [vmem:[%s8874_s4 + $0x31] ss:$0 sm:$0xff] }
0x10fc   :  { %v6409_v35 = vpop.f32.mrf.mxu1 }
0x10fd   :  { %4849 = vrot.lane.b32.xlu1 %v4504_v49, %s6766_s15  ;;  %v5490_v49 = vld [vmem:[%s8872_s2 + $0xb0] sm:$0xff] }
0x1100   :  { %v4836_v45 = vpop.f32.mrf.mxu1 }
0x1101   :  { %4864 = vrot.lane.b32.xlu0 %v4836_v45, %s6766_s15 }
0x1102   :  { %v6427_v22 = vpop.f32.mrf.mxu1 }
0x1103   :  { %v5486_v22 = vld [vmem:[%s8872_s2 + $0x90] sm:$0xff] }
0x1105   :  { %4883 = vrot.lane.b32.xlu0 %v6733_v55, %s6763_s30  ;;  %v5485_v55 = vld [vmem:[%s8872_s2 + $0x88] sm:$0xff] }
0x112c   :  { %v4842_v48 = vpop.permute.xlu1 %4841 }
0x112d   :  { %v4852_v47 = vsel %vm458_vm8, %v4255_v36, %v4842_v48  ;;  %v5484_v48 = vld [vmem:[%s8872_s2 + $0x80] sm:$0xff]  ;;  %s6767_s2 = smov [#allocation3]  }
0x112e   :  { %s5348_s24 = sshll.u32 %s6767_s2, 4  ;;  %s5349_s24 = int_to_ptr.vmem [resolvable:$true] %s5348_s24 }
0x112f   :  { %p6739_p1 = scmp.lt.s32.totalorder %s5349_s24, %s5349_s24 }
0x1146   :  { %v4846_v51 = vpop.permute.xlu1 %4845 }
0x1147   :  { %v4853_v15 = vsel %vm2335_vm12, %v4852_v47, %v4846_v51  ;;  %v5565_v51 = vld [vmem:[%s8874_s4 + $0x32] ss:$0 sm:$0xff] }
0x116b   :  { %v4861_v24 = vpop.permute.xlu1 %4860 }
0x116d   :  { %v4857_v21 = vpop.permute.xlu0 %4856 }
0x116e   :  { %v4867_v33 = vsel %vm458_vm8, %v4587_v19, %v4857_v21 }
0x116f   :  { %v4850_v46 = vpop.permute.xlu1 %4849  ;;  %v4868_v32 = vsel %vm2335_vm12, %v4867_v33, %v4861_v24 }
0x1170   :  { %v4854_v53 = vsel %vm2339_vm13, %v4853_v15, %v4850_v46 }
0x1173   :  { %v4865_v34 = vpop.permute.xlu0 %4864 }
0x1174   :  { %v4869_v62 = vsel %vm2339_vm13, %v4868_v32, %v4865_v34  ;;  %v5567_v34 = vld [vmem:[%s8874_s4 + $0x33] ss:$0 sm:$0xff] }
0x1175   :  { %v4871_v25 = vrot.slane %v4869_v62, 7 }
0x1177   :  { %v4884_v28 = vpop.permute.xlu0 %4883  ;;  %v4873_v58 = vsel %vm1520_vm9, %v4854_v53, %v4871_v25  ;;  %v3890_v53 = vsel %vm1237_vm10, %v8285_v20, -inf }
0x1178   :  { %6435 = vmatpush3.msra.mxu0 %v4884_v28  ;;  %v3899_v28 = vsel %vm1237_vm10, %v8293_v37, -inf }
0x1179   :  { %6437 = vmatmul.mubr.msk.f32.vlgmr.msra.gmra.mxu0 %vm190_vm3, %v4873_v58  ;;  %6450 = vmatprep.subr.mxu0 %v6756_v1  ;;  %v3908_v58 = vsel %vm1237_vm10, %v8301_v2, -inf }
0x117a   :  { %6466 = vmatprep.mubr.msk.f32.mxu0 %vm6757_vm0, %v6756_v1  ;;  %6451 = vmatpush3.msra.mxu0 %v5491_v8  ;;  %v3893_v8 = vsel %vm1244_vm11, %v8287_v44, -inf }
0x117b   :  { %6452 = vmatprep.subr.mxu0 %v6756_v1 }
0x117c   :  { %6453 = vmatpush3.msra.mxu0 %v5490_v49 }
0x117d   :  { %6454 = vmatprep.subr.mxu0 %v6756_v1 }
0x117e   :  { %6455 = vmatpush3.msra.mxu0 %v5489_v59 }
0x117f   :  { %6456 = vmatprep.subr.mxu0 %v6756_v1 }
0x1180   :  { %6457 = vmatpush3.msra.mxu0 %v5488_v57  ;;  %v3902_v57 = vsel %vm1244_vm11, %v8299_v0, -inf }
0x1181   :  { %6458 = vmatprep.subr.mxu0 %v6756_v1 }
0x1182   :  { %6459 = vmatpush3.msra.mxu0 %v5487_v11 }
0x1183   :  { %6460 = vmatprep.subr.mxu0 %v6756_v1 }
0x1184   :  { %6461 = vmatpush3.msra.mxu0 %v5486_v22 }
0x1185   :  { %6462 = vmatprep.subr.mxu0 %v6756_v1 }
0x1186   :  { %6463 = vmatpush3.msra.mxu0 %v5485_v55 }
0x1187   :  { %6464 = vmatprep.subr.mxu0 %v6756_v1 }
0x1188   :  { %6465 = vmatpush3.msra.mxu0 %v5484_v48 }
0x1239   :  { %v4964_v63 = vpop.f32.mrf.mxu0 }
0x123a   :  { %v4965_v50 = vadd.f32 %v5561_v3, %v4964_v63  ;;  %v3917_v3 = vsel %vm1237_vm10, %v8309_v30, -inf  ;;  %v3926_v63 = vsel %vm1237_vm10, %v8315_v9, -inf }
0x123b   :  { %v6438_v10 = vpop.f32.mrf.mxu0 }
0x123c   :  { %v4968_v16 = vadd.f32 %v4965_v50, %v4175_v7  ;;  %v3935_v50 = vsel %vm1237_vm10, %v8325_v61, -inf  ;;  %v3944_v7 = vsel %vm1237_vm10, %v8331_v18, -inf  ;;  %v3953_v10 = vsel %vm1237_vm10, %v8337_v40, -inf }
0x123e   :  { %v4971_v54 = vsel %vm203_vm5, %v4968_v16, 0.0 }
0x123f   :  { %4972 = vadd.xlane.f32.xlu1 %v4971_v54 }
0x12c8   :  { %v4973_v52 = vpop.xlane.xlu1 %4972 }
0x12c9   :  { %v4974_v5 = vmul.f32 0.03125, %v4973_v52 }
0x12cb   :  { %v4975_v13 = vsub.f32 %v4968_v16, %v4974_v5 }
0x12cd   :  { %v4976_v41 = vmul.f32 %v4975_v13, %v4975_v13 }
0x12cf   :  { %v4977_v36 = vsel %vm203_vm5, %v4976_v41, 0.0 }
0x12d0   :  { %4978 = vadd.xlane.f32.xlu0 %v4977_v36 }
0x1359   :  { %v4979_v4 = vpop.xlane.xlu0 %4978 }
0x135a   :  { %v4980_v39 = vmul.f32 0.03125, %v4979_v4 }
0x135c   :  { %v4981_v19 = vadd.f32 1e-05, %v4980_v39 }
0x135e   :  { %6661 = vrsqrt.f32 %v4981_v19 }
0x136b   :  { %v6662_v23 = vpop.eup %6661 }
0x136c   :  { %v4983_v29 = vmul.f32 %v6662_v23, %v4975_v13 }
0x136e   :  { %v4988_v35 = vmul.f32 %v5563_v26, %v4983_v29  ;;  %v3920_v29 = vsel %vm1244_vm11, %v8313_v14, -inf }
0x1370   :  { %v4993_v45 = vadd.f32 %v5564_v6, %v4988_v35 }
0x1372   :  { %6448 = vmatmul.mubr.msk.f32.vlgmr.msra.gmra.mxu1 %vm190_vm3, %v4993_v45 }
0x1373   :  { %6477 = vmatprep.mubr.msk.f32.mxu1 %vm6757_vm0, %v6756_v1 }
0x1432   :  { %v5068_v24 = vpop.f32.mrf.mxu1 }
0x1433   :  { %v5069_v21 = vadd.f32 %v5565_v51, %v5068_v24 }
0x1434   :  { %v6449_v33 = vpop.f32.mrf.mxu1 }
0x1435   :  { %v5072_v46 = vmax.f32 %v5069_v21, 0.0 }
0x1437   :  { %6467 = vmatmul.mubr.msk.f32.vlgmr.msra.gmra.mxu0 %vm41_vm1, %v5072_v46 }
0x14f7   :  { %v5147_v32 = vpop.f32.mrf.mxu0 }
0x14f8   :  { %v5148_v47 = vadd.f32 %v5567_v34, %v5147_v32 }
0x14f9   :  { %v6468_v62 = vpop.f32.mrf.mxu0 }
0x14fa   :  { %v5151_v15 = vadd.f32 %v5148_v47, %v4993_v45 }
0x14fc   :  { %v5154_v25 = vsel %vm203_vm5, %v5151_v15, 0.0 }
0x14fd   :  { %5155 = vadd.xlane.f32.xlu0 %v5154_v25 }
0x1501   :  { %3891 = vmax.xlane.f32.xlu0 %v3890_v53  ;;  %v3956_v53 = vsel %vm1244_vm11, %v8339_v12, -inf }
0x1505   :  { %3900 = vmax.xlane.f32.xlu0 %v3899_v28 }
0x1509   :  { %3909 = vmax.xlane.f32.xlu0 %v3908_v58  ;;  %v5178_v58 = vld [vmem:[%s8873_s3 + $0x48] sm:$0xff] }
0x150d   :  { %3918 = vmax.xlane.f32.xlu0 %v3917_v3 }
0x1511   :  { %3927 = vmax.xlane.f32.xlu0 %v3926_v63  ;;  %v5177_v63 = vld [vmem:[%s8873_s3 + $0x40] sm:$0xff] }
0x1515   :  { %3936 = vmax.xlane.f32.xlu0 %v3935_v50 }
0x1519   :  { %3945 = vmax.xlane.f32.xlu0 %v3944_v7 }
0x151d   :  { %3954 = vmax.xlane.f32.xlu0 %v3953_v10 }
0x1586   :  { %v5156_v16 = vpop.xlane.xlu0 %5155 }
0x1587   :  { %v5157_v54 = vmul.f32 0.03125, %v5156_v16 }
0x1589   :  { %v8642_v52 = vsub.f32 %v5151_v15, %v5157_v54  ;;  %v5180_v15 = vld [vmem:[%s8873_s3 + $0x58] sm:$0xff] }
0x158a   :  { %v3892_v5 = vpop.xlane.xlu0 %3891  ;;  %6470 = vmatpush3.msra.mxu1 %v5180_v15 }
0x158b   :  { %v3960_v13 = vsub.f32 %v8285_v20, %v3892_v5  ;;  %v5159_v41 = vmul.f32 %v8642_v52, %v8642_v52  ;;  %6471 = vmatprep.subr.mxu1 %v6756_v1 }
0x158d   :  { %v3985_v36 = vmul.f32 1.442695, %v3960_v13  ;;  %v5160_v27 = vsel %vm203_vm5, %v5159_v41, 0.0 }
0x158e   :  { %5161 = vadd.xlane.f32.xlu1 %v5160_v27  ;;  %v3901_v17 = vpop.xlane.xlu0 %3900 }
0x158f   :  { %6663 = vpow2.f32 %v3985_v36  ;;  %v3963_v38 = vsub.f32 %v8293_v37, %v3901_v17  ;;  %v3911_v37 = vsel %vm1244_vm11, %v8303_v43, -inf }
0x1591   :  { %v3991_v42 = vmul.f32 1.442695, %v3963_v38 }
0x1592   :  { %3894 = vmax.xlane.f32.xlu1 %v3893_v8  ;;  %v3910_v49 = vpop.xlane.xlu0 %3909 }
0x1593   :  { %6665 = vpow2.f32 %v3991_v42  ;;  %v3966_v20 = vsub.f32 %v8301_v2, %v3910_v49 }
0x1595   :  { %v3997_v59 = vmul.f32 1.442695, %v3966_v20 }
0x1596   :  { %3903 = vmax.xlane.f32.xlu1 %v3902_v57  ;;  %v3919_v11 = vpop.xlane.xlu0 %3918 }
0x1597   :  { %6667 = vpow2.f32 %v3997_v59  ;;  %v3969_v4 = vsub.f32 %v8309_v30, %v3919_v11 }
0x1599   :  { %v4003_v39 = vmul.f32 1.442695, %v3969_v4 }
0x159a   :  { %3912 = vmax.xlane.f32.xlu1 %v3911_v37  ;;  %v3928_v19 = vpop.xlane.xlu0 %3927 }
0x159b   :  { %6669 = vpow2.f32 %v4003_v39  ;;  %v3972_v23 = vsub.f32 %v8315_v9, %v3928_v19  ;;  %v3929_v9 = vsel %vm1244_vm11, %v8317_v60, -inf }
0x159c   :  { %v8658_v26 = vpop.eup %6663 }
0x159d   :  { %v4009_v2 = vmul.f32 1.442695, %v3972_v23  ;;  %v4034_v6 = vsel %vm1237_vm10, %v8658_v26, 0.0 }
0x159e   :  { %3921 = vmax.xlane.f32.xlu1 %v3920_v29  ;;  %4035 = vadd.xlane.f32.xlu0 %v4034_v6  ;;  %v3937_v30 = vpop.xlane.xlu0 %3936 }
0x159f   :  { %6671 = vpow2.f32 %v4009_v2  ;;  %v3975_v35 = vsub.f32 %v8325_v61, %v3937_v30  ;;  %v3938_v61 = vsel %vm1244_vm11, %v8329_v56, -inf }
0x15a0   :  { %v8665_v45 = vpop.eup %6665 }
0x15a1   :  { %v4015_v22 = vmul.f32 1.442695, %v3975_v35  ;;  %v4043_v55 = vsel %vm1237_vm10, %v8665_v45, 0.0 }
0x15a2   :  { %3930 = vmax.xlane.f32.xlu1 %v3929_v9  ;;  %4044 = vadd.xlane.f32.xlu0 %v4043_v55  ;;  %v3946_v48 = vpop.xlane.xlu0 %3945 }
0x15a3   :  { %6673 = vpow2.f32 %v4015_v22  ;;  %v3978_v51 = vsub.f32 %v8331_v18, %v3946_v48  ;;  %v3947_v18 = vsel %vm1244_vm11, %v8333_v31, -inf }
0x15a4   :  { %v8672_v24 = vpop.eup %6667 }
0x15a5   :  { %v4021_v21 = vmul.f32 1.442695, %v3978_v51  ;;  %v4052_v33 = vsel %vm1237_vm10, %v8672_v24, 0.0 }
0x15a6   :  { %3939 = vmax.xlane.f32.xlu1 %v3938_v61  ;;  %4053 = vadd.xlane.f32.xlu0 %v4052_v33  ;;  %v3955_v46 = vpop.xlane.xlu0 %3954 }
0x15a7   :  { %6675 = vpow2.f32 %v4021_v21  ;;  %v3981_v34 = vsub.f32 %v8337_v40, %v3955_v46  ;;  %v5179_v40 = vld [vmem:[%s8873_s3 + $0x50] sm:$0xff] }
0x15a8   :  { %v8679_v32 = vpop.eup %6669  ;;  %6472 = vmatpush3.msra.mxu1 %v5179_v40 }
0x15a9   :  { %v4027_v47 = vmul.f32 1.442695, %v3981_v34  ;;  %v4061_v62 = vsel %vm1237_vm10, %v8679_v32, 0.0  ;;  %6473 = vmatprep.subr.mxu1 %v6756_v1 }
0x15aa   :  { %3948 = vmax.xlane.f32.xlu1 %v3947_v18  ;;  %4062 = vadd.xlane.f32.xlu0 %v4061_v62 }
0x15ab   :  { %6677 = vpow2.f32 %v4027_v47  ;;  %6474 = vmatpush3.msra.mxu1 %v5178_v58 }
0x15ac   :  { %v8688_v25 = vpop.eup %6671  ;;  %6475 = vmatprep.subr.mxu1 %v6756_v1 }
0x15ad   :  { %v4070_v28 = vsel %vm1237_vm10, %v8688_v25, 0.0  ;;  %6476 = vmatpush3.msra.mxu1 %v5177_v63 }
0x15ae   :  { %3957 = vmax.xlane.f32.xlu1 %v3956_v53  ;;  %4071 = vadd.xlane.f32.xlu0 %v4070_v28 }
0x15af   :  { %6480 = vmatprep.subr.mxu1 %v6756_v1 }
0x15b0   :  { %v8702_v3 = vpop.eup %6673 }
0x15b1   :  { %v4079_v50 = vsel %vm1237_vm10, %v8702_v3, 0.0 }
0x15b2   :  { %4080 = vadd.xlane.f32.xlu0 %v4079_v50 }
0x15b4   :  { %v8711_v7 = vpop.eup %6675 }
0x15b5   :  { %v4088_v10 = vsel %vm1237_vm10, %v8711_v7, 0.0 }
0x15b6   :  { %4089 = vadd.xlane.f32.xlu0 %v4088_v10 }
0x15b8   :  { %v8715_v16 = vpop.eup %6677 }
0x15b9   :  { %v4097_v54 = vsel %vm1237_vm10, %v8715_v16, 0.0 }
0x15ba   :  { %4098 = vadd.xlane.f32.xlu0 %v4097_v54 }
0x1617   :  { %v5162_v5 = vpop.xlane.xlu1 %5161 }
0x1618   :  { %v5163_v13 = vmul.f32 0.03125, %v5162_v5 }
0x161a   :  { %v5164_v41 = vadd.f32 1e-05, %v5163_v13 }
0x161b   :  { %v3895_v36 = vpop.xlane.xlu1 %3894 }
0x161c   :  { %6679 = vrsqrt.f32 %v5164_v41  ;;  %v3961_v27 = vsub.f32 %v8287_v44, %v3895_v36  ;;  %v5569_v44 = vld [vmem:[%s8874_s4 + $0x34] ss:$0 sm:$0xff] }
0x161e   :  { %v3987_v17 = vmul.f32 1.442695, %v3961_v27 }
0x161f   :  { %v3904_v38 = vpop.xlane.xlu1 %3903 }
0x1620   :  { %6681 = vpow2.f32 %v3987_v17  ;;  %v3964_v42 = vsub.f32 %v8299_v0, %v3904_v38 }
0x1622   :  { %v3993_v8 = vmul.f32 1.442695, %v3964_v42 }
0x1623   :  { %v3913_v49 = vpop.xlane.xlu1 %3912 }
0x1624   :  { %6683 = vpow2.f32 %v3993_v8  ;;  %v3967_v20 = vsub.f32 %v8303_v43, %v3913_v49  ;;  %v5570_v43 = vld [vmem:[%s8874_s4 + $0x35] ss:$0 sm:$0xff] }
0x1626   :  { %v3999_v59 = vmul.f32 1.442695, %v3967_v20 }
0x1627   :  { %v3922_v57 = vpop.xlane.xlu1 %3921  ;;  %v4036_v11 = vpop.xlane.xlu0 %4035 }
0x1628   :  { %6685 = vpow2.f32 %v3999_v59  ;;  %v3970_v4 = vsub.f32 %v8313_v14, %v3922_v57 }
0x1629   :  { %v6680_v39 = vpop.eup %6679  ;;  %6687 = vrcp.f32 %v4036_v11  ;;  %v5181_v11 = vld [vmem:[%s8874_s4 + $0x36] sm:$0xff] }
0x162a   :  { %v5166_v37 = vmul.f32 %v6680_v39, %v8642_v52  ;;  %v4005_v0 = vmul.f32 1.442695, %v3970_v4 }
0x162b   :  { %v3931_v19 = vpop.xlane.xlu1 %3930  ;;  %v4045_v23 = vpop.xlane.xlu0 %4044 }
0x162c   :  { %v5171_v2 = vmul.f32 %v5569_v44, %v5166_v37  ;;  %6689 = vpow2.f32 %v4005_v0  ;;  %v3973_v29 = vsub.f32 %v8317_v60, %v3931_v19 }
0x162d   :  { %v8731_v14 = vpop.eup %6681  ;;  %6691 = vrcp.f32 %v4045_v23 }
0x162e   :  { %v4011_v6 = vmul.f32 1.442695, %v3973_v29  ;;  %v4037_v30 = vsel %vm1244_vm11, %v8731_v14, 0.0  ;;  %v5176_v35 = vadd.f32 %v5570_v43, %v5171_v2 }
0x162f   :  { %4038 = vadd.xlane.f32.xlu1 %v4037_v30  ;;  %v3940_v52 = vpop.xlane.xlu1 %3939  ;;  %v4054_v22 = vpop.xlane.xlu0 %4053 }
0x1630   :  { %6693 = vpow2.f32 %v4011_v6  ;;  %v3976_v9 = vsub.f32 %v8329_v56, %v3940_v52  ;;  %6478 = vmatmul.mubr.msk.f32.vlgmr.msra.gmra.mxu1 %vm190_vm3, %v5176_v35 }
0x1631   :  { %v8737_v55 = vpop.eup %6683  ;;  %6695 = vrcp.f32 %v4054_v22  ;;  %6488 = vmatprep.mubr.msk.f32.mxu1 %vm6757_vm0, %v6756_v1 }
0x1632   :  { %v4017_v60 = vmul.f32 1.442695, %v3976_v9  ;;  %v4046_v48 = vsel %vm1244_vm11, %v8737_v55, 0.0 }
0x1633   :  { %4047 = vadd.xlane.f32.xlu1 %v4046_v48  ;;  %v3949_v51 = vpop.xlane.xlu1 %3948  ;;  %v4063_v21 = vpop.xlane.xlu0 %4062 }
0x1634   :  { %6697 = vpow2.f32 %v4017_v60  ;;  %v3979_v61 = vsub.f32 %v8333_v31, %v3949_v51 }
0x1635   :  { %v8744_v33 = vpop.eup %6685  ;;  %6699 = vrcp.f32 %v4063_v21 }
0x1636   :  { %v6688_v56 = vpop.eup %6687  ;;  %v4023_v46 = vmul.f32 1.442695, %v3979_v61  ;;  %v4055_v34 = vsel %vm1244_vm11, %v8744_v33, 0.0 }
0x1637   :  { %v4128_v47 = vmul.f32 %v6688_v56, %v8658_v26  ;;  %4056 = vadd.xlane.f32.xlu1 %v4055_v34  ;;  %v3958_v18 = vpop.xlane.xlu1 %3957  ;;  %v4072_v62 = vpop.xlane.xlu0 %4071 }
0x1638   :  { %6701 = vpow2.f32 %v4023_v46  ;;  %v3982_v15 = vsub.f32 %v8339_v12, %v3958_v18 }
0x1639   :  { %v8750_v40 = vpop.eup %6689  ;;  %4152 = vst.msk [vmem:[%s8876_s6 + $0x8] sm:$0xff] %vm1237_vm10, %v4128_v47  ;;  %6703 = vrcp.f32 %v4072_v62  ;;  %v5573_v47 = vld [vmem:[%s8874_s4 + $0x27] ss:$0 sm:$0xff] }
0x163a   :  { %v6692_v31 = vpop.eup %6691  ;;  %v4029_v53 = vmul.f32 1.442695, %v3982_v15  ;;  %v4064_v28 = vsel %vm1244_vm11, %v8750_v40, 0.0 }
0x163b   :  { %v4131_v26 = vmul.f32 %v6692_v31, %v8665_v45  ;;  %4065 = vadd.xlane.f32.xlu1 %v4064_v28  ;;  %v4081_v58 = vpop.xlane.xlu0 %4080 }
0x163c   :  { %6705 = vpow2.f32 %v4029_v53 }
0x163d   :  { %v8759_v63 = vpop.eup %6693  ;;  %4155 = vst.msk [vmem:[%s8876_s6 + $0x20] sm:$0xff] %vm1237_vm10, %v4131_v26  ;;  %6707 = vrcp.f32 %v4081_v58 }
0x163e   :  { %v6696_v12 = vpop.eup %6695  ;;  %v4073_v50 = vsel %vm1244_vm11, %v8759_v63, 0.0 }
0x163f   :  { %v4134_v10 = vmul.f32 %v6696_v12, %v8672_v24  ;;  %4074 = vadd.xlane.f32.xlu1 %v4073_v50  ;;  %v4090_v54 = vpop.xlane.xlu0 %4089 }
0x1640   :  { %6709 = vrcp.f32 %v4090_v54 }
0x1641   :  { %v8768_v45 = vpop.eup %6697  ;;  %4158 = vst.msk [vmem:[%s8876_s6 + $0x38] sm:$0xff] %vm1237_vm10, %v4134_v10 }
0x1642   :  { %v6700_v5 = vpop.eup %6699  ;;  %v4082_v13 = vsel %vm1244_vm11, %v8768_v45, 0.0 }
0x1643   :  { %v4137_v41 = vmul.f32 %v6700_v5, %v8679_v32  ;;  %4083 = vadd.xlane.f32.xlu1 %v4082_v13  ;;  %v4099_v36 = vpop.xlane.xlu0 %4098 }
0x1644   :  { %6711 = vrcp.f32 %v4099_v36 }
0x1645   :  { %v8777_v24 = vpop.eup %6701  ;;  %4161 = vst.msk [vmem:[%s8876_s6 + $0x50] sm:$0xff] %vm1237_vm10, %v4137_v41 }
0x1646   :  { %v6704_v27 = vpop.eup %6703  ;;  %v4091_v17 = vsel %vm1244_vm11, %v8777_v24, 0.0 }
0x1647   :  { %v4140_v38 = vmul.f32 %v6704_v27, %v8688_v25  ;;  %4092 = vadd.xlane.f32.xlu1 %v4091_v17 }
0x1649   :  { %v6706_v42 = vpop.eup %6705  ;;  %4164 = vst.msk [vmem:[%s8876_s6 + $0x68] sm:$0xff] %vm1237_vm10, %v4140_v38 }
0x164a   :  { %v6708_v32 = vpop.eup %6707  ;;  %v4100_v8 = vsel %vm1244_vm11, %v6706_v42, 0.0 }
0x164b   :  { %v4143_v49 = vmul.f32 %v6708_v32, %v8702_v3  ;;  %4101 = vadd.xlane.f32.xlu1 %v4100_v8  ;;  %v5184_v3 = vld [vmem:[%s8874_s4 + $0x4e] sm:$0xff] }
0x164c   :  { %6481 = vmatpush3.msra.mxu1 %v5184_v3 }
0x164d   :  { %v6710_v20 = vpop.eup %6709  ;;  %4167 = vst.msk [vmem:[%s8876_s6 + $0x80] sm:$0xff] %vm1237_vm10, %v4143_v49  ;;  %6482 = vmatprep.subr.mxu1 %v6756_v1 }
0x164e   :  { %v4146_v25 = vmul.f32 %v6710_v20, %v8711_v7  ;;  %v5183_v7 = vld [vmem:[%s8874_s4 + $0x46] sm:$0xff] }
0x164f   :  { %6483 = vmatpush3.msra.mxu1 %v5183_v7 }
0x1650   :  { %4170 = vst.msk [vmem:[%s8876_s6 + $0x98] sm:$0xff] %vm1237_vm10, %v4146_v25  ;;  %6484 = vmatprep.subr.mxu1 %v6756_v1 }
0x1651   :  { %v6712_v59 = vpop.eup %6711 }
0x1652   :  { %v4149_v57 = vmul.f32 %v6712_v59, %v8715_v16  ;;  %v5182_v16 = vld [vmem:[%s8874_s4 + $0x3e] sm:$0xff] }
0x1653   :  { %6485 = vmatpush3.msra.mxu1 %v5182_v16 }
0x1654   :  { %4173 = vst.msk [vmem:[%s8876_s6 + $0xb0] sm:$0xff] %vm1237_vm10, %v4149_v57  ;;  %6486 = vmatprep.subr.mxu1 %v6756_v1 }
0x1655   :  { %6487 = vmatpush3.msra.mxu1 %v5181_v11 }
0x16b8   :  { %v4039_v4 = vpop.xlane.xlu1 %4038 }
0x16b9   :  { %6713 = vrcp.f32 %v4039_v4 }
0x16bc   :  { %v4048_v39 = vpop.xlane.xlu1 %4047 }
0x16bd   :  { %6715 = vrcp.f32 %v4048_v39 }
0x16c0   :  { %v4057_v44 = vpop.xlane.xlu1 %4056 }
0x16c1   :  { %6717 = vrcp.f32 %v4057_v44 }
0x16c4   :  { %v4066_v37 = vpop.xlane.xlu1 %4065 }
0x16c5   :  { %6719 = vrcp.f32 %v4066_v37 }
0x16c6   :  { %v6714_v0 = vpop.eup %6713 }
0x16c7   :  { %v4129_v19 = vmul.f32 %v6714_v0, %v8731_v14 }
0x16c8   :  { %v4075_v23 = vpop.xlane.xlu1 %4074 }
0x16c9   :  { %4153 = vst.msk [vmem:[%s8876_s6 + $0x10] sm:$0x1] %vm1244_vm11, %v4129_v19  ;;  %6721 = vrcp.f32 %v4075_v23 }
0x16ca   :  { %v6716_v1 = vpop.eup %6715 }
0x16cb   :  { %v4132_v43 = vmul.f32 %v6716_v1, %v8737_v55 }
0x16cc   :  { %v4084_v2 = vpop.xlane.xlu1 %4083 }
0x16cd   :  { %4156 = vst.msk [vmem:[%s8876_s6 + $0x28] sm:$0x1] %vm1244_vm11, %v4132_v43  ;;  %6723 = vrcp.f32 %v4084_v2 }
0x16ce   :  { %v6718_v29 = vpop.eup %6717 }
0x16cf   :  { %v4135_v14 = vmul.f32 %v6718_v29, %v8744_v33  ;;  %v5571_v33 = vld [vmem:[%s8874_s4 + $0x26] ss:$0 sm:$0xff] }
0x16d0   :  { %v4093_v6 = vpop.xlane.xlu1 %4092 }
0x16d1   :  { %4159 = vst.msk [vmem:[%s8876_s6 + $0x40] sm:$0x1] %vm1244_vm11, %v4135_v14  ;;  %6725 = vrcp.f32 %v4093_v6 }
0x16d2   :  { %v6720_v30 = vpop.eup %6719 }
0x16d3   :  { %v4138_v35 = vmul.f32 %v6720_v30, %v8750_v40 }
0x16d4   :  { %v4102_v52 = vpop.xlane.xlu1 %4101 }
0x16d5   :  { %4162 = vst.msk [vmem:[%s8876_s6 + $0x58] sm:$0x1] %vm1244_vm11, %v4138_v35  ;;  %6727 = vrcp.f32 %v4102_v52 }
0x16d6   :  { %v6722_v22 = vpop.eup %6721 }
0x16d7   :  { %v4141_v9 = vmul.f32 %v6722_v22, %v8759_v63 }
0x16d9   :  { %4165 = vst.msk [vmem:[%s8876_s6 + $0x70] sm:$0x1] %vm1244_vm11, %v4141_v9 }
0x16da   :  { %v6724_v55 = vpop.eup %6723 }
0x16db   :  { %v4144_v60 = vmul.f32 %v6724_v55, %v8768_v45 }
0x16dd   :  { %4168 = vst.msk [vmem:[%s8876_s6 + $0x88] sm:$0x1] %vm1244_vm11, %v4144_v60 }
0x16de   :  { %v6726_v48 = vpop.eup %6725 }
0x16df   :  { %v4147_v51 = vmul.f32 %v6726_v48, %v8777_v24 }
0x16e1   :  { %4171 = vst.msk [vmem:[%s8876_s6 + $0xa0] sm:$0x1] %vm1244_vm11, %v4147_v51 }
0x16e2   :  { %v6728_v21 = vpop.eup %6727 }
0x16e3   :  { %v4150_v61 = vmul.f32 %v6728_v21, %v6706_v42 }
0x16e5   :  { %4174 = vst.msk [vmem:[%s8876_s6 + $0xb8] sm:$0x1] %vm1244_vm11, %v4150_v61  ;;  %s6734_s6 = scalar_lea.vmem %s5349_s24, 32 }
0x16e6   :  { %p6735_p0 = scmp.ne.s32.totalorder %s5349_s24, %s6734_s6  ;;  %p6740_p2 = scmp.lt.s32.totalorder %s6734_s6, %s6734_s6 }
0x16e8   :  { %p6741_p3 = por %p6740_p2, %p6739_p1 }
0x16ea   :  { %p6742_p4 = pnand %p6741_p3, %p6735_p0 }
0x16f0   :  { %v5259_v56 = vpop.f32.mrf.mxu1 }
0x16f1   :  { %v5260_v46 = vadd.f32 %v5571_v33, %v5259_v56 }
0x16f2   :  { %v6479_v34 = vpop.f32.mrf.mxu1 }
0x16f3   :  { %6489 = vmatmul.mubr.msk.f32.vlgmr.msra.gmra.mxu1 %vm190_vm3, %v5260_v46 }
0x17b3   :  { %v5337_v18 = vpop.f32.mrf.mxu1 }
0x17b4   :  { %v5338_v62 = vadd.f32 %v5573_v47, %v5337_v18 }
0x17b5   :  { %v6490_v15 = vpop.f32.mrf.mxu1 }
0x17b6   :  { %5341 = vst [vmem:[#allocation3] sm:$0x3] %v5338_v62 }
0x17b7   :  { %6745 = shalt.err (!%p6742_p4)
}
0x17b8   :  { %5351 = dma.vmem_to_hbm [thread:$0]  %s5349_s24, 32, %s8875_s5, [#allocation4]  }
0x17b9   :  { %6754 = dma.done.wait [#allocation4], 32  }
0x17ba   :  { %6755 = vsyncadd [#allocation4], 4294967264 }
0x17bb   :  { %5359 = vsyncpa [#allocation4], 1 }

</bundles_post_ra>
